<compile_context>
chip_gen: v7x
topology: tpu7x:2x2x1
jax: 0.10.0
libtpu: 0.0.40
codegen_flags: <defaults>
</compile_context>

<pallas_src>
import functools

import jax
import jax.numpy as jnp
from jax.experimental import pallas as pl
from jax.experimental.pallas import tpu as pltpu


_PAD = 128  # lane-aligned zero guard band on each side of the flattened image


# ----------------------------------------------------------------------------
# Fused FASFF kernel: one grid step == one image, everything stays in VMEM.
# ----------------------------------------------------------------------------
def fasff_kernel(x0_ref, x1_ref, x2_ref, mask_ref,
                 d1w, d1b, d2w, d2b, r1w, r1b, r2w, r2b,
                 mcw, mcb, dcw, dcb, rcw, rcb,
                 m1wa, m1wb, m1wc, m2w,
                 o_ref, pad_ref, *, H, W, neg_slope):
    HW = H * W
    f32 = jnp.float32
    # flattened-pixel offset of each of the 9 conv taps, t = (dy+1)*3 + (dx+1)
    offs = [dy * W + dx for dy in (-1, 0, 1) for dx in (-1, 0, 1)]

    # Zero the scratch once: the guard bands are never written afterwards, so
    # masked (out-of-image) taps always read finite zeros.
    pad_ref[...] = jnp.zeros_like(pad_ref)

    def conv3x3(pairs, b_ref=None, act=False):
        """3x3 'same' conv; `pairs` is a list of (x, w_ref) channel groups.

        x: (Cin_g, HW) activation, w_ref: (9, Cout, Cin_g) tap weights.
        Group results are accumulated, which is exactly a conv over the
        channel-concatenated input (used to fold torch.cat into MaskModel).
        """
        cout = pairs[0][1].shape[1]
        acc = jnp.zeros((cout, HW), f32)
        for x, w_ref in pairs:
            cin = x.shape[0]
            # stage the flattened image between the zero guard bands
            pad_ref[0:cin, _PAD:_PAD + HW] = x
            for t, off in enumerate(offs):
                tap = pad_ref[0:cin, _PAD + off:_PAD + off + HW]
                if off != 0:               # center tap needs no boundary mask
                    tap = tap * mask_ref[t]
                acc = acc + jnp.dot(w_ref[t], tap,
                                    preferred_element_type=f32)
        if b_ref is not None:
            acc = acc + b_ref[...]          # (Cout, 1) broadcast along lanes
        if act:
            acc = jnp.where(acc >= 0, acc, acc * neg_slope)
        return acc

    def conv1x1(x, w_ref, b_ref):
        return jnp.dot(w_ref[...], x, preferred_element_type=f32) + b_ref[...]

    x0 = x0_ref[0]            # (C, HW)
    x1 = x1_ref[0]
    x2 = x2_ref[0]

    # DegradedModel / RefModel: SN-conv3x3 -> LeakyReLU(0.2) -> SN-conv3x3
    degraded_f = conv3x3([(conv3x3([(x0, d1w)], d1b, act=True), d2w)], d2b)
    ref_f = conv3x3([(conv3x3([(x1, r1w)], r1b, act=True), r2w)], r2b)

    # 1x1 "Concat" projections to C//2 channels (VMEM resident)
    down_mask = conv1x1(x2, mcw, mcb)
    down_deg = conv1x1(degraded_f, dcw, dcb)
    down_ref = conv1x1(ref_f, rcw, rcb)

    # MaskModel: conv3x3(no bias) -> LeakyReLU(0.2) -> conv3x3(no bias).
    # torch.cat((mask, degraded, ref), 1) is folded into the first conv as
    # three accumulated channel groups.
    m_h = conv3x3([(down_mask, m1wa), (down_deg, m1wb), (down_ref, m1wc)],
                  act=True)
    mask_f = conv3x3([(m_h, m2w)])

    # final blend: out = DegradedF + (RefF - DegradedF) * MaskF
    o_ref[0] = (degraded_f + (ref_f - degraded_f) * mask_f).astype(o_ref.dtype)


# ----------------------------------------------------------------------------
# Weight packing (PyTorch OIHW -> kernel layouts) and tap boundary masks
# ----------------------------------------------------------------------------
def pack_w3x3(w_oihw):
    # (Cout, Cin, 3, 3) -> (9, Cout, Cin), tap-major t = ky*3 + kx
    cout, cin = w_oihw.shape[0], w_oihw.shape[1]
    return jnp.transpose(w_oihw, (2, 3, 0, 1)).reshape(9, cout, cin)


def pack_w1x1(w_oihw):
    return w_oihw[:, :, 0, 0]                       # (Cout, Cin)


def pack_b(b):
    return b.reshape(-1, 1)                         # (Cout, 1)


def make_tap_masks(H, W):
    # mask[t, 0, p] == 1.0 iff source pixel (h+dy, w+dx) of output pixel
    # p = h*W + w lies inside the image (t enumerates (dy, dx) row-major).
    hh, ww = jnp.meshgrid(jnp.arange(H), jnp.arange(W), indexing="ij")
    hh = hh.reshape(1, H * W)
    ww = ww.reshape(1, H * W)
    masks = []
    for dy in (-1, 0, 1):
        for dx in (-1, 0, 1):
            ok = ((hh + dy >= 0) & (hh + dy < H) &
                  (ww + dx >= 0) & (ww + dx < W))
            masks.append(ok.astype(jnp.float32))
    return jnp.stack(masks, axis=0)                 # (9, 1, H*W)


# ----------------------------------------------------------------------------
# FASFFBlock forward (single fused pallas_call)
# ----------------------------------------------------------------------------
def fasff_forward(params, x0, x1, x2):
    # x0, x1, x2: (N, C, H, W) float32 (PyTorch NCHW layout)
    N, C, H, W = x0.shape
    HW = H * W
    half = C // 2
    assert C % 2 == 0
    assert HW % 128 == 0, "H*W must be a multiple of 128 (lane-dense layout)"
    assert W + 1 <= _PAD

    tap_mask = make_tap_masks(H, W)
    packed = [
        pack_w3x3(params["d1_w"]), pack_b(params["d1_b"]),
        pack_w3x3(params["d2_w"]), pack_b(params["d2_b"]),
        pack_w3x3(params["r1_w"]), pack_b(params["r1_b"]),
        pack_w3x3(params["r2_w"]), pack_b(params["r2_b"]),
        pack_w1x1(params["mc_w"]), pack_b(params["mc_b"]),
        pack_w1x1(params["dc_w"]), pack_b(params["dc_b"]),
        pack_w1x1(params["rc_w"]), pack_b(params["rc_b"]),
        pack_w3x3(params["m1_w"][:, :half]),
        pack_w3x3(params["m1_w"][:, half:2 * half]),
        pack_w3x3(params["m1_w"][:, 2 * half:]),
        pack_w3x3(params["m2_w"]),
    ]

    x0f = x0.reshape(N, C, HW)
    x1f = x1.reshape(N, C, HW)
    x2f = x2.reshape(N, C, HW)

    img_spec = pl.BlockSpec((1, C, HW), lambda n: (n, 0, 0))

    def const_spec(a):
        return pl.BlockSpec(a.shape, lambda n: (0,) * a.ndim)

    kern = functools.partial(fasff_kernel, H=H, W=W, neg_slope=0.2)
    out = pl.pallas_call(
        kern,
        out_shape=jax.ShapeDtypeStruct((N, C, HW), jnp.float32),
        grid=(N,),
        in_specs=([img_spec, img_spec, img_spec, const_spec(tap_mask)]
                  + [const_spec(a) for a in packed]),
        out_specs=pl.BlockSpec((1, C, HW), lambda n: (n, 0, 0)),
        scratch_shapes=[pltpu.VMEM((C, HW + 2 * _PAD), jnp.float32)],
        compiler_params=pltpu.CompilerParams(
            dimension_semantics=("parallel",)),
    )(x0f, x1f, x2f, tap_mask, *packed)
    return out.reshape(N, C, H, W)


# ----------------------------------------------------------------------------
# Parameter setup (synthetic, deterministic). Spectral norm = inference-time
# weight rescale, applied once here via power iteration.
# ----------------------------------------------------------------------------
def spectral_normalize(w_oihw, n_iter=20):
    cout = w_oihw.shape[0]
    mat = w_oihw.reshape(cout, -1)
    u = jnp.ones((cout,), jnp.float32) / jnp.sqrt(jnp.float32(cout))
    v = None
    for _ in range(n_iter):
        v = mat.T @ u
        v = v / (jnp.linalg.norm(v) + 1e-12)
        u = mat @ v
        u = u / (jnp.linalg.norm(u) + 1e-12)
    sigma = u @ (mat @ v)
    return w_oihw / sigma


def make_conv_params(key, cout, cin, k, *, bias, sn, scale=0.1):
    kw, kb = jax.random.split(key)
    w = jax.random.normal(kw, (cout, cin, k, k), jnp.float32) * scale
    if sn:
        w = spectral_normalize(w)
    if bias:
        b = jax.random.normal(kb, (cout,), jnp.float32) * scale
    else:
        b = jnp.zeros((cout,), jnp.float32)
    return w, b


def make_fasff_params(key, n_channels):
    C, half = n_channels, n_channels // 2
    ks = jax.random.split(key, 9)
    p = {}
    p["d1_w"], p["d1_b"] = make_conv_params(ks[0], C, C, 3, bias=True, sn=True)
    p["d2_w"], p["d2_b"] = make_conv_params(ks[1], C, C, 3, bias=True, sn=True)
    p["r1_w"], p["r1_b"] = make_conv_params(ks[2], C, C, 3, bias=True, sn=True)
    p["r2_w"], p["r2_b"] = make_conv_params(ks[3], C, C, 3, bias=True, sn=True)
    p["mc_w"], p["mc_b"] = make_conv_params(ks[4], half, C, 1, bias=True, sn=True)
    p["dc_w"], p["dc_b"] = make_conv_params(ks[5], half, C, 1, bias=True, sn=True)
    p["rc_w"], p["rc_b"] = make_conv_params(ks[6], half, C, 1, bias=True, sn=True)
    p["m1_w"], p["m1_b"] = make_conv_params(ks[7], C, 3 * half, 3, bias=False, sn=True)
    p["m2_w"], p["m2_b"] = make_conv_params(ks[8], C, C, 3, bias=False, sn=False)
    return p


# ----------------------------------------------------------------------------
# Pure-JAX reference (lax.conv, NCHW) for verification
# ----------------------------------------------------------------------------
def fasff_reference(params, x0, x1, x2):
    def conv(x, w, b, neg_slope=None):
        k = w.shape[-1]
        pad = k // 2
        y = jax.lax.conv_general_dilated(
            x, w, window_strides=(1, 1),
            padding=[(pad, pad), (pad, pad)],
            dimension_numbers=("NCHW", "OIHW", "NCHW"),
            precision=jax.lax.Precision.HIGHEST)
        y = y + b.reshape(1, -1, 1, 1)
        if neg_slope is not None:
            y = jnp.where(y >= 0, y, neg_slope * y)
        return y

    degraded_f = conv(conv(x0, params["d1_w"], params["d1_b"], 0.2),
                      params["d2_w"], params["d2_b"])
    ref_f = conv(conv(x1, params["r1_w"], params["r1_b"], 0.2),
                 params["r2_w"], params["r2_b"])
    down_mask = conv(x2, params["mc_w"], params["mc_b"])
    down_deg = conv(degraded_f, params["dc_w"], params["dc_b"])
    down_ref = conv(ref_f, params["rc_w"], params["rc_b"])
    cat = jnp.concatenate([down_mask, down_deg, down_ref], axis=1)
    m1 = conv(cat, params["m1_w"], params["m1_b"], 0.2)
    mask_f = conv(m1, params["m2_w"], params["m2_b"])
    return degraded_f + (ref_f - degraded_f) * mask_f


# ----------------------------------------------------------------------------
if __name__ == "__main__":
    N, C, H, W = 2, 4, 16, 16     # PyTorch NCHW input shape: (2, 4, 16, 16)

    key = jax.random.PRNGKey(0)
    kp, k0, k1, k2 = jax.random.split(key, 4)
    params = make_fasff_params(kp, C)
    x0 = jax.random.normal(k0, (N, C, H, W), jnp.float32)
    x1 = jax.random.normal(k1, (N, C, H, W), jnp.float32)
    x2 = jax.random.normal(k2, (N, C, H, W), jnp.float32)

    out = jax.block_until_ready(jax.jit(fasff_forward)(params, x0, x1, x2))
    ref = jax.block_until_ready(fasff_reference(params, x0, x1, x2))

    assert out.shape == (N, C, H, W), out.shape
    assert bool(jnp.all(jnp.isfinite(out)))
    max_err = float(jnp.max(jnp.abs(out - ref)))
    assert bool(jnp.allclose(out, ref, rtol=1e-3, atol=1e-3)), max_err

    print("KERNEL_OK")
</pallas_src>

<mosaic_0001>
module attributes {stable_mosaic.version = 11 : i64} {
  func.func @fasff_kernel(%arg0: i32, %arg1: memref<1x4x256xf32, #tpu.memory_space<vmem>>, %arg2: memref<1x4x256xf32, #tpu.memory_space<vmem>>, %arg3: memref<1x4x256xf32, #tpu.memory_space<vmem>>, %arg4: memref<9x1x256xf32, #tpu.memory_space<vmem>>, %arg5: memref<9x4x4xf32, #tpu.memory_space<vmem>>, %arg6: memref<4x1xf32, #tpu.memory_space<vmem>>, %arg7: memref<9x4x4xf32, #tpu.memory_space<vmem>>, %arg8: memref<4x1xf32, #tpu.memory_space<vmem>>, %arg9: memref<9x4x4xf32, #tpu.memory_space<vmem>>, %arg10: memref<4x1xf32, #tpu.memory_space<vmem>>, %arg11: memref<9x4x4xf32, #tpu.memory_space<vmem>>, %arg12: memref<4x1xf32, #tpu.memory_space<vmem>>, %arg13: memref<2x4xf32, #tpu.memory_space<vmem>>, %arg14: memref<2x1xf32, #tpu.memory_space<vmem>>, %arg15: memref<2x4xf32, #tpu.memory_space<vmem>>, %arg16: memref<2x1xf32, #tpu.memory_space<vmem>>, %arg17: memref<2x4xf32, #tpu.memory_space<vmem>>, %arg18: memref<2x1xf32, #tpu.memory_space<vmem>>, %arg19: memref<9x4x2xf32, #tpu.memory_space<vmem>>, %arg20: memref<9x4x2xf32, #tpu.memory_space<vmem>>, %arg21: memref<9x4x2xf32, #tpu.memory_space<vmem>>, %arg22: memref<9x4x4xf32, #tpu.memory_space<vmem>>, %arg23: memref<1x4x256xf32, #tpu.memory_space<vmem>>, %arg24: memref<4x512xf32, #tpu.memory_space<vmem>>) attributes {dimension_semantics = [#tpu.dimension_semantics<parallel>], iteration_bounds = array<i64: 2>, scalar_prefetch = 0 : i64, scratch_operands = 1 : i64, tpu.core_type = #tpu.core_type<tc>, window_params = [{transform_indices = @transform_0, window_bounds = array<i64: 1, 4, 256>}, {transform_indices = @transform_1, window_bounds = array<i64: 1, 4, 256>}, {transform_indices = @transform_2, window_bounds = array<i64: 1, 4, 256>}, {pipeline_mode = #tpu.pipeline_mode<synchronous>, transform_indices = @transform_3, window_bounds = array<i64: 9, 1, 256>}, {pipeline_mode = #tpu.pipeline_mode<synchronous>, transform_indices = @transform_4, window_bounds = array<i64: 9, 4, 4>}, {pipeline_mode = #tpu.pipeline_mode<synchronous>, transform_indices = @transform_5, window_bounds = array<i64: 4, 1>}, {pipeline_mode = #tpu.pipeline_mode<synchronous>, transform_indices = @transform_6, window_bounds = array<i64: 9, 4, 4>}, {pipeline_mode = #tpu.pipeline_mode<synchronous>, transform_indices = @transform_7, window_bounds = array<i64: 4, 1>}, {pipeline_mode = #tpu.pipeline_mode<synchronous>, transform_indices = @transform_8, window_bounds = array<i64: 9, 4, 4>}, {pipeline_mode = #tpu.pipeline_mode<synchronous>, transform_indices = @transform_9, window_bounds = array<i64: 4, 1>}, {pipeline_mode = #tpu.pipeline_mode<synchronous>, transform_indices = @transform_10, window_bounds = array<i64: 9, 4, 4>}, {pipeline_mode = #tpu.pipeline_mode<synchronous>, transform_indices = @transform_11, window_bounds = array<i64: 4, 1>}, {pipeline_mode = #tpu.pipeline_mode<synchronous>, transform_indices = @transform_12, window_bounds = array<i64: 2, 4>}, {pipeline_mode = #tpu.pipeline_mode<synchronous>, transform_indices = @transform_13, window_bounds = array<i64: 2, 1>}, {pipeline_mode = #tpu.pipeline_mode<synchronous>, transform_indices = @transform_14, window_bounds = array<i64: 2, 4>}, {pipeline_mode = #tpu.pipeline_mode<synchronous>, transform_indices = @transform_15, window_bounds = array<i64: 2, 1>}, {pipeline_mode = #tpu.pipeline_mode<synchronous>, transform_indices = @transform_16, window_bounds = array<i64: 2, 4>}, {pipeline_mode = #tpu.pipeline_mode<synchronous>, transform_indices = @transform_17, window_bounds = array<i64: 2, 1>}, {pipeline_mode = #tpu.pipeline_mode<synchronous>, transform_indices = @transform_18, window_bounds = array<i64: 9, 4, 2>}, {pipeline_mode = #tpu.pipeline_mode<synchronous>, transform_indices = @transform_19, window_bounds = array<i64: 9, 4, 2>}, {pipeline_mode = #tpu.pipeline_mode<synchronous>, transform_indices = @transform_20, window_bounds = array<i64: 9, 4, 2>}, {pipeline_mode = #tpu.pipeline_mode<synchronous>, transform_indices = @transform_21, window_bounds = array<i64: 9, 4, 4>}, {transform_indices = @transform_22, window_bounds = array<i64: 1, 4, 256>}]} {
    %cst = arith.constant 0.000000e+00 : f32
    %0 = vector.broadcast %cst : f32 to vector<4x512xf32>
    %c0 = arith.constant 0 : index
    %c0_0 = arith.constant 0 : index
    %1 = vector.load %arg24[%c0, %c0_0] : memref<4x512xf32, #tpu.memory_space<vmem>>, vector<4x512xf32>
    tpu.vector_store %arg24[%c0, %c0_0], %0 {strides = array<i32>} : memref<4x512xf32, #tpu.memory_space<vmem>>, vector<4x512xf32>,
    %c0_1 = arith.constant 0 : index
    %c0_2 = arith.constant 0 : index
    %c0_3 = arith.constant 0 : index
    %2 = vector.load %arg1[%c0_1, %c0_2, %c0_3] : memref<1x4x256xf32, #tpu.memory_space<vmem>>, vector<1x4x256xf32>
    %3 = vector.shape_cast %2 : vector<1x4x256xf32> to vector<4x256xf32>
    %c0_4 = arith.constant 0 : index
    %c0_5 = arith.constant 0 : index
    %c0_6 = arith.constant 0 : index
    %4 = vector.load %arg2[%c0_4, %c0_5, %c0_6] : memref<1x4x256xf32, #tpu.memory_space<vmem>>, vector<1x4x256xf32>
    %5 = vector.shape_cast %4 : vector<1x4x256xf32> to vector<4x256xf32>
    %c0_7 = arith.constant 0 : index
    %c0_8 = arith.constant 0 : index
    %c0_9 = arith.constant 0 : index
    %6 = vector.load %arg3[%c0_7, %c0_8, %c0_9] : memref<1x4x256xf32, #tpu.memory_space<vmem>>, vector<1x4x256xf32>
    %7 = vector.shape_cast %6 : vector<1x4x256xf32> to vector<4x256xf32>
    %cst_10 = arith.constant 0.000000e+00 : f32
    %8 = vector.broadcast %cst_10 : f32 to vector<4x256xf32>
    %c0_11 = arith.constant 0 : index
    %c128 = arith.constant 128 : index
    %9 = vector.load %arg24[%c0_11, %c128] : memref<4x512xf32, #tpu.memory_space<vmem>>, vector<4x256xf32>
    tpu.vector_store %arg24[%c0_11, %c128], %3 {strides = array<i32>} : memref<4x512xf32, #tpu.memory_space<vmem>>, vector<4x256xf32>,
    %c0_12 = arith.constant 0 : index
    %c111 = arith.constant 111 : index
    %10 = vector.load %arg24[%c0_12, %c111] : memref<4x512xf32, #tpu.memory_space<vmem>>, vector<4x256xf32>
    %c0_13 = arith.constant 0 : index
    %c0_14 = arith.constant 0 : index
    %c0_15 = arith.constant 0 : index
    %11 = vector.load %arg4[%c0_13, %c0_14, %c0_15] : memref<9x1x256xf32, #tpu.memory_space<vmem>>, vector<1x1x256xf32>
    %12 = vector.shape_cast %11 : vector<1x1x256xf32> to vector<1x256xf32>
    %13 = vector.broadcast %12 : vector<1x256xf32> to vector<4x256xf32>
    %14 = arith.mulf %10, %13 : vector<4x256xf32>
    %c0_16 = arith.constant 0 : index
    %c0_17 = arith.constant 0 : index
    %c0_18 = arith.constant 0 : index
    %15 = vector.load %arg5[%c0_16, %c0_17, %c0_18] : memref<9x4x4xf32, #tpu.memory_space<vmem>>, vector<1x4x4xf32>
    %16 = vector.shape_cast %15 : vector<1x4x4xf32> to vector<4x4xf32>
    %cst_19 = arith.constant dense<0.000000e+00> : vector<4x256xf32>
    %17 = tpu.matmul %16, %14, %cst_19 {dimension_numbers = #tpu.dot_dimension_numbers<[1], [0], [0], [1], [0, 0, 1, 1], [], []>} : vector<4x4xf32>, vector<4x256xf32>, vector<4x256xf32> -> vector<4x256xf32>
    %18 = arith.addf %8, %17 : vector<4x256xf32>
    %c0_20 = arith.constant 0 : index
    %c112 = arith.constant 112 : index
    %19 = vector.load %arg24[%c0_20, %c112] : memref<4x512xf32, #tpu.memory_space<vmem>>, vector<4x256xf32>
    %c1 = arith.constant 1 : index
    %c0_21 = arith.constant 0 : index
    %c0_22 = arith.constant 0 : index
    %20 = vector.load %arg4[%c1, %c0_21, %c0_22] : memref<9x1x256xf32, #tpu.memory_space<vmem>>, vector<1x1x256xf32>
    %21 = vector.shape_cast %20 : vector<1x1x256xf32> to vector<1x256xf32>
    %22 = vector.broadcast %21 : vector<1x256xf32> to vector<4x256xf32>
    %23 = arith.mulf %19, %22 : vector<4x256xf32>
    %c1_23 = arith.constant 1 : index
    %c0_24 = arith.constant 0 : index
    %c0_25 = arith.constant 0 : index
    %24 = vector.load %arg5[%c1_23, %c0_24, %c0_25] : memref<9x4x4xf32, #tpu.memory_space<vmem>>, vector<1x4x4xf32>
    %25 = vector.shape_cast %24 : vector<1x4x4xf32> to vector<4x4xf32>
    %cst_26 = arith.constant dense<0.000000e+00> : vector<4x256xf32>
    %26 = tpu.matmul %25, %23, %cst_26 {dimension_numbers = #tpu.dot_dimension_numbers<[1], [0], [0], [1], [0, 0, 1, 1], [], []>} : vector<4x4xf32>, vector<4x256xf32>, vector<4x256xf32> -> vector<4x256xf32>
    %27 = arith.addf %18, %26 : vector<4x256xf32>
    %c0_27 = arith.constant 0 : index
    %c113 = arith.constant 113 : index
    %28 = vector.load %arg24[%c0_27, %c113] : memref<4x512xf32, #tpu.memory_space<vmem>>, vector<4x256xf32>
    %c2 = arith.constant 2 : index
    %c0_28 = arith.constant 0 : index
    %c0_29 = arith.constant 0 : index
    %29 = vector.load %arg4[%c2, %c0_28, %c0_29] : memref<9x1x256xf32, #tpu.memory_space<vmem>>, vector<1x1x256xf32>
    %30 = vector.shape_cast %29 : vector<1x1x256xf32> to vector<1x256xf32>
    %31 = vector.broadcast %30 : vector<1x256xf32> to vector<4x256xf32>
    %32 = arith.mulf %28, %31 : vector<4x256xf32>
    %c2_30 = arith.constant 2 : index
    %c0_31 = arith.constant 0 : index
    %c0_32 = arith.constant 0 : index
    %33 = vector.load %arg5[%c2_30, %c0_31, %c0_32] : memref<9x4x4xf32, #tpu.memory_space<vmem>>, vector<1x4x4xf32>
    %34 = vector.shape_cast %33 : vector<1x4x4xf32> to vector<4x4xf32>
    %cst_33 = arith.constant dense<0.000000e+00> : vector<4x256xf32>
    %35 = tpu.matmul %34, %32, %cst_33 {dimension_numbers = #tpu.dot_dimension_numbers<[1], [0], [0], [1], [0, 0, 1, 1], [], []>} : vector<4x4xf32>, vector<4x256xf32>, vector<4x256xf32> -> vector<4x256xf32>
    %36 = arith.addf %27, %35 : vector<4x256xf32>
    %c0_34 = arith.constant 0 : index
    %c127 = arith.constant 127 : index
    %37 = vector.load %arg24[%c0_34, %c127] : memref<4x512xf32, #tpu.memory_space<vmem>>, vector<4x256xf32>
    %c3 = arith.constant 3 : index
    %c0_35 = arith.constant 0 : index
    %c0_36 = arith.constant 0 : index
    %38 = vector.load %arg4[%c3, %c0_35, %c0_36] : memref<9x1x256xf32, #tpu.memory_space<vmem>>, vector<1x1x256xf32>
    %39 = vector.shape_cast %38 : vector<1x1x256xf32> to vector<1x256xf32>
    %40 = vector.broadcast %39 : vector<1x256xf32> to vector<4x256xf32>
    %41 = arith.mulf %37, %40 : vector<4x256xf32>
    %c3_37 = arith.constant 3 : index
    %c0_38 = arith.constant 0 : index
    %c0_39 = arith.constant 0 : index
    %42 = vector.load %arg5[%c3_37, %c0_38, %c0_39] : memref<9x4x4xf32, #tpu.memory_space<vmem>>, vector<1x4x4xf32>
    %43 = vector.shape_cast %42 : vector<1x4x4xf32> to vector<4x4xf32>
    %cst_40 = arith.constant dense<0.000000e+00> : vector<4x256xf32>
    %44 = tpu.matmul %43, %41, %cst_40 {dimension_numbers = #tpu.dot_dimension_numbers<[1], [0], [0], [1], [0, 0, 1, 1], [], []>} : vector<4x4xf32>, vector<4x256xf32>, vector<4x256xf32> -> vector<4x256xf32>
    %45 = arith.addf %36, %44 : vector<4x256xf32>
    %c0_41 = arith.constant 0 : index
    %c128_42 = arith.constant 128 : index
    %46 = vector.load %arg24[%c0_41, %c128_42] : memref<4x512xf32, #tpu.memory_space<vmem>>, vector<4x256xf32>
    %c4 = arith.constant 4 : index
    %c0_43 = arith.constant 0 : index
    %c0_44 = arith.constant 0 : index
    %47 = vector.load %arg5[%c4, %c0_43, %c0_44] : memref<9x4x4xf32, #tpu.memory_space<vmem>>, vector<1x4x4xf32>
    %48 = vector.shape_cast %47 : vector<1x4x4xf32> to vector<4x4xf32>
    %cst_45 = arith.constant dense<0.000000e+00> : vector<4x256xf32>
    %49 = tpu.matmul %48, %46, %cst_45 {dimension_numbers = #tpu.dot_dimension_numbers<[1], [0], [0], [1], [0, 0, 1, 1], [], []>} : vector<4x4xf32>, vector<4x256xf32>, vector<4x256xf32> -> vector<4x256xf32>
    %50 = arith.addf %45, %49 : vector<4x256xf32>
    %c0_46 = arith.constant 0 : index
    %c129 = arith.constant 129 : index
    %51 = vector.load %arg24[%c0_46, %c129] : memref<4x512xf32, #tpu.memory_space<vmem>>, vector<4x256xf32>
    %c5 = arith.constant 5 : index
    %c0_47 = arith.constant 0 : index
    %c0_48 = arith.constant 0 : index
    %52 = vector.load %arg4[%c5, %c0_47, %c0_48] : memref<9x1x256xf32, #tpu.memory_space<vmem>>, vector<1x1x256xf32>
    %53 = vector.shape_cast %52 : vector<1x1x256xf32> to vector<1x256xf32>
    %54 = vector.broadcast %53 : vector<1x256xf32> to vector<4x256xf32>
    %55 = arith.mulf %51, %54 : vector<4x256xf32>
    %c5_49 = arith.constant 5 : index
    %c0_50 = arith.constant 0 : index
    %c0_51 = arith.constant 0 : index
    %56 = vector.load %arg5[%c5_49, %c0_50, %c0_51] : memref<9x4x4xf32, #tpu.memory_space<vmem>>, vector<1x4x4xf32>
    %57 = vector.shape_cast %56 : vector<1x4x4xf32> to vector<4x4xf32>
    %cst_52 = arith.constant dense<0.000000e+00> : vector<4x256xf32>
    %58 = tpu.matmul %57, %55, %cst_52 {dimension_numbers = #tpu.dot_dimension_numbers<[1], [0], [0], [1], [0, 0, 1, 1], [], []>} : vector<4x4xf32>, vector<4x256xf32>, vector<4x256xf32> -> vector<4x256xf32>
    %59 = arith.addf %50, %58 : vector<4x256xf32>
    %c0_53 = arith.constant 0 : index
    %c143 = arith.constant 143 : index
    %60 = vector.load %arg24[%c0_53, %c143] : memref<4x512xf32, #tpu.memory_space<vmem>>, vector<4x256xf32>
    %c6 = arith.constant 6 : index
    %c0_54 = arith.constant 0 : index
    %c0_55 = arith.constant 0 : index
    %61 = vector.load %arg4[%c6, %c0_54, %c0_55] : memref<9x1x256xf32, #tpu.memory_space<vmem>>, vector<1x1x256xf32>
    %62 = vector.shape_cast %61 : vector<1x1x256xf32> to vector<1x256xf32>
    %63 = vector.broadcast %62 : vector<1x256xf32> to vector<4x256xf32>
    %64 = arith.mulf %60, %63 : vector<4x256xf32>
    %c6_56 = arith.constant 6 : index
    %c0_57 = arith.constant 0 : index
    %c0_58 = arith.constant 0 : index
    %65 = vector.load %arg5[%c6_56, %c0_57, %c0_58] : memref<9x4x4xf32, #tpu.memory_space<vmem>>, vector<1x4x4xf32>
    %66 = vector.shape_cast %65 : vector<1x4x4xf32> to vector<4x4xf32>
    %cst_59 = arith.constant dense<0.000000e+00> : vector<4x256xf32>
    %67 = tpu.matmul %66, %64, %cst_59 {dimension_numbers = #tpu.dot_dimension_numbers<[1], [0], [0], [1], [0, 0, 1, 1], [], []>} : vector<4x4xf32>, vector<4x256xf32>, vector<4x256xf32> -> vector<4x256xf32>
    %68 = arith.addf %59, %67 : vector<4x256xf32>
    %c0_60 = arith.constant 0 : index
    %c144 = arith.constant 144 : index
    %69 = vector.load %arg24[%c0_60, %c144] : memref<4x512xf32, #tpu.memory_space<vmem>>, vector<4x256xf32>
    %c7 = arith.constant 7 : index
    %c0_61 = arith.constant 0 : index
    %c0_62 = arith.constant 0 : index
    %70 = vector.load %arg4[%c7, %c0_61, %c0_62] : memref<9x1x256xf32, #tpu.memory_space<vmem>>, vector<1x1x256xf32>
    %71 = vector.shape_cast %70 : vector<1x1x256xf32> to vector<1x256xf32>
    %72 = vector.broadcast %71 : vector<1x256xf32> to vector<4x256xf32>
    %73 = arith.mulf %69, %72 : vector<4x256xf32>
    %c7_63 = arith.constant 7 : index
    %c0_64 = arith.constant 0 : index
    %c0_65 = arith.constant 0 : index
    %74 = vector.load %arg5[%c7_63, %c0_64, %c0_65] : memref<9x4x4xf32, #tpu.memory_space<vmem>>, vector<1x4x4xf32>
    %75 = vector.shape_cast %74 : vector<1x4x4xf32> to vector<4x4xf32>
    %cst_66 = arith.constant dense<0.000000e+00> : vector<4x256xf32>
    %76 = tpu.matmul %75, %73, %cst_66 {dimension_numbers = #tpu.dot_dimension_numbers<[1], [0], [0], [1], [0, 0, 1, 1], [], []>} : vector<4x4xf32>, vector<4x256xf32>, vector<4x256xf32> -> vector<4x256xf32>
    %77 = arith.addf %68, %76 : vector<4x256xf32>
    %c0_67 = arith.constant 0 : index
    %c145 = arith.constant 145 : index
    %78 = vector.load %arg24[%c0_67, %c145] : memref<4x512xf32, #tpu.memory_space<vmem>>, vector<4x256xf32>
    %c8 = arith.constant 8 : index
    %c0_68 = arith.constant 0 : index
    %c0_69 = arith.constant 0 : index
    %79 = vector.load %arg4[%c8, %c0_68, %c0_69] : memref<9x1x256xf32, #tpu.memory_space<vmem>>, vector<1x1x256xf32>
    %80 = vector.shape_cast %79 : vector<1x1x256xf32> to vector<1x256xf32>
    %81 = vector.broadcast %80 : vector<1x256xf32> to vector<4x256xf32>
    %82 = arith.mulf %78, %81 : vector<4x256xf32>
    %c8_70 = arith.constant 8 : index
    %c0_71 = arith.constant 0 : index
    %c0_72 = arith.constant 0 : index
    %83 = vector.load %arg5[%c8_70, %c0_71, %c0_72] : memref<9x4x4xf32, #tpu.memory_space<vmem>>, vector<1x4x4xf32>
    %84 = vector.shape_cast %83 : vector<1x4x4xf32> to vector<4x4xf32>
    %cst_73 = arith.constant dense<0.000000e+00> : vector<4x256xf32>
    %85 = tpu.matmul %84, %82, %cst_73 {dimension_numbers = #tpu.dot_dimension_numbers<[1], [0], [0], [1], [0, 0, 1, 1], [], []>} : vector<4x4xf32>, vector<4x256xf32>, vector<4x256xf32> -> vector<4x256xf32>
    %86 = arith.addf %77, %85 : vector<4x256xf32>
    %c0_74 = arith.constant 0 : index
    %c0_75 = arith.constant 0 : index
    %87 = vector.load %arg6[%c0_74, %c0_75] : memref<4x1xf32, #tpu.memory_space<vmem>>, vector<4x1xf32>
    %88 = vector.broadcast %87 : vector<4x1xf32> to vector<4x256xf32>
    %89 = arith.addf %86, %88 : vector<4x256xf32>
    %cst_76 = arith.constant 0.000000e+00 : f32
    %90 = vector.broadcast %cst_76 : f32 to vector<4x256xf32>
    %91 = arith.cmpf oge, %89, %90 : vector<4x256xf32>
    %cst_77 = arith.constant 2.000000e-01 : f32
    %92 = vector.broadcast %cst_77 : f32 to vector<4x256xf32>
    %93 = arith.mulf %89, %92 : vector<4x256xf32>
    %94 = arith.select %91, %89, %93 : vector<4x256xi1>, vector<4x256xf32>
    %cst_78 = arith.constant 0.000000e+00 : f32
    %95 = vector.broadcast %cst_78 : f32 to vector<4x256xf32>
    %c0_79 = arith.constant 0 : index
    %c128_80 = arith.constant 128 : index
    %96 = vector.load %arg24[%c0_79, %c128_80] : memref<4x512xf32, #tpu.memory_space<vmem>>, vector<4x256xf32>
    tpu.vector_store %arg24[%c0_79, %c128_80], %94 {strides = array<i32>} : memref<4x512xf32, #tpu.memory_space<vmem>>, vector<4x256xf32>,
    %c0_81 = arith.constant 0 : index
    %c111_82 = arith.constant 111 : index
    %97 = vector.load %arg24[%c0_81, %c111_82] : memref<4x512xf32, #tpu.memory_space<vmem>>, vector<4x256xf32>
    %c0_83 = arith.constant 0 : index
    %c0_84 = arith.constant 0 : index
    %c0_85 = arith.constant 0 : index
    %98 = vector.load %arg4[%c0_83, %c0_84, %c0_85] : memref<9x1x256xf32, #tpu.memory_space<vmem>>, vector<1x1x256xf32>
    %99 = vector.shape_cast %98 : vector<1x1x256xf32> to vector<1x256xf32>
    %100 = vector.broadcast %99 : vector<1x256xf32> to vector<4x256xf32>
    %101 = arith.mulf %97, %100 : vector<4x256xf32>
    %c0_86 = arith.constant 0 : index
    %c0_87 = arith.constant 0 : index
    %c0_88 = arith.constant 0 : index
    %102 = vector.load %arg7[%c0_86, %c0_87, %c0_88] : memref<9x4x4xf32, #tpu.memory_space<vmem>>, vector<1x4x4xf32>
    %103 = vector.shape_cast %102 : vector<1x4x4xf32> to vector<4x4xf32>
    %cst_89 = arith.constant dense<0.000000e+00> : vector<4x256xf32>
    %104 = tpu.matmul %103, %101, %cst_89 {dimension_numbers = #tpu.dot_dimension_numbers<[1], [0], [0], [1], [0, 0, 1, 1], [], []>} : vector<4x4xf32>, vector<4x256xf32>, vector<4x256xf32> -> vector<4x256xf32>
    %105 = arith.addf %95, %104 : vector<4x256xf32>
    %c0_90 = arith.constant 0 : index
    %c112_91 = arith.constant 112 : index
    %106 = vector.load %arg24[%c0_90, %c112_91] : memref<4x512xf32, #tpu.memory_space<vmem>>, vector<4x256xf32>
    %c1_92 = arith.constant 1 : index
    %c0_93 = arith.constant 0 : index
    %c0_94 = arith.constant 0 : index
    %107 = vector.load %arg4[%c1_92, %c0_93, %c0_94] : memref<9x1x256xf32, #tpu.memory_space<vmem>>, vector<1x1x256xf32>
    %108 = vector.shape_cast %107 : vector<1x1x256xf32> to vector<1x256xf32>
    %109 = vector.broadcast %108 : vector<1x256xf32> to vector<4x256xf32>
    %110 = arith.mulf %106, %109 : vector<4x256xf32>
    %c1_95 = arith.constant 1 : index
    %c0_96 = arith.constant 0 : index
    %c0_97 = arith.constant 0 : index
    %111 = vector.load %arg7[%c1_95, %c0_96, %c0_97] : memref<9x4x4xf32, #tpu.memory_space<vmem>>, vector<1x4x4xf32>
    %112 = vector.shape_cast %111 : vector<1x4x4xf32> to vector<4x4xf32>
    %cst_98 = arith.constant dense<0.000000e+00> : vector<4x256xf32>
    %113 = tpu.matmul %112, %110, %cst_98 {dimension_numbers = #tpu.dot_dimension_numbers<[1], [0], [0], [1], [0, 0, 1, 1], [], []>} : vector<4x4xf32>, vector<4x256xf32>, vector<4x256xf32> -> vector<4x256xf32>
    %114 = arith.addf %105, %113 : vector<4x256xf32>
    %c0_99 = arith.constant 0 : index
    %c113_100 = arith.constant 113 : index
    %115 = vector.load %arg24[%c0_99, %c113_100] : memref<4x512xf32, #tpu.memory_space<vmem>>, vector<4x256xf32>
    %c2_101 = arith.constant 2 : index
    %c0_102 = arith.constant 0 : index
    %c0_103 = arith.constant 0 : index
    %116 = vector.load %arg4[%c2_101, %c0_102, %c0_103] : memref<9x1x256xf32, #tpu.memory_space<vmem>>, vector<1x1x256xf32>
    %117 = vector.shape_cast %116 : vector<1x1x256xf32> to vector<1x256xf32>
    %118 = vector.broadcast %117 : vector<1x256xf32> to vector<4x256xf32>
    %119 = arith.mulf %115, %118 : vector<4x256xf32>
    %c2_104 = arith.constant 2 : index
    %c0_105 = arith.constant 0 : index
    %c0_106 = arith.constant 0 : index
    %120 = vector.load %arg7[%c2_104, %c0_105, %c0_106] : memref<9x4x4xf32, #tpu.memory_space<vmem>>, vector<1x4x4xf32>
    %121 = vector.shape_cast %120 : vector<1x4x4xf32> to vector<4x4xf32>
    %cst_107 = arith.constant dense<0.000000e+00> : vector<4x256xf32>
    %122 = tpu.matmul %121, %119, %cst_107 {dimension_numbers = #tpu.dot_dimension_numbers<[1], [0], [0], [1], [0, 0, 1, 1], [], []>} : vector<4x4xf32>, vector<4x256xf32>, vector<4x256xf32> -> vector<4x256xf32>
    %123 = arith.addf %114, %122 : vector<4x256xf32>
    %c0_108 = arith.constant 0 : index
    %c127_109 = arith.constant 127 : index
    %124 = vector.load %arg24[%c0_108, %c127_109] : memref<4x512xf32, #tpu.memory_space<vmem>>, vector<4x256xf32>
    %c3_110 = arith.constant 3 : index
    %c0_111 = arith.constant 0 : index
    %c0_112 = arith.constant 0 : index
    %125 = vector.load %arg4[%c3_110, %c0_111, %c0_112] : memref<9x1x256xf32, #tpu.memory_space<vmem>>, vector<1x1x256xf32>
    %126 = vector.shape_cast %125 : vector<1x1x256xf32> to vector<1x256xf32>
    %127 = vector.broadcast %126 : vector<1x256xf32> to vector<4x256xf32>
    %128 = arith.mulf %124, %127 : vector<4x256xf32>
    %c3_113 = arith.constant 3 : index
    %c0_114 = arith.constant 0 : index
    %c0_115 = arith.constant 0 : index
    %129 = vector.load %arg7[%c3_113, %c0_114, %c0_115] : memref<9x4x4xf32, #tpu.memory_space<vmem>>, vector<1x4x4xf32>
    %130 = vector.shape_cast %129 : vector<1x4x4xf32> to vector<4x4xf32>
    %cst_116 = arith.constant dense<0.000000e+00> : vector<4x256xf32>
    %131 = tpu.matmul %130, %128, %cst_116 {dimension_numbers = #tpu.dot_dimension_numbers<[1], [0], [0], [1], [0, 0, 1, 1], [], []>} : vector<4x4xf32>, vector<4x256xf32>, vector<4x256xf32> -> vector<4x256xf32>
    %132 = arith.addf %123, %131 : vector<4x256xf32>
    %c0_117 = arith.constant 0 : index
    %c128_118 = arith.constant 128 : index
    %133 = vector.load %arg24[%c0_117, %c128_118] : memref<4x512xf32, #tpu.memory_space<vmem>>, vector<4x256xf32>
    %c4_119 = arith.constant 4 : index
    %c0_120 = arith.constant 0 : index
    %c0_121 = arith.constant 0 : index
    %134 = vector.load %arg7[%c4_119, %c0_120, %c0_121] : memref<9x4x4xf32, #tpu.memory_space<vmem>>, vector<1x4x4xf32>
    %135 = vector.shape_cast %134 : vector<1x4x4xf32> to vector<4x4xf32>
    %cst_122 = arith.constant dense<0.000000e+00> : vector<4x256xf32>
    %136 = tpu.matmul %135, %133, %cst_122 {dimension_numbers = #tpu.dot_dimension_numbers<[1], [0], [0], [1], [0, 0, 1, 1], [], []>} : vector<4x4xf32>, vector<4x256xf32>, vector<4x256xf32> -> vector<4x256xf32>
    %137 = arith.addf %132, %136 : vector<4x256xf32>
    %c0_123 = arith.constant 0 : index
    %c129_124 = arith.constant 129 : index
    %138 = vector.load %arg24[%c0_123, %c129_124] : memref<4x512xf32, #tpu.memory_space<vmem>>, vector<4x256xf32>
    %c5_125 = arith.constant 5 : index
    %c0_126 = arith.constant 0 : index
    %c0_127 = arith.constant 0 : index
    %139 = vector.load %arg4[%c5_125, %c0_126, %c0_127] : memref<9x1x256xf32, #tpu.memory_space<vmem>>, vector<1x1x256xf32>
    %140 = vector.shape_cast %139 : vector<1x1x256xf32> to vector<1x256xf32>
    %141 = vector.broadcast %140 : vector<1x256xf32> to vector<4x256xf32>
    %142 = arith.mulf %138, %141 : vector<4x256xf32>
    %c5_128 = arith.constant 5 : index
    %c0_129 = arith.constant 0 : index
    %c0_130 = arith.constant 0 : index
    %143 = vector.load %arg7[%c5_128, %c0_129, %c0_130] : memref<9x4x4xf32, #tpu.memory_space<vmem>>, vector<1x4x4xf32>
    %144 = vector.shape_cast %143 : vector<1x4x4xf32> to vector<4x4xf32>
    %cst_131 = arith.constant dense<0.000000e+00> : vector<4x256xf32>
    %145 = tpu.matmul %144, %142, %cst_131 {dimension_numbers = #tpu.dot_dimension_numbers<[1], [0], [0], [1], [0, 0, 1, 1], [], []>} : vector<4x4xf32>, vector<4x256xf32>, vector<4x256xf32> -> vector<4x256xf32>
    %146 = arith.addf %137, %145 : vector<4x256xf32>
    %c0_132 = arith.constant 0 : index
    %c143_133 = arith.constant 143 : index
    %147 = vector.load %arg24[%c0_132, %c143_133] : memref<4x512xf32, #tpu.memory_space<vmem>>, vector<4x256xf32>
    %c6_134 = arith.constant 6 : index
    %c0_135 = arith.constant 0 : index
    %c0_136 = arith.constant 0 : index
    %148 = vector.load %arg4[%c6_134, %c0_135, %c0_136] : memref<9x1x256xf32, #tpu.memory_space<vmem>>, vector<1x1x256xf32>
    %149 = vector.shape_cast %148 : vector<1x1x256xf32> to vector<1x256xf32>
    %150 = vector.broadcast %149 : vector<1x256xf32> to vector<4x256xf32>
    %151 = arith.mulf %147, %150 : vector<4x256xf32>
    %c6_137 = arith.constant 6 : index
    %c0_138 = arith.constant 0 : index
    %c0_139 = arith.constant 0 : index
    %152 = vector.load %arg7[%c6_137, %c0_138, %c0_139] : memref<9x4x4xf32, #tpu.memory_space<vmem>>, vector<1x4x4xf32>
    %153 = vector.shape_cast %152 : vector<1x4x4xf32> to vector<4x4xf32>
    %cst_140 = arith.constant dense<0.000000e+00> : vector<4x256xf32>
    %154 = tpu.matmul %153, %151, %cst_140 {dimension_numbers = #tpu.dot_dimension_numbers<[1], [0], [0], [1], [0, 0, 1, 1], [], []>} : vector<4x4xf32>, vector<4x256xf32>, vector<4x256xf32> -> vector<4x256xf32>
    %155 = arith.addf %146, %154 : vector<4x256xf32>
    %c0_141 = arith.constant 0 : index
    %c144_142 = arith.constant 144 : index
    %156 = vector.load %arg24[%c0_141, %c144_142] : memref<4x512xf32, #tpu.memory_space<vmem>>, vector<4x256xf32>
    %c7_143 = arith.constant 7 : index
    %c0_144 = arith.constant 0 : index
    %c0_145 = arith.constant 0 : index
    %157 = vector.load %arg4[%c7_143, %c0_144, %c0_145] : memref<9x1x256xf32, #tpu.memory_space<vmem>>, vector<1x1x256xf32>
    %158 = vector.shape_cast %157 : vector<1x1x256xf32> to vector<1x256xf32>
    %159 = vector.broadcast %158 : vector<1x256xf32> to vector<4x256xf32>
    %160 = arith.mulf %156, %159 : vector<4x256xf32>
    %c7_146 = arith.constant 7 : index
    %c0_147 = arith.constant 0 : index
    %c0_148 = arith.constant 0 : index
    %161 = vector.load %arg7[%c7_146, %c0_147, %c0_148] : memref<9x4x4xf32, #tpu.memory_space<vmem>>, vector<1x4x4xf32>
    %162 = vector.shape_cast %161 : vector<1x4x4xf32> to vector<4x4xf32>
    %cst_149 = arith.constant dense<0.000000e+00> : vector<4x256xf32>
    %163 = tpu.matmul %162, %160, %cst_149 {dimension_numbers = #tpu.dot_dimension_numbers<[1], [0], [0], [1], [0, 0, 1, 1], [], []>} : vector<4x4xf32>, vector<4x256xf32>, vector<4x256xf32> -> vector<4x256xf32>
    %164 = arith.addf %155, %163 : vector<4x256xf32>
    %c0_150 = arith.constant 0 : index
    %c145_151 = arith.constant 145 : index
    %165 = vector.load %arg24[%c0_150, %c145_151] : memref<4x512xf32, #tpu.memory_space<vmem>>, vector<4x256xf32>
    %c8_152 = arith.constant 8 : index
    %c0_153 = arith.constant 0 : index
    %c0_154 = arith.constant 0 : index
    %166 = vector.load %arg4[%c8_152, %c0_153, %c0_154] : memref<9x1x256xf32, #tpu.memory_space<vmem>>, vector<1x1x256xf32>
    %167 = vector.shape_cast %166 : vector<1x1x256xf32> to vector<1x256xf32>
    %168 = vector.broadcast %167 : vector<1x256xf32> to vector<4x256xf32>
    %169 = arith.mulf %165, %168 : vector<4x256xf32>
    %c8_155 = arith.constant 8 : index
    %c0_156 = arith.constant 0 : index
    %c0_157 = arith.constant 0 : index
    %170 = vector.load %arg7[%c8_155, %c0_156, %c0_157] : memref<9x4x4xf32, #tpu.memory_space<vmem>>, vector<1x4x4xf32>
    %171 = vector.shape_cast %170 : vector<1x4x4xf32> to vector<4x4xf32>
    %cst_158 = arith.constant dense<0.000000e+00> : vector<4x256xf32>
    %172 = tpu.matmul %171, %169, %cst_158 {dimension_numbers = #tpu.dot_dimension_numbers<[1], [0], [0], [1], [0, 0, 1, 1], [], []>} : vector<4x4xf32>, vector<4x256xf32>, vector<4x256xf32> -> vector<4x256xf32>
    %173 = arith.addf %164, %172 : vector<4x256xf32>
    %c0_159 = arith.constant 0 : index
    %c0_160 = arith.constant 0 : index
    %174 = vector.load %arg8[%c0_159, %c0_160] : memref<4x1xf32, #tpu.memory_space<vmem>>, vector<4x1xf32>
    %175 = vector.broadcast %174 : vector<4x1xf32> to vector<4x256xf32>
    %176 = arith.addf %173, %175 : vector<4x256xf32>
    %cst_161 = arith.constant 0.000000e+00 : f32
    %177 = vector.broadcast %cst_161 : f32 to vector<4x256xf32>
    %c0_162 = arith.constant 0 : index
    %c128_163 = arith.constant 128 : index
    %178 = vector.load %arg24[%c0_162, %c128_163] : memref<4x512xf32, #tpu.memory_space<vmem>>, vector<4x256xf32>
    tpu.vector_store %arg24[%c0_162, %c128_163], %5 {strides = array<i32>} : memref<4x512xf32, #tpu.memory_space<vmem>>, vector<4x256xf32>,
    %c0_164 = arith.constant 0 : index
    %c111_165 = arith.constant 111 : index
    %179 = vector.load %arg24[%c0_164, %c111_165] : memref<4x512xf32, #tpu.memory_space<vmem>>, vector<4x256xf32>
    %c0_166 = arith.constant 0 : index
    %c0_167 = arith.constant 0 : index
    %c0_168 = arith.constant 0 : index
    %180 = vector.load %arg4[%c0_166, %c0_167, %c0_168] : memref<9x1x256xf32, #tpu.memory_space<vmem>>, vector<1x1x256xf32>
    %181 = vector.shape_cast %180 : vector<1x1x256xf32> to vector<1x256xf32>
    %182 = vector.broadcast %181 : vector<1x256xf32> to vector<4x256xf32>
    %183 = arith.mulf %179, %182 : vector<4x256xf32>
    %c0_169 = arith.constant 0 : index
    %c0_170 = arith.constant 0 : index
    %c0_171 = arith.constant 0 : index
    %184 = vector.load %arg9[%c0_169, %c0_170, %c0_171] : memref<9x4x4xf32, #tpu.memory_space<vmem>>, vector<1x4x4xf32>
    %185 = vector.shape_cast %184 : vector<1x4x4xf32> to vector<4x4xf32>
    %cst_172 = arith.constant dense<0.000000e+00> : vector<4x256xf32>
    %186 = tpu.matmul %185, %183, %cst_172 {dimension_numbers = #tpu.dot_dimension_numbers<[1], [0], [0], [1], [0, 0, 1, 1], [], []>} : vector<4x4xf32>, vector<4x256xf32>, vector<4x256xf32> -> vector<4x256xf32>
    %187 = arith.addf %177, %186 : vector<4x256xf32>
    %c0_173 = arith.constant 0 : index
    %c112_174 = arith.constant 112 : index
    %188 = vector.load %arg24[%c0_173, %c112_174] : memref<4x512xf32, #tpu.memory_space<vmem>>, vector<4x256xf32>
    %c1_175 = arith.constant 1 : index
    %c0_176 = arith.constant 0 : index
    %c0_177 = arith.constant 0 : index
    %189 = vector.load %arg4[%c1_175, %c0_176, %c0_177] : memref<9x1x256xf32, #tpu.memory_space<vmem>>, vector<1x1x256xf32>
    %190 = vector.shape_cast %189 : vector<1x1x256xf32> to vector<1x256xf32>
    %191 = vector.broadcast %190 : vector<1x256xf32> to vector<4x256xf32>
    %192 = arith.mulf %188, %191 : vector<4x256xf32>
    %c1_178 = arith.constant 1 : index
    %c0_179 = arith.constant 0 : index
    %c0_180 = arith.constant 0 : index
    %193 = vector.load %arg9[%c1_178, %c0_179, %c0_180] : memref<9x4x4xf32, #tpu.memory_space<vmem>>, vector<1x4x4xf32>
    %194 = vector.shape_cast %193 : vector<1x4x4xf32> to vector<4x4xf32>
    %cst_181 = arith.constant dense<0.000000e+00> : vector<4x256xf32>
    %195 = tpu.matmul %194, %192, %cst_181 {dimension_numbers = #tpu.dot_dimension_numbers<[1], [0], [0], [1], [0, 0, 1, 1], [], []>} : vector<4x4xf32>, vector<4x256xf32>, vector<4x256xf32> -> vector<4x256xf32>
    %196 = arith.addf %187, %195 : vector<4x256xf32>
    %c0_182 = arith.constant 0 : index
    %c113_183 = arith.constant 113 : index
    %197 = vector.load %arg24[%c0_182, %c113_183] : memref<4x512xf32, #tpu.memory_space<vmem>>, vector<4x256xf32>
    %c2_184 = arith.constant 2 : index
    %c0_185 = arith.constant 0 : index
    %c0_186 = arith.constant 0 : index
    %198 = vector.load %arg4[%c2_184, %c0_185, %c0_186] : memref<9x1x256xf32, #tpu.memory_space<vmem>>, vector<1x1x256xf32>
    %199 = vector.shape_cast %198 : vector<1x1x256xf32> to vector<1x256xf32>
    %200 = vector.broadcast %199 : vector<1x256xf32> to vector<4x256xf32>
    %201 = arith.mulf %197, %200 : vector<4x256xf32>
    %c2_187 = arith.constant 2 : index
    %c0_188 = arith.constant 0 : index
    %c0_189 = arith.constant 0 : index
    %202 = vector.load %arg9[%c2_187, %c0_188, %c0_189] : memref<9x4x4xf32, #tpu.memory_space<vmem>>, vector<1x4x4xf32>
    %203 = vector.shape_cast %202 : vector<1x4x4xf32> to vector<4x4xf32>
    %cst_190 = arith.constant dense<0.000000e+00> : vector<4x256xf32>
    %204 = tpu.matmul %203, %201, %cst_190 {dimension_numbers = #tpu.dot_dimension_numbers<[1], [0], [0], [1], [0, 0, 1, 1], [], []>} : vector<4x4xf32>, vector<4x256xf32>, vector<4x256xf32> -> vector<4x256xf32>
    %205 = arith.addf %196, %204 : vector<4x256xf32>
    %c0_191 = arith.constant 0 : index
    %c127_192 = arith.constant 127 : index
    %206 = vector.load %arg24[%c0_191, %c127_192] : memref<4x512xf32, #tpu.memory_space<vmem>>, vector<4x256xf32>
    %c3_193 = arith.constant 3 : index
    %c0_194 = arith.constant 0 : index
    %c0_195 = arith.constant 0 : index
    %207 = vector.load %arg4[%c3_193, %c0_194, %c0_195] : memref<9x1x256xf32, #tpu.memory_space<vmem>>, vector<1x1x256xf32>
    %208 = vector.shape_cast %207 : vector<1x1x256xf32> to vector<1x256xf32>
    %209 = vector.broadcast %208 : vector<1x256xf32> to vector<4x256xf32>
    %210 = arith.mulf %206, %209 : vector<4x256xf32>
    %c3_196 = arith.constant 3 : index
    %c0_197 = arith.constant 0 : index
    %c0_198 = arith.constant 0 : index
    %211 = vector.load %arg9[%c3_196, %c0_197, %c0_198] : memref<9x4x4xf32, #tpu.memory_space<vmem>>, vector<1x4x4xf32>
    %212 = vector.shape_cast %211 : vector<1x4x4xf32> to vector<4x4xf32>
    %cst_199 = arith.constant dense<0.000000e+00> : vector<4x256xf32>
    %213 = tpu.matmul %212, %210, %cst_199 {dimension_numbers = #tpu.dot_dimension_numbers<[1], [0], [0], [1], [0, 0, 1, 1], [], []>} : vector<4x4xf32>, vector<4x256xf32>, vector<4x256xf32> -> vector<4x256xf32>
    %214 = arith.addf %205, %213 : vector<4x256xf32>
    %c0_200 = arith.constant 0 : index
    %c128_201 = arith.constant 128 : index
    %215 = vector.load %arg24[%c0_200, %c128_201] : memref<4x512xf32, #tpu.memory_space<vmem>>, vector<4x256xf32>
    %c4_202 = arith.constant 4 : index
    %c0_203 = arith.constant 0 : index
    %c0_204 = arith.constant 0 : index
    %216 = vector.load %arg9[%c4_202, %c0_203, %c0_204] : memref<9x4x4xf32, #tpu.memory_space<vmem>>, vector<1x4x4xf32>
    %217 = vector.shape_cast %216 : vector<1x4x4xf32> to vector<4x4xf32>
    %cst_205 = arith.constant dense<0.000000e+00> : vector<4x256xf32>
    %218 = tpu.matmul %217, %215, %cst_205 {dimension_numbers = #tpu.dot_dimension_numbers<[1], [0], [0], [1], [0, 0, 1, 1], [], []>} : vector<4x4xf32>, vector<4x256xf32>, vector<4x256xf32> -> vector<4x256xf32>
    %219 = arith.addf %214, %218 : vector<4x256xf32>
    %c0_206 = arith.constant 0 : index
    %c129_207 = arith.constant 129 : index
    %220 = vector.load %arg24[%c0_206, %c129_207] : memref<4x512xf32, #tpu.memory_space<vmem>>, vector<4x256xf32>
    %c5_208 = arith.constant 5 : index
    %c0_209 = arith.constant 0 : index
    %c0_210 = arith.constant 0 : index
    %221 = vector.load %arg4[%c5_208, %c0_209, %c0_210] : memref<9x1x256xf32, #tpu.memory_space<vmem>>, vector<1x1x256xf32>
    %222 = vector.shape_cast %221 : vector<1x1x256xf32> to vector<1x256xf32>
    %223 = vector.broadcast %222 : vector<1x256xf32> to vector<4x256xf32>
    %224 = arith.mulf %220, %223 : vector<4x256xf32>
    %c5_211 = arith.constant 5 : index
    %c0_212 = arith.constant 0 : index
    %c0_213 = arith.constant 0 : index
    %225 = vector.load %arg9[%c5_211, %c0_212, %c0_213] : memref<9x4x4xf32, #tpu.memory_space<vmem>>, vector<1x4x4xf32>
    %226 = vector.shape_cast %225 : vector<1x4x4xf32> to vector<4x4xf32>
    %cst_214 = arith.constant dense<0.000000e+00> : vector<4x256xf32>
    %227 = tpu.matmul %226, %224, %cst_214 {dimension_numbers = #tpu.dot_dimension_numbers<[1], [0], [0], [1], [0, 0, 1, 1], [], []>} : vector<4x4xf32>, vector<4x256xf32>, vector<4x256xf32> -> vector<4x256xf32>
    %228 = arith.addf %219, %227 : vector<4x256xf32>
    %c0_215 = arith.constant 0 : index
    %c143_216 = arith.constant 143 : index
    %229 = vector.load %arg24[%c0_215, %c143_216] : memref<4x512xf32, #tpu.memory_space<vmem>>, vector<4x256xf32>
    %c6_217 = arith.constant 6 : index
    %c0_218 = arith.constant 0 : index
    %c0_219 = arith.constant 0 : index
    %230 = vector.load %arg4[%c6_217, %c0_218, %c0_219] : memref<9x1x256xf32, #tpu.memory_space<vmem>>, vector<1x1x256xf32>
    %231 = vector.shape_cast %230 : vector<1x1x256xf32> to vector<1x256xf32>
    %232 = vector.broadcast %231 : vector<1x256xf32> to vector<4x256xf32>
    %233 = arith.mulf %229, %232 : vector<4x256xf32>
    %c6_220 = arith.constant 6 : index
    %c0_221 = arith.constant 0 : index
    %c0_222 = arith.constant 0 : index
    %234 = vector.load %arg9[%c6_220, %c0_221, %c0_222] : memref<9x4x4xf32, #tpu.memory_space<vmem>>, vector<1x4x4xf32>
    %235 = vector.shape_cast %234 : vector<1x4x4xf32> to vector<4x4xf32>
    %cst_223 = arith.constant dense<0.000000e+00> : vector<4x256xf32>
    %236 = tpu.matmul %235, %233, %cst_223 {dimension_numbers = #tpu.dot_dimension_numbers<[1], [0], [0], [1], [0, 0, 1, 1], [], []>} : vector<4x4xf32>, vector<4x256xf32>, vector<4x256xf32> -> vector<4x256xf32>
    %237 = arith.addf %228, %236 : vector<4x256xf32>
    %c0_224 = arith.constant 0 : index
    %c144_225 = arith.constant 144 : index
    %238 = vector.load %arg24[%c0_224, %c144_225] : memref<4x512xf32, #tpu.memory_space<vmem>>, vector<4x256xf32>
    %c7_226 = arith.constant 7 : index
    %c0_227 = arith.constant 0 : index
    %c0_228 = arith.constant 0 : index
    %239 = vector.load %arg4[%c7_226, %c0_227, %c0_228] : memref<9x1x256xf32, #tpu.memory_space<vmem>>, vector<1x1x256xf32>
    %240 = vector.shape_cast %239 : vector<1x1x256xf32> to vector<1x256xf32>
    %241 = vector.broadcast %240 : vector<1x256xf32> to vector<4x256xf32>
    %242 = arith.mulf %238, %241 : vector<4x256xf32>
    %c7_229 = arith.constant 7 : index
    %c0_230 = arith.constant 0 : index
    %c0_231 = arith.constant 0 : index
    %243 = vector.load %arg9[%c7_229, %c0_230, %c0_231] : memref<9x4x4xf32, #tpu.memory_space<vmem>>, vector<1x4x4xf32>
    %244 = vector.shape_cast %243 : vector<1x4x4xf32> to vector<4x4xf32>
    %cst_232 = arith.constant dense<0.000000e+00> : vector<4x256xf32>
    %245 = tpu.matmul %244, %242, %cst_232 {dimension_numbers = #tpu.dot_dimension_numbers<[1], [0], [0], [1], [0, 0, 1, 1], [], []>} : vector<4x4xf32>, vector<4x256xf32>, vector<4x256xf32> -> vector<4x256xf32>
    %246 = arith.addf %237, %245 : vector<4x256xf32>
    %c0_233 = arith.constant 0 : index
    %c145_234 = arith.constant 145 : index
    %247 = vector.load %arg24[%c0_233, %c145_234] : memref<4x512xf32, #tpu.memory_space<vmem>>, vector<4x256xf32>
    %c8_235 = arith.constant 8 : index
    %c0_236 = arith.constant 0 : index
    %c0_237 = arith.constant 0 : index
    %248 = vector.load %arg4[%c8_235, %c0_236, %c0_237] : memref<9x1x256xf32, #tpu.memory_space<vmem>>, vector<1x1x256xf32>
    %249 = vector.shape_cast %248 : vector<1x1x256xf32> to vector<1x256xf32>
    %250 = vector.broadcast %249 : vector<1x256xf32> to vector<4x256xf32>
    %251 = arith.mulf %247, %250 : vector<4x256xf32>
    %c8_238 = arith.constant 8 : index
    %c0_239 = arith.constant 0 : index
    %c0_240 = arith.constant 0 : index
    %252 = vector.load %arg9[%c8_238, %c0_239, %c0_240] : memref<9x4x4xf32, #tpu.memory_space<vmem>>, vector<1x4x4xf32>
    %253 = vector.shape_cast %252 : vector<1x4x4xf32> to vector<4x4xf32>
    %cst_241 = arith.constant dense<0.000000e+00> : vector<4x256xf32>
    %254 = tpu.matmul %253, %251, %cst_241 {dimension_numbers = #tpu.dot_dimension_numbers<[1], [0], [0], [1], [0, 0, 1, 1], [], []>} : vector<4x4xf32>, vector<4x256xf32>, vector<4x256xf32> -> vector<4x256xf32>
    %255 = arith.addf %246, %254 : vector<4x256xf32>
    %c0_242 = arith.constant 0 : index
    %c0_243 = arith.constant 0 : index
    %256 = vector.load %arg10[%c0_242, %c0_243] : memref<4x1xf32, #tpu.memory_space<vmem>>, vector<4x1xf32>
    %257 = vector.broadcast %256 : vector<4x1xf32> to vector<4x256xf32>
    %258 = arith.addf %255, %257 : vector<4x256xf32>
    %cst_244 = arith.constant 0.000000e+00 : f32
    %259 = vector.broadcast %cst_244 : f32 to vector<4x256xf32>
    %260 = arith.cmpf oge, %258, %259 : vector<4x256xf32>
    %cst_245 = arith.constant 2.000000e-01 : f32
    %261 = vector.broadcast %cst_245 : f32 to vector<4x256xf32>
    %262 = arith.mulf %258, %261 : vector<4x256xf32>
    %263 = arith.select %260, %258, %262 : vector<4x256xi1>, vector<4x256xf32>
    %cst_246 = arith.constant 0.000000e+00 : f32
    %264 = vector.broadcast %cst_246 : f32 to vector<4x256xf32>
    %c0_247 = arith.constant 0 : index
    %c128_248 = arith.constant 128 : index
    %265 = vector.load %arg24[%c0_247, %c128_248] : memref<4x512xf32, #tpu.memory_space<vmem>>, vector<4x256xf32>
    tpu.vector_store %arg24[%c0_247, %c128_248], %263 {strides = array<i32>} : memref<4x512xf32, #tpu.memory_space<vmem>>, vector<4x256xf32>,
    %c0_249 = arith.constant 0 : index
    %c111_250 = arith.constant 111 : index
    %266 = vector.load %arg24[%c0_249, %c111_250] : memref<4x512xf32, #tpu.memory_space<vmem>>, vector<4x256xf32>
    %c0_251 = arith.constant 0 : index
    %c0_252 = arith.constant 0 : index
    %c0_253 = arith.constant 0 : index
    %267 = vector.load %arg4[%c0_251, %c0_252, %c0_253] : memref<9x1x256xf32, #tpu.memory_space<vmem>>, vector<1x1x256xf32>
    %268 = vector.shape_cast %267 : vector<1x1x256xf32> to vector<1x256xf32>
    %269 = vector.broadcast %268 : vector<1x256xf32> to vector<4x256xf32>
    %270 = arith.mulf %266, %269 : vector<4x256xf32>
    %c0_254 = arith.constant 0 : index
    %c0_255 = arith.constant 0 : index
    %c0_256 = arith.constant 0 : index
    %271 = vector.load %arg11[%c0_254, %c0_255, %c0_256] : memref<9x4x4xf32, #tpu.memory_space<vmem>>, vector<1x4x4xf32>
    %272 = vector.shape_cast %271 : vector<1x4x4xf32> to vector<4x4xf32>
    %cst_257 = arith.constant dense<0.000000e+00> : vector<4x256xf32>
    %273 = tpu.matmul %272, %270, %cst_257 {dimension_numbers = #tpu.dot_dimension_numbers<[1], [0], [0], [1], [0, 0, 1, 1], [], []>} : vector<4x4xf32>, vector<4x256xf32>, vector<4x256xf32> -> vector<4x256xf32>
    %274 = arith.addf %264, %273 : vector<4x256xf32>
    %c0_258 = arith.constant 0 : index
    %c112_259 = arith.constant 112 : index
    %275 = vector.load %arg24[%c0_258, %c112_259] : memref<4x512xf32, #tpu.memory_space<vmem>>, vector<4x256xf32>
    %c1_260 = arith.constant 1 : index
    %c0_261 = arith.constant 0 : index
    %c0_262 = arith.constant 0 : index
    %276 = vector.load %arg4[%c1_260, %c0_261, %c0_262] : memref<9x1x256xf32, #tpu.memory_space<vmem>>, vector<1x1x256xf32>
    %277 = vector.shape_cast %276 : vector<1x1x256xf32> to vector<1x256xf32>
    %278 = vector.broadcast %277 : vector<1x256xf32> to vector<4x256xf32>
    %279 = arith.mulf %275, %278 : vector<4x256xf32>
    %c1_263 = arith.constant 1 : index
    %c0_264 = arith.constant 0 : index
    %c0_265 = arith.constant 0 : index
    %280 = vector.load %arg11[%c1_263, %c0_264, %c0_265] : memref<9x4x4xf32, #tpu.memory_space<vmem>>, vector<1x4x4xf32>
    %281 = vector.shape_cast %280 : vector<1x4x4xf32> to vector<4x4xf32>
    %cst_266 = arith.constant dense<0.000000e+00> : vector<4x256xf32>
    %282 = tpu.matmul %281, %279, %cst_266 {dimension_numbers = #tpu.dot_dimension_numbers<[1], [0], [0], [1], [0, 0, 1, 1], [], []>} : vector<4x4xf32>, vector<4x256xf32>, vector<4x256xf32> -> vector<4x256xf32>
    %283 = arith.addf %274, %282 : vector<4x256xf32>
    %c0_267 = arith.constant 0 : index
    %c113_268 = arith.constant 113 : index
    %284 = vector.load %arg24[%c0_267, %c113_268] : memref<4x512xf32, #tpu.memory_space<vmem>>, vector<4x256xf32>
    %c2_269 = arith.constant 2 : index
    %c0_270 = arith.constant 0 : index
    %c0_271 = arith.constant 0 : index
    %285 = vector.load %arg4[%c2_269, %c0_270, %c0_271] : memref<9x1x256xf32, #tpu.memory_space<vmem>>, vector<1x1x256xf32>
    %286 = vector.shape_cast %285 : vector<1x1x256xf32> to vector<1x256xf32>
    %287 = vector.broadcast %286 : vector<1x256xf32> to vector<4x256xf32>
    %288 = arith.mulf %284, %287 : vector<4x256xf32>
    %c2_272 = arith.constant 2 : index
    %c0_273 = arith.constant 0 : index
    %c0_274 = arith.constant 0 : index
    %289 = vector.load %arg11[%c2_272, %c0_273, %c0_274] : memref<9x4x4xf32, #tpu.memory_space<vmem>>, vector<1x4x4xf32>
    %290 = vector.shape_cast %289 : vector<1x4x4xf32> to vector<4x4xf32>
    %cst_275 = arith.constant dense<0.000000e+00> : vector<4x256xf32>
    %291 = tpu.matmul %290, %288, %cst_275 {dimension_numbers = #tpu.dot_dimension_numbers<[1], [0], [0], [1], [0, 0, 1, 1], [], []>} : vector<4x4xf32>, vector<4x256xf32>, vector<4x256xf32> -> vector<4x256xf32>
    %292 = arith.addf %283, %291 : vector<4x256xf32>
    %c0_276 = arith.constant 0 : index
    %c127_277 = arith.constant 127 : index
    %293 = vector.load %arg24[%c0_276, %c127_277] : memref<4x512xf32, #tpu.memory_space<vmem>>, vector<4x256xf32>
    %c3_278 = arith.constant 3 : index
    %c0_279 = arith.constant 0 : index
    %c0_280 = arith.constant 0 : index
    %294 = vector.load %arg4[%c3_278, %c0_279, %c0_280] : memref<9x1x256xf32, #tpu.memory_space<vmem>>, vector<1x1x256xf32>
    %295 = vector.shape_cast %294 : vector<1x1x256xf32> to vector<1x256xf32>
    %296 = vector.broadcast %295 : vector<1x256xf32> to vector<4x256xf32>
    %297 = arith.mulf %293, %296 : vector<4x256xf32>
    %c3_281 = arith.constant 3 : index
    %c0_282 = arith.constant 0 : index
    %c0_283 = arith.constant 0 : index
    %298 = vector.load %arg11[%c3_281, %c0_282, %c0_283] : memref<9x4x4xf32, #tpu.memory_space<vmem>>, vector<1x4x4xf32>
    %299 = vector.shape_cast %298 : vector<1x4x4xf32> to vector<4x4xf32>
    %cst_284 = arith.constant dense<0.000000e+00> : vector<4x256xf32>
    %300 = tpu.matmul %299, %297, %cst_284 {dimension_numbers = #tpu.dot_dimension_numbers<[1], [0], [0], [1], [0, 0, 1, 1], [], []>} : vector<4x4xf32>, vector<4x256xf32>, vector<4x256xf32> -> vector<4x256xf32>
    %301 = arith.addf %292, %300 : vector<4x256xf32>
    %c0_285 = arith.constant 0 : index
    %c128_286 = arith.constant 128 : index
    %302 = vector.load %arg24[%c0_285, %c128_286] : memref<4x512xf32, #tpu.memory_space<vmem>>, vector<4x256xf32>
    %c4_287 = arith.constant 4 : index
    %c0_288 = arith.constant 0 : index
    %c0_289 = arith.constant 0 : index
    %303 = vector.load %arg11[%c4_287, %c0_288, %c0_289] : memref<9x4x4xf32, #tpu.memory_space<vmem>>, vector<1x4x4xf32>
    %304 = vector.shape_cast %303 : vector<1x4x4xf32> to vector<4x4xf32>
    %cst_290 = arith.constant dense<0.000000e+00> : vector<4x256xf32>
    %305 = tpu.matmul %304, %302, %cst_290 {dimension_numbers = #tpu.dot_dimension_numbers<[1], [0], [0], [1], [0, 0, 1, 1], [], []>} : vector<4x4xf32>, vector<4x256xf32>, vector<4x256xf32> -> vector<4x256xf32>
    %306 = arith.addf %301, %305 : vector<4x256xf32>
    %c0_291 = arith.constant 0 : index
    %c129_292 = arith.constant 129 : index
    %307 = vector.load %arg24[%c0_291, %c129_292] : memref<4x512xf32, #tpu.memory_space<vmem>>, vector<4x256xf32>
    %c5_293 = arith.constant 5 : index
    %c0_294 = arith.constant 0 : index
    %c0_295 = arith.constant 0 : index
    %308 = vector.load %arg4[%c5_293, %c0_294, %c0_295] : memref<9x1x256xf32, #tpu.memory_space<vmem>>, vector<1x1x256xf32>
    %309 = vector.shape_cast %308 : vector<1x1x256xf32> to vector<1x256xf32>
    %310 = vector.broadcast %309 : vector<1x256xf32> to vector<4x256xf32>
    %311 = arith.mulf %307, %310 : vector<4x256xf32>
    %c5_296 = arith.constant 5 : index
    %c0_297 = arith.constant 0 : index
    %c0_298 = arith.constant 0 : index
    %312 = vector.load %arg11[%c5_296, %c0_297, %c0_298] : memref<9x4x4xf32, #tpu.memory_space<vmem>>, vector<1x4x4xf32>
    %313 = vector.shape_cast %312 : vector<1x4x4xf32> to vector<4x4xf32>
    %cst_299 = arith.constant dense<0.000000e+00> : vector<4x256xf32>
    %314 = tpu.matmul %313, %311, %cst_299 {dimension_numbers = #tpu.dot_dimension_numbers<[1], [0], [0], [1], [0, 0, 1, 1], [], []>} : vector<4x4xf32>, vector<4x256xf32>, vector<4x256xf32> -> vector<4x256xf32>
    %315 = arith.addf %306, %314 : vector<4x256xf32>
    %c0_300 = arith.constant 0 : index
    %c143_301 = arith.constant 143 : index
    %316 = vector.load %arg24[%c0_300, %c143_301] : memref<4x512xf32, #tpu.memory_space<vmem>>, vector<4x256xf32>
    %c6_302 = arith.constant 6 : index
    %c0_303 = arith.constant 0 : index
    %c0_304 = arith.constant 0 : index
    %317 = vector.load %arg4[%c6_302, %c0_303, %c0_304] : memref<9x1x256xf32, #tpu.memory_space<vmem>>, vector<1x1x256xf32>
    %318 = vector.shape_cast %317 : vector<1x1x256xf32> to vector<1x256xf32>
    %319 = vector.broadcast %318 : vector<1x256xf32> to vector<4x256xf32>
    %320 = arith.mulf %316, %319 : vector<4x256xf32>
    %c6_305 = arith.constant 6 : index
    %c0_306 = arith.constant 0 : index
    %c0_307 = arith.constant 0 : index
    %321 = vector.load %arg11[%c6_305, %c0_306, %c0_307] : memref<9x4x4xf32, #tpu.memory_space<vmem>>, vector<1x4x4xf32>
    %322 = vector.shape_cast %321 : vector<1x4x4xf32> to vector<4x4xf32>
    %cst_308 = arith.constant dense<0.000000e+00> : vector<4x256xf32>
    %323 = tpu.matmul %322, %320, %cst_308 {dimension_numbers = #tpu.dot_dimension_numbers<[1], [0], [0], [1], [0, 0, 1, 1], [], []>} : vector<4x4xf32>, vector<4x256xf32>, vector<4x256xf32> -> vector<4x256xf32>
    %324 = arith.addf %315, %323 : vector<4x256xf32>
    %c0_309 = arith.constant 0 : index
    %c144_310 = arith.constant 144 : index
    %325 = vector.load %arg24[%c0_309, %c144_310] : memref<4x512xf32, #tpu.memory_space<vmem>>, vector<4x256xf32>
    %c7_311 = arith.constant 7 : index
    %c0_312 = arith.constant 0 : index
    %c0_313 = arith.constant 0 : index
    %326 = vector.load %arg4[%c7_311, %c0_312, %c0_313] : memref<9x1x256xf32, #tpu.memory_space<vmem>>, vector<1x1x256xf32>
    %327 = vector.shape_cast %326 : vector<1x1x256xf32> to vector<1x256xf32>
    %328 = vector.broadcast %327 : vector<1x256xf32> to vector<4x256xf32>
    %329 = arith.mulf %325, %328 : vector<4x256xf32>
    %c7_314 = arith.constant 7 : index
    %c0_315 = arith.constant 0 : index
    %c0_316 = arith.constant 0 : index
    %330 = vector.load %arg11[%c7_314, %c0_315, %c0_316] : memref<9x4x4xf32, #tpu.memory_space<vmem>>, vector<1x4x4xf32>
    %331 = vector.shape_cast %330 : vector<1x4x4xf32> to vector<4x4xf32>
    %cst_317 = arith.constant dense<0.000000e+00> : vector<4x256xf32>
    %332 = tpu.matmul %331, %329, %cst_317 {dimension_numbers = #tpu.dot_dimension_numbers<[1], [0], [0], [1], [0, 0, 1, 1], [], []>} : vector<4x4xf32>, vector<4x256xf32>, vector<4x256xf32> -> vector<4x256xf32>
    %333 = arith.addf %324, %332 : vector<4x256xf32>
    %c0_318 = arith.constant 0 : index
    %c145_319 = arith.constant 145 : index
    %334 = vector.load %arg24[%c0_318, %c145_319] : memref<4x512xf32, #tpu.memory_space<vmem>>, vector<4x256xf32>
    %c8_320 = arith.constant 8 : index
    %c0_321 = arith.constant 0 : index
    %c0_322 = arith.constant 0 : index
    %335 = vector.load %arg4[%c8_320, %c0_321, %c0_322] : memref<9x1x256xf32, #tpu.memory_space<vmem>>, vector<1x1x256xf32>
    %336 = vector.shape_cast %335 : vector<1x1x256xf32> to vector<1x256xf32>
    %337 = vector.broadcast %336 : vector<1x256xf32> to vector<4x256xf32>
    %338 = arith.mulf %334, %337 : vector<4x256xf32>
    %c8_323 = arith.constant 8 : index
    %c0_324 = arith.constant 0 : index
    %c0_325 = arith.constant 0 : index
    %339 = vector.load %arg11[%c8_323, %c0_324, %c0_325] : memref<9x4x4xf32, #tpu.memory_space<vmem>>, vector<1x4x4xf32>
    %340 = vector.shape_cast %339 : vector<1x4x4xf32> to vector<4x4xf32>
    %cst_326 = arith.constant dense<0.000000e+00> : vector<4x256xf32>
    %341 = tpu.matmul %340, %338, %cst_326 {dimension_numbers = #tpu.dot_dimension_numbers<[1], [0], [0], [1], [0, 0, 1, 1], [], []>} : vector<4x4xf32>, vector<4x256xf32>, vector<4x256xf32> -> vector<4x256xf32>
    %342 = arith.addf %333, %341 : vector<4x256xf32>
    %c0_327 = arith.constant 0 : index
    %c0_328 = arith.constant 0 : index
    %343 = vector.load %arg12[%c0_327, %c0_328] : memref<4x1xf32, #tpu.memory_space<vmem>>, vector<4x1xf32>
    %344 = vector.broadcast %343 : vector<4x1xf32> to vector<4x256xf32>
    %345 = arith.addf %342, %344 : vector<4x256xf32>
    %c0_329 = arith.constant 0 : index
    %c0_330 = arith.constant 0 : index
    %346 = vector.load %arg13[%c0_329, %c0_330] : memref<2x4xf32, #tpu.memory_space<vmem>>, vector<2x4xf32>
    %cst_331 = arith.constant dense<0.000000e+00> : vector<2x256xf32>
    %347 = tpu.matmul %346, %7, %cst_331 {dimension_numbers = #tpu.dot_dimension_numbers<[1], [0], [0], [1], [0, 0, 1, 1], [], []>} : vector<2x4xf32>, vector<4x256xf32>, vector<2x256xf32> -> vector<2x256xf32>
    %c0_332 = arith.constant 0 : index
    %c0_333 = arith.constant 0 : index
    %348 = vector.load %arg14[%c0_332, %c0_333] : memref<2x1xf32, #tpu.memory_space<vmem>>, vector<2x1xf32>
    %349 = vector.broadcast %348 : vector<2x1xf32> to vector<2x256xf32>
    %350 = arith.addf %347, %349 : vector<2x256xf32>
    %c0_334 = arith.constant 0 : index
    %c0_335 = arith.constant 0 : index
    %351 = vector.load %arg15[%c0_334, %c0_335] : memref<2x4xf32, #tpu.memory_space<vmem>>, vector<2x4xf32>
    %cst_336 = arith.constant dense<0.000000e+00> : vector<2x256xf32>
    %352 = tpu.matmul %351, %176, %cst_336 {dimension_numbers = #tpu.dot_dimension_numbers<[1], [0], [0], [1], [0, 0, 1, 1], [], []>} : vector<2x4xf32>, vector<4x256xf32>, vector<2x256xf32> -> vector<2x256xf32>
    %c0_337 = arith.constant 0 : index
    %c0_338 = arith.constant 0 : index
    %353 = vector.load %arg16[%c0_337, %c0_338] : memref<2x1xf32, #tpu.memory_space<vmem>>, vector<2x1xf32>
    %354 = vector.broadcast %353 : vector<2x1xf32> to vector<2x256xf32>
    %355 = arith.addf %352, %354 : vector<2x256xf32>
    %c0_339 = arith.constant 0 : index
    %c0_340 = arith.constant 0 : index
    %356 = vector.load %arg17[%c0_339, %c0_340] : memref<2x4xf32, #tpu.memory_space<vmem>>, vector<2x4xf32>
    %cst_341 = arith.constant dense<0.000000e+00> : vector<2x256xf32>
    %357 = tpu.matmul %356, %345, %cst_341 {dimension_numbers = #tpu.dot_dimension_numbers<[1], [0], [0], [1], [0, 0, 1, 1], [], []>} : vector<2x4xf32>, vector<4x256xf32>, vector<2x256xf32> -> vector<2x256xf32>
    %c0_342 = arith.constant 0 : index
    %c0_343 = arith.constant 0 : index
    %358 = vector.load %arg18[%c0_342, %c0_343] : memref<2x1xf32, #tpu.memory_space<vmem>>, vector<2x1xf32>
    %359 = vector.broadcast %358 : vector<2x1xf32> to vector<2x256xf32>
    %360 = arith.addf %357, %359 : vector<2x256xf32>
    %cst_344 = arith.constant 0.000000e+00 : f32
    %361 = vector.broadcast %cst_344 : f32 to vector<4x256xf32>
    %c0_345 = arith.constant 0 : index
    %c128_346 = arith.constant 128 : index
    %362 = vector.load %arg24[%c0_345, %c128_346] : memref<4x512xf32, #tpu.memory_space<vmem>>, vector<2x256xf32>
    tpu.vector_store %arg24[%c0_345, %c128_346], %350 {strides = array<i32>} : memref<4x512xf32, #tpu.memory_space<vmem>>, vector<2x256xf32>,
    %c0_347 = arith.constant 0 : index
    %c111_348 = arith.constant 111 : index
    %363 = vector.load %arg24[%c0_347, %c111_348] : memref<4x512xf32, #tpu.memory_space<vmem>>, vector<2x256xf32>
    %c0_349 = arith.constant 0 : index
    %c0_350 = arith.constant 0 : index
    %c0_351 = arith.constant 0 : index
    %364 = vector.load %arg4[%c0_349, %c0_350, %c0_351] : memref<9x1x256xf32, #tpu.memory_space<vmem>>, vector<1x1x256xf32>
    %365 = vector.shape_cast %364 : vector<1x1x256xf32> to vector<1x256xf32>
    %366 = vector.broadcast %365 : vector<1x256xf32> to vector<2x256xf32>
    %367 = arith.mulf %363, %366 : vector<2x256xf32>
    %c0_352 = arith.constant 0 : index
    %c0_353 = arith.constant 0 : index
    %c0_354 = arith.constant 0 : index
    %368 = vector.load %arg19[%c0_352, %c0_353, %c0_354] : memref<9x4x2xf32, #tpu.memory_space<vmem>>, vector<1x4x2xf32>
    %369 = vector.shape_cast %368 : vector<1x4x2xf32> to vector<4x2xf32>
    %cst_355 = arith.constant dense<0.000000e+00> : vector<4x256xf32>
    %370 = tpu.matmul %369, %367, %cst_355 {dimension_numbers = #tpu.dot_dimension_numbers<[1], [0], [0], [1], [0, 0, 1, 1], [], []>} : vector<4x2xf32>, vector<2x256xf32>, vector<4x256xf32> -> vector<4x256xf32>
    %371 = arith.addf %361, %370 : vector<4x256xf32>
    %c0_356 = arith.constant 0 : index
    %c112_357 = arith.constant 112 : index
    %372 = vector.load %arg24[%c0_356, %c112_357] : memref<4x512xf32, #tpu.memory_space<vmem>>, vector<2x256xf32>
    %c1_358 = arith.constant 1 : index
    %c0_359 = arith.constant 0 : index
    %c0_360 = arith.constant 0 : index
    %373 = vector.load %arg4[%c1_358, %c0_359, %c0_360] : memref<9x1x256xf32, #tpu.memory_space<vmem>>, vector<1x1x256xf32>
    %374 = vector.shape_cast %373 : vector<1x1x256xf32> to vector<1x256xf32>
    %375 = vector.broadcast %374 : vector<1x256xf32> to vector<2x256xf32>
    %376 = arith.mulf %372, %375 : vector<2x256xf32>
    %c1_361 = arith.constant 1 : index
    %c0_362 = arith.constant 0 : index
    %c0_363 = arith.constant 0 : index
    %377 = vector.load %arg19[%c1_361, %c0_362, %c0_363] : memref<9x4x2xf32, #tpu.memory_space<vmem>>, vector<1x4x2xf32>
    %378 = vector.shape_cast %377 : vector<1x4x2xf32> to vector<4x2xf32>
    %cst_364 = arith.constant dense<0.000000e+00> : vector<4x256xf32>
    %379 = tpu.matmul %378, %376, %cst_364 {dimension_numbers = #tpu.dot_dimension_numbers<[1], [0], [0], [1], [0, 0, 1, 1], [], []>} : vector<4x2xf32>, vector<2x256xf32>, vector<4x256xf32> -> vector<4x256xf32>
    %380 = arith.addf %371, %379 : vector<4x256xf32>
    %c0_365 = arith.constant 0 : index
    %c113_366 = arith.constant 113 : index
    %381 = vector.load %arg24[%c0_365, %c113_366] : memref<4x512xf32, #tpu.memory_space<vmem>>, vector<2x256xf32>
    %c2_367 = arith.constant 2 : index
    %c0_368 = arith.constant 0 : index
    %c0_369 = arith.constant 0 : index
    %382 = vector.load %arg4[%c2_367, %c0_368, %c0_369] : memref<9x1x256xf32, #tpu.memory_space<vmem>>, vector<1x1x256xf32>
    %383 = vector.shape_cast %382 : vector<1x1x256xf32> to vector<1x256xf32>
    %384 = vector.broadcast %383 : vector<1x256xf32> to vector<2x256xf32>
    %385 = arith.mulf %381, %384 : vector<2x256xf32>
    %c2_370 = arith.constant 2 : index
    %c0_371 = arith.constant 0 : index
    %c0_372 = arith.constant 0 : index
    %386 = vector.load %arg19[%c2_370, %c0_371, %c0_372] : memref<9x4x2xf32, #tpu.memory_space<vmem>>, vector<1x4x2xf32>
    %387 = vector.shape_cast %386 : vector<1x4x2xf32> to vector<4x2xf32>
    %cst_373 = arith.constant dense<0.000000e+00> : vector<4x256xf32>
    %388 = tpu.matmul %387, %385, %cst_373 {dimension_numbers = #tpu.dot_dimension_numbers<[1], [0], [0], [1], [0, 0, 1, 1], [], []>} : vector<4x2xf32>, vector<2x256xf32>, vector<4x256xf32> -> vector<4x256xf32>
    %389 = arith.addf %380, %388 : vector<4x256xf32>
    %c0_374 = arith.constant 0 : index
    %c127_375 = arith.constant 127 : index
    %390 = vector.load %arg24[%c0_374, %c127_375] : memref<4x512xf32, #tpu.memory_space<vmem>>, vector<2x256xf32>
    %c3_376 = arith.constant 3 : index
    %c0_377 = arith.constant 0 : index
    %c0_378 = arith.constant 0 : index
    %391 = vector.load %arg4[%c3_376, %c0_377, %c0_378] : memref<9x1x256xf32, #tpu.memory_space<vmem>>, vector<1x1x256xf32>
    %392 = vector.shape_cast %391 : vector<1x1x256xf32> to vector<1x256xf32>
    %393 = vector.broadcast %392 : vector<1x256xf32> to vector<2x256xf32>
    %394 = arith.mulf %390, %393 : vector<2x256xf32>
    %c3_379 = arith.constant 3 : index
    %c0_380 = arith.constant 0 : index
    %c0_381 = arith.constant 0 : index
    %395 = vector.load %arg19[%c3_379, %c0_380, %c0_381] : memref<9x4x2xf32, #tpu.memory_space<vmem>>, vector<1x4x2xf32>
    %396 = vector.shape_cast %395 : vector<1x4x2xf32> to vector<4x2xf32>
    %cst_382 = arith.constant dense<0.000000e+00> : vector<4x256xf32>
    %397 = tpu.matmul %396, %394, %cst_382 {dimension_numbers = #tpu.dot_dimension_numbers<[1], [0], [0], [1], [0, 0, 1, 1], [], []>} : vector<4x2xf32>, vector<2x256xf32>, vector<4x256xf32> -> vector<4x256xf32>
    %398 = arith.addf %389, %397 : vector<4x256xf32>
    %c0_383 = arith.constant 0 : index
    %c128_384 = arith.constant 128 : index
    %399 = vector.load %arg24[%c0_383, %c128_384] : memref<4x512xf32, #tpu.memory_space<vmem>>, vector<2x256xf32>
    %c4_385 = arith.constant 4 : index
    %c0_386 = arith.constant 0 : index
    %c0_387 = arith.constant 0 : index
    %400 = vector.load %arg19[%c4_385, %c0_386, %c0_387] : memref<9x4x2xf32, #tpu.memory_space<vmem>>, vector<1x4x2xf32>
    %401 = vector.shape_cast %400 : vector<1x4x2xf32> to vector<4x2xf32>
    %cst_388 = arith.constant dense<0.000000e+00> : vector<4x256xf32>
    %402 = tpu.matmul %401, %399, %cst_388 {dimension_numbers = #tpu.dot_dimension_numbers<[1], [0], [0], [1], [0, 0, 1, 1], [], []>} : vector<4x2xf32>, vector<2x256xf32>, vector<4x256xf32> -> vector<4x256xf32>
    %403 = arith.addf %398, %402 : vector<4x256xf32>
    %c0_389 = arith.constant 0 : index
    %c129_390 = arith.constant 129 : index
    %404 = vector.load %arg24[%c0_389, %c129_390] : memref<4x512xf32, #tpu.memory_space<vmem>>, vector<2x256xf32>
    %c5_391 = arith.constant 5 : index
    %c0_392 = arith.constant 0 : index
    %c0_393 = arith.constant 0 : index
    %405 = vector.load %arg4[%c5_391, %c0_392, %c0_393] : memref<9x1x256xf32, #tpu.memory_space<vmem>>, vector<1x1x256xf32>
    %406 = vector.shape_cast %405 : vector<1x1x256xf32> to vector<1x256xf32>
    %407 = vector.broadcast %406 : vector<1x256xf32> to vector<2x256xf32>
    %408 = arith.mulf %404, %407 : vector<2x256xf32>
    %c5_394 = arith.constant 5 : index
    %c0_395 = arith.constant 0 : index
    %c0_396 = arith.constant 0 : index
    %409 = vector.load %arg19[%c5_394, %c0_395, %c0_396] : memref<9x4x2xf32, #tpu.memory_space<vmem>>, vector<1x4x2xf32>
    %410 = vector.shape_cast %409 : vector<1x4x2xf32> to vector<4x2xf32>
    %cst_397 = arith.constant dense<0.000000e+00> : vector<4x256xf32>
    %411 = tpu.matmul %410, %408, %cst_397 {dimension_numbers = #tpu.dot_dimension_numbers<[1], [0], [0], [1], [0, 0, 1, 1], [], []>} : vector<4x2xf32>, vector<2x256xf32>, vector<4x256xf32> -> vector<4x256xf32>
    %412 = arith.addf %403, %411 : vector<4x256xf32>
    %c0_398 = arith.constant 0 : index
    %c143_399 = arith.constant 143 : index
    %413 = vector.load %arg24[%c0_398, %c143_399] : memref<4x512xf32, #tpu.memory_space<vmem>>, vector<2x256xf32>
    %c6_400 = arith.constant 6 : index
    %c0_401 = arith.constant 0 : index
    %c0_402 = arith.constant 0 : index
    %414 = vector.load %arg4[%c6_400, %c0_401, %c0_402] : memref<9x1x256xf32, #tpu.memory_space<vmem>>, vector<1x1x256xf32>
    %415 = vector.shape_cast %414 : vector<1x1x256xf32> to vector<1x256xf32>
    %416 = vector.broadcast %415 : vector<1x256xf32> to vector<2x256xf32>
    %417 = arith.mulf %413, %416 : vector<2x256xf32>
    %c6_403 = arith.constant 6 : index
    %c0_404 = arith.constant 0 : index
    %c0_405 = arith.constant 0 : index
    %418 = vector.load %arg19[%c6_403, %c0_404, %c0_405] : memref<9x4x2xf32, #tpu.memory_space<vmem>>, vector<1x4x2xf32>
    %419 = vector.shape_cast %418 : vector<1x4x2xf32> to vector<4x2xf32>
    %cst_406 = arith.constant dense<0.000000e+00> : vector<4x256xf32>
    %420 = tpu.matmul %419, %417, %cst_406 {dimension_numbers = #tpu.dot_dimension_numbers<[1], [0], [0], [1], [0, 0, 1, 1], [], []>} : vector<4x2xf32>, vector<2x256xf32>, vector<4x256xf32> -> vector<4x256xf32>
    %421 = arith.addf %412, %420 : vector<4x256xf32>
    %c0_407 = arith.constant 0 : index
    %c144_408 = arith.constant 144 : index
    %422 = vector.load %arg24[%c0_407, %c144_408] : memref<4x512xf32, #tpu.memory_space<vmem>>, vector<2x256xf32>
    %c7_409 = arith.constant 7 : index
    %c0_410 = arith.constant 0 : index
    %c0_411 = arith.constant 0 : index
    %423 = vector.load %arg4[%c7_409, %c0_410, %c0_411] : memref<9x1x256xf32, #tpu.memory_space<vmem>>, vector<1x1x256xf32>
    %424 = vector.shape_cast %423 : vector<1x1x256xf32> to vector<1x256xf32>
    %425 = vector.broadcast %424 : vector<1x256xf32> to vector<2x256xf32>
    %426 = arith.mulf %422, %425 : vector<2x256xf32>
    %c7_412 = arith.constant 7 : index
    %c0_413 = arith.constant 0 : index
    %c0_414 = arith.constant 0 : index
    %427 = vector.load %arg19[%c7_412, %c0_413, %c0_414] : memref<9x4x2xf32, #tpu.memory_space<vmem>>, vector<1x4x2xf32>
    %428 = vector.shape_cast %427 : vector<1x4x2xf32> to vector<4x2xf32>
    %cst_415 = arith.constant dense<0.000000e+00> : vector<4x256xf32>
    %429 = tpu.matmul %428, %426, %cst_415 {dimension_numbers = #tpu.dot_dimension_numbers<[1], [0], [0], [1], [0, 0, 1, 1], [], []>} : vector<4x2xf32>, vector<2x256xf32>, vector<4x256xf32> -> vector<4x256xf32>
    %430 = arith.addf %421, %429 : vector<4x256xf32>
    %c0_416 = arith.constant 0 : index
    %c145_417 = arith.constant 145 : index
    %431 = vector.load %arg24[%c0_416, %c145_417] : memref<4x512xf32, #tpu.memory_space<vmem>>, vector<2x256xf32>
    %c8_418 = arith.constant 8 : index
    %c0_419 = arith.constant 0 : index
    %c0_420 = arith.constant 0 : index
    %432 = vector.load %arg4[%c8_418, %c0_419, %c0_420] : memref<9x1x256xf32, #tpu.memory_space<vmem>>, vector<1x1x256xf32>
    %433 = vector.shape_cast %432 : vector<1x1x256xf32> to vector<1x256xf32>
    %434 = vector.broadcast %433 : vector<1x256xf32> to vector<2x256xf32>
    %435 = arith.mulf %431, %434 : vector<2x256xf32>
    %c8_421 = arith.constant 8 : index
    %c0_422 = arith.constant 0 : index
    %c0_423 = arith.constant 0 : index
    %436 = vector.load %arg19[%c8_421, %c0_422, %c0_423] : memref<9x4x2xf32, #tpu.memory_space<vmem>>, vector<1x4x2xf32>
    %437 = vector.shape_cast %436 : vector<1x4x2xf32> to vector<4x2xf32>
    %cst_424 = arith.constant dense<0.000000e+00> : vector<4x256xf32>
    %438 = tpu.matmul %437, %435, %cst_424 {dimension_numbers = #tpu.dot_dimension_numbers<[1], [0], [0], [1], [0, 0, 1, 1], [], []>} : vector<4x2xf32>, vector<2x256xf32>, vector<4x256xf32> -> vector<4x256xf32>
    %439 = arith.addf %430, %438 : vector<4x256xf32>
    %c0_425 = arith.constant 0 : index
    %c128_426 = arith.constant 128 : index
    %440 = vector.load %arg24[%c0_425, %c128_426] : memref<4x512xf32, #tpu.memory_space<vmem>>, vector<2x256xf32>
    tpu.vector_store %arg24[%c0_425, %c128_426], %355 {strides = array<i32>} : memref<4x512xf32, #tpu.memory_space<vmem>>, vector<2x256xf32>,
    %c0_427 = arith.constant 0 : index
    %c111_428 = arith.constant 111 : index
    %441 = vector.load %arg24[%c0_427, %c111_428] : memref<4x512xf32, #tpu.memory_space<vmem>>, vector<2x256xf32>
    %c0_429 = arith.constant 0 : index
    %c0_430 = arith.constant 0 : index
    %c0_431 = arith.constant 0 : index
    %442 = vector.load %arg4[%c0_429, %c0_430, %c0_431] : memref<9x1x256xf32, #tpu.memory_space<vmem>>, vector<1x1x256xf32>
    %443 = vector.shape_cast %442 : vector<1x1x256xf32> to vector<1x256xf32>
    %444 = vector.broadcast %443 : vector<1x256xf32> to vector<2x256xf32>
    %445 = arith.mulf %441, %444 : vector<2x256xf32>
    %c0_432 = arith.constant 0 : index
    %c0_433 = arith.constant 0 : index
    %c0_434 = arith.constant 0 : index
    %446 = vector.load %arg20[%c0_432, %c0_433, %c0_434] : memref<9x4x2xf32, #tpu.memory_space<vmem>>, vector<1x4x2xf32>
    %447 = vector.shape_cast %446 : vector<1x4x2xf32> to vector<4x2xf32>
    %cst_435 = arith.constant dense<0.000000e+00> : vector<4x256xf32>
    %448 = tpu.matmul %447, %445, %cst_435 {dimension_numbers = #tpu.dot_dimension_numbers<[1], [0], [0], [1], [0, 0, 1, 1], [], []>} : vector<4x2xf32>, vector<2x256xf32>, vector<4x256xf32> -> vector<4x256xf32>
    %449 = arith.addf %439, %448 : vector<4x256xf32>
    %c0_436 = arith.constant 0 : index
    %c112_437 = arith.constant 112 : index
    %450 = vector.load %arg24[%c0_436, %c112_437] : memref<4x512xf32, #tpu.memory_space<vmem>>, vector<2x256xf32>
    %c1_438 = arith.constant 1 : index
    %c0_439 = arith.constant 0 : index
    %c0_440 = arith.constant 0 : index
    %451 = vector.load %arg4[%c1_438, %c0_439, %c0_440] : memref<9x1x256xf32, #tpu.memory_space<vmem>>, vector<1x1x256xf32>
    %452 = vector.shape_cast %451 : vector<1x1x256xf32> to vector<1x256xf32>
    %453 = vector.broadcast %452 : vector<1x256xf32> to vector<2x256xf32>
    %454 = arith.mulf %450, %453 : vector<2x256xf32>
    %c1_441 = arith.constant 1 : index
    %c0_442 = arith.constant 0 : index
    %c0_443 = arith.constant 0 : index
    %455 = vector.load %arg20[%c1_441, %c0_442, %c0_443] : memref<9x4x2xf32, #tpu.memory_space<vmem>>, vector<1x4x2xf32>
    %456 = vector.shape_cast %455 : vector<1x4x2xf32> to vector<4x2xf32>
    %cst_444 = arith.constant dense<0.000000e+00> : vector<4x256xf32>
    %457 = tpu.matmul %456, %454, %cst_444 {dimension_numbers = #tpu.dot_dimension_numbers<[1], [0], [0], [1], [0, 0, 1, 1], [], []>} : vector<4x2xf32>, vector<2x256xf32>, vector<4x256xf32> -> vector<4x256xf32>
    %458 = arith.addf %449, %457 : vector<4x256xf32>
    %c0_445 = arith.constant 0 : index
    %c113_446 = arith.constant 113 : index
    %459 = vector.load %arg24[%c0_445, %c113_446] : memref<4x512xf32, #tpu.memory_space<vmem>>, vector<2x256xf32>
    %c2_447 = arith.constant 2 : index
    %c0_448 = arith.constant 0 : index
    %c0_449 = arith.constant 0 : index
    %460 = vector.load %arg4[%c2_447, %c0_448, %c0_449] : memref<9x1x256xf32, #tpu.memory_space<vmem>>, vector<1x1x256xf32>
    %461 = vector.shape_cast %460 : vector<1x1x256xf32> to vector<1x256xf32>
    %462 = vector.broadcast %461 : vector<1x256xf32> to vector<2x256xf32>
    %463 = arith.mulf %459, %462 : vector<2x256xf32>
    %c2_450 = arith.constant 2 : index
    %c0_451 = arith.constant 0 : index
    %c0_452 = arith.constant 0 : index
    %464 = vector.load %arg20[%c2_450, %c0_451, %c0_452] : memref<9x4x2xf32, #tpu.memory_space<vmem>>, vector<1x4x2xf32>
    %465 = vector.shape_cast %464 : vector<1x4x2xf32> to vector<4x2xf32>
    %cst_453 = arith.constant dense<0.000000e+00> : vector<4x256xf32>
    %466 = tpu.matmul %465, %463, %cst_453 {dimension_numbers = #tpu.dot_dimension_numbers<[1], [0], [0], [1], [0, 0, 1, 1], [], []>} : vector<4x2xf32>, vector<2x256xf32>, vector<4x256xf32> -> vector<4x256xf32>
    %467 = arith.addf %458, %466 : vector<4x256xf32>
    %c0_454 = arith.constant 0 : index
    %c127_455 = arith.constant 127 : index
    %468 = vector.load %arg24[%c0_454, %c127_455] : memref<4x512xf32, #tpu.memory_space<vmem>>, vector<2x256xf32>
    %c3_456 = arith.constant 3 : index
    %c0_457 = arith.constant 0 : index
    %c0_458 = arith.constant 0 : index
    %469 = vector.load %arg4[%c3_456, %c0_457, %c0_458] : memref<9x1x256xf32, #tpu.memory_space<vmem>>, vector<1x1x256xf32>
    %470 = vector.shape_cast %469 : vector<1x1x256xf32> to vector<1x256xf32>
    %471 = vector.broadcast %470 : vector<1x256xf32> to vector<2x256xf32>
    %472 = arith.mulf %468, %471 : vector<2x256xf32>
    %c3_459 = arith.constant 3 : index
    %c0_460 = arith.constant 0 : index
    %c0_461 = arith.constant 0 : index
    %473 = vector.load %arg20[%c3_459, %c0_460, %c0_461] : memref<9x4x2xf32, #tpu.memory_space<vmem>>, vector<1x4x2xf32>
    %474 = vector.shape_cast %473 : vector<1x4x2xf32> to vector<4x2xf32>
    %cst_462 = arith.constant dense<0.000000e+00> : vector<4x256xf32>
    %475 = tpu.matmul %474, %472, %cst_462 {dimension_numbers = #tpu.dot_dimension_numbers<[1], [0], [0], [1], [0, 0, 1, 1], [], []>} : vector<4x2xf32>, vector<2x256xf32>, vector<4x256xf32> -> vector<4x256xf32>
    %476 = arith.addf %467, %475 : vector<4x256xf32>
    %c0_463 = arith.constant 0 : index
    %c128_464 = arith.constant 128 : index
    %477 = vector.load %arg24[%c0_463, %c128_464] : memref<4x512xf32, #tpu.memory_space<vmem>>, vector<2x256xf32>
    %c4_465 = arith.constant 4 : index
    %c0_466 = arith.constant 0 : index
    %c0_467 = arith.constant 0 : index
    %478 = vector.load %arg20[%c4_465, %c0_466, %c0_467] : memref<9x4x2xf32, #tpu.memory_space<vmem>>, vector<1x4x2xf32>
    %479 = vector.shape_cast %478 : vector<1x4x2xf32> to vector<4x2xf32>
    %cst_468 = arith.constant dense<0.000000e+00> : vector<4x256xf32>
    %480 = tpu.matmul %479, %477, %cst_468 {dimension_numbers = #tpu.dot_dimension_numbers<[1], [0], [0], [1], [0, 0, 1, 1], [], []>} : vector<4x2xf32>, vector<2x256xf32>, vector<4x256xf32> -> vector<4x256xf32>
    %481 = arith.addf %476, %480 : vector<4x256xf32>
    %c0_469 = arith.constant 0 : index
    %c129_470 = arith.constant 129 : index
    %482 = vector.load %arg24[%c0_469, %c129_470] : memref<4x512xf32, #tpu.memory_space<vmem>>, vector<2x256xf32>
    %c5_471 = arith.constant 5 : index
    %c0_472 = arith.constant 0 : index
    %c0_473 = arith.constant 0 : index
    %483 = vector.load %arg4[%c5_471, %c0_472, %c0_473] : memref<9x1x256xf32, #tpu.memory_space<vmem>>, vector<1x1x256xf32>
    %484 = vector.shape_cast %483 : vector<1x1x256xf32> to vector<1x256xf32>
    %485 = vector.broadcast %484 : vector<1x256xf32> to vector<2x256xf32>
    %486 = arith.mulf %482, %485 : vector<2x256xf32>
    %c5_474 = arith.constant 5 : index
    %c0_475 = arith.constant 0 : index
    %c0_476 = arith.constant 0 : index
    %487 = vector.load %arg20[%c5_474, %c0_475, %c0_476] : memref<9x4x2xf32, #tpu.memory_space<vmem>>, vector<1x4x2xf32>
    %488 = vector.shape_cast %487 : vector<1x4x2xf32> to vector<4x2xf32>
    %cst_477 = arith.constant dense<0.000000e+00> : vector<4x256xf32>
    %489 = tpu.matmul %488, %486, %cst_477 {dimension_numbers = #tpu.dot_dimension_numbers<[1], [0], [0], [1], [0, 0, 1, 1], [], []>} : vector<4x2xf32>, vector<2x256xf32>, vector<4x256xf32> -> vector<4x256xf32>
    %490 = arith.addf %481, %489 : vector<4x256xf32>
    %c0_478 = arith.constant 0 : index
    %c143_479 = arith.constant 143 : index
    %491 = vector.load %arg24[%c0_478, %c143_479] : memref<4x512xf32, #tpu.memory_space<vmem>>, vector<2x256xf32>
    %c6_480 = arith.constant 6 : index
    %c0_481 = arith.constant 0 : index
    %c0_482 = arith.constant 0 : index
    %492 = vector.load %arg4[%c6_480, %c0_481, %c0_482] : memref<9x1x256xf32, #tpu.memory_space<vmem>>, vector<1x1x256xf32>
    %493 = vector.shape_cast %492 : vector<1x1x256xf32> to vector<1x256xf32>
    %494 = vector.broadcast %493 : vector<1x256xf32> to vector<2x256xf32>
    %495 = arith.mulf %491, %494 : vector<2x256xf32>
    %c6_483 = arith.constant 6 : index
    %c0_484 = arith.constant 0 : index
    %c0_485 = arith.constant 0 : index
    %496 = vector.load %arg20[%c6_483, %c0_484, %c0_485] : memref<9x4x2xf32, #tpu.memory_space<vmem>>, vector<1x4x2xf32>
    %497 = vector.shape_cast %496 : vector<1x4x2xf32> to vector<4x2xf32>
    %cst_486 = arith.constant dense<0.000000e+00> : vector<4x256xf32>
    %498 = tpu.matmul %497, %495, %cst_486 {dimension_numbers = #tpu.dot_dimension_numbers<[1], [0], [0], [1], [0, 0, 1, 1], [], []>} : vector<4x2xf32>, vector<2x256xf32>, vector<4x256xf32> -> vector<4x256xf32>
    %499 = arith.addf %490, %498 : vector<4x256xf32>
    %c0_487 = arith.constant 0 : index
    %c144_488 = arith.constant 144 : index
    %500 = vector.load %arg24[%c0_487, %c144_488] : memref<4x512xf32, #tpu.memory_space<vmem>>, vector<2x256xf32>
    %c7_489 = arith.constant 7 : index
    %c0_490 = arith.constant 0 : index
    %c0_491 = arith.constant 0 : index
    %501 = vector.load %arg4[%c7_489, %c0_490, %c0_491] : memref<9x1x256xf32, #tpu.memory_space<vmem>>, vector<1x1x256xf32>
    %502 = vector.shape_cast %501 : vector<1x1x256xf32> to vector<1x256xf32>
    %503 = vector.broadcast %502 : vector<1x256xf32> to vector<2x256xf32>
    %504 = arith.mulf %500, %503 : vector<2x256xf32>
    %c7_492 = arith.constant 7 : index
    %c0_493 = arith.constant 0 : index
    %c0_494 = arith.constant 0 : index
    %505 = vector.load %arg20[%c7_492, %c0_493, %c0_494] : memref<9x4x2xf32, #tpu.memory_space<vmem>>, vector<1x4x2xf32>
    %506 = vector.shape_cast %505 : vector<1x4x2xf32> to vector<4x2xf32>
    %cst_495 = arith.constant dense<0.000000e+00> : vector<4x256xf32>
    %507 = tpu.matmul %506, %504, %cst_495 {dimension_numbers = #tpu.dot_dimension_numbers<[1], [0], [0], [1], [0, 0, 1, 1], [], []>} : vector<4x2xf32>, vector<2x256xf32>, vector<4x256xf32> -> vector<4x256xf32>
    %508 = arith.addf %499, %507 : vector<4x256xf32>
    %c0_496 = arith.constant 0 : index
    %c145_497 = arith.constant 145 : index
    %509 = vector.load %arg24[%c0_496, %c145_497] : memref<4x512xf32, #tpu.memory_space<vmem>>, vector<2x256xf32>
    %c8_498 = arith.constant 8 : index
    %c0_499 = arith.constant 0 : index
    %c0_500 = arith.constant 0 : index
    %510 = vector.load %arg4[%c8_498, %c0_499, %c0_500] : memref<9x1x256xf32, #tpu.memory_space<vmem>>, vector<1x1x256xf32>
    %511 = vector.shape_cast %510 : vector<1x1x256xf32> to vector<1x256xf32>
    %512 = vector.broadcast %511 : vector<1x256xf32> to vector<2x256xf32>
    %513 = arith.mulf %509, %512 : vector<2x256xf32>
    %c8_501 = arith.constant 8 : index
    %c0_502 = arith.constant 0 : index
    %c0_503 = arith.constant 0 : index
    %514 = vector.load %arg20[%c8_501, %c0_502, %c0_503] : memref<9x4x2xf32, #tpu.memory_space<vmem>>, vector<1x4x2xf32>
    %515 = vector.shape_cast %514 : vector<1x4x2xf32> to vector<4x2xf32>
    %cst_504 = arith.constant dense<0.000000e+00> : vector<4x256xf32>
    %516 = tpu.matmul %515, %513, %cst_504 {dimension_numbers = #tpu.dot_dimension_numbers<[1], [0], [0], [1], [0, 0, 1, 1], [], []>} : vector<4x2xf32>, vector<2x256xf32>, vector<4x256xf32> -> vector<4x256xf32>
    %517 = arith.addf %508, %516 : vector<4x256xf32>
    %c0_505 = arith.constant 0 : index
    %c128_506 = arith.constant 128 : index
    %518 = vector.load %arg24[%c0_505, %c128_506] : memref<4x512xf32, #tpu.memory_space<vmem>>, vector<2x256xf32>
    tpu.vector_store %arg24[%c0_505, %c128_506], %360 {strides = array<i32>} : memref<4x512xf32, #tpu.memory_space<vmem>>, vector<2x256xf32>,
    %c0_507 = arith.constant 0 : index
    %c111_508 = arith.constant 111 : index
    %519 = vector.load %arg24[%c0_507, %c111_508] : memref<4x512xf32, #tpu.memory_space<vmem>>, vector<2x256xf32>
    %c0_509 = arith.constant 0 : index
    %c0_510 = arith.constant 0 : index
    %c0_511 = arith.constant 0 : index
    %520 = vector.load %arg4[%c0_509, %c0_510, %c0_511] : memref<9x1x256xf32, #tpu.memory_space<vmem>>, vector<1x1x256xf32>
    %521 = vector.shape_cast %520 : vector<1x1x256xf32> to vector<1x256xf32>
    %522 = vector.broadcast %521 : vector<1x256xf32> to vector<2x256xf32>
    %523 = arith.mulf %519, %522 : vector<2x256xf32>
    %c0_512 = arith.constant 0 : index
    %c0_513 = arith.constant 0 : index
    %c0_514 = arith.constant 0 : index
    %524 = vector.load %arg21[%c0_512, %c0_513, %c0_514] : memref<9x4x2xf32, #tpu.memory_space<vmem>>, vector<1x4x2xf32>
    %525 = vector.shape_cast %524 : vector<1x4x2xf32> to vector<4x2xf32>
    %cst_515 = arith.constant dense<0.000000e+00> : vector<4x256xf32>
    %526 = tpu.matmul %525, %523, %cst_515 {dimension_numbers = #tpu.dot_dimension_numbers<[1], [0], [0], [1], [0, 0, 1, 1], [], []>} : vector<4x2xf32>, vector<2x256xf32>, vector<4x256xf32> -> vector<4x256xf32>
    %527 = arith.addf %517, %526 : vector<4x256xf32>
    %c0_516 = arith.constant 0 : index
    %c112_517 = arith.constant 112 : index
    %528 = vector.load %arg24[%c0_516, %c112_517] : memref<4x512xf32, #tpu.memory_space<vmem>>, vector<2x256xf32>
    %c1_518 = arith.constant 1 : index
    %c0_519 = arith.constant 0 : index
    %c0_520 = arith.constant 0 : index
    %529 = vector.load %arg4[%c1_518, %c0_519, %c0_520] : memref<9x1x256xf32, #tpu.memory_space<vmem>>, vector<1x1x256xf32>
    %530 = vector.shape_cast %529 : vector<1x1x256xf32> to vector<1x256xf32>
    %531 = vector.broadcast %530 : vector<1x256xf32> to vector<2x256xf32>
    %532 = arith.mulf %528, %531 : vector<2x256xf32>
    %c1_521 = arith.constant 1 : index
    %c0_522 = arith.constant 0 : index
    %c0_523 = arith.constant 0 : index
    %533 = vector.load %arg21[%c1_521, %c0_522, %c0_523] : memref<9x4x2xf32, #tpu.memory_space<vmem>>, vector<1x4x2xf32>
    %534 = vector.shape_cast %533 : vector<1x4x2xf32> to vector<4x2xf32>
    %cst_524 = arith.constant dense<0.000000e+00> : vector<4x256xf32>
    %535 = tpu.matmul %534, %532, %cst_524 {dimension_numbers = #tpu.dot_dimension_numbers<[1], [0], [0], [1], [0, 0, 1, 1], [], []>} : vector<4x2xf32>, vector<2x256xf32>, vector<4x256xf32> -> vector<4x256xf32>
    %536 = arith.addf %527, %535 : vector<4x256xf32>
    %c0_525 = arith.constant 0 : index
    %c113_526 = arith.constant 113 : index
    %537 = vector.load %arg24[%c0_525, %c113_526] : memref<4x512xf32, #tpu.memory_space<vmem>>, vector<2x256xf32>
    %c2_527 = arith.constant 2 : index
    %c0_528 = arith.constant 0 : index
    %c0_529 = arith.constant 0 : index
    %538 = vector.load %arg4[%c2_527, %c0_528, %c0_529] : memref<9x1x256xf32, #tpu.memory_space<vmem>>, vector<1x1x256xf32>
    %539 = vector.shape_cast %538 : vector<1x1x256xf32> to vector<1x256xf32>
    %540 = vector.broadcast %539 : vector<1x256xf32> to vector<2x256xf32>
    %541 = arith.mulf %537, %540 : vector<2x256xf32>
    %c2_530 = arith.constant 2 : index
    %c0_531 = arith.constant 0 : index
    %c0_532 = arith.constant 0 : index
    %542 = vector.load %arg21[%c2_530, %c0_531, %c0_532] : memref<9x4x2xf32, #tpu.memory_space<vmem>>, vector<1x4x2xf32>
    %543 = vector.shape_cast %542 : vector<1x4x2xf32> to vector<4x2xf32>
    %cst_533 = arith.constant dense<0.000000e+00> : vector<4x256xf32>
    %544 = tpu.matmul %543, %541, %cst_533 {dimension_numbers = #tpu.dot_dimension_numbers<[1], [0], [0], [1], [0, 0, 1, 1], [], []>} : vector<4x2xf32>, vector<2x256xf32>, vector<4x256xf32> -> vector<4x256xf32>
    %545 = arith.addf %536, %544 : vector<4x256xf32>
    %c0_534 = arith.constant 0 : index
    %c127_535 = arith.constant 127 : index
    %546 = vector.load %arg24[%c0_534, %c127_535] : memref<4x512xf32, #tpu.memory_space<vmem>>, vector<2x256xf32>
    %c3_536 = arith.constant 3 : index
    %c0_537 = arith.constant 0 : index
    %c0_538 = arith.constant 0 : index
    %547 = vector.load %arg4[%c3_536, %c0_537, %c0_538] : memref<9x1x256xf32, #tpu.memory_space<vmem>>, vector<1x1x256xf32>
    %548 = vector.shape_cast %547 : vector<1x1x256xf32> to vector<1x256xf32>
    %549 = vector.broadcast %548 : vector<1x256xf32> to vector<2x256xf32>
    %550 = arith.mulf %546, %549 : vector<2x256xf32>
    %c3_539 = arith.constant 3 : index
    %c0_540 = arith.constant 0 : index
    %c0_541 = arith.constant 0 : index
    %551 = vector.load %arg21[%c3_539, %c0_540, %c0_541] : memref<9x4x2xf32, #tpu.memory_space<vmem>>, vector<1x4x2xf32>
    %552 = vector.shape_cast %551 : vector<1x4x2xf32> to vector<4x2xf32>
    %cst_542 = arith.constant dense<0.000000e+00> : vector<4x256xf32>
    %553 = tpu.matmul %552, %550, %cst_542 {dimension_numbers = #tpu.dot_dimension_numbers<[1], [0], [0], [1], [0, 0, 1, 1], [], []>} : vector<4x2xf32>, vector<2x256xf32>, vector<4x256xf32> -> vector<4x256xf32>
    %554 = arith.addf %545, %553 : vector<4x256xf32>
    %c0_543 = arith.constant 0 : index
    %c128_544 = arith.constant 128 : index
    %555 = vector.load %arg24[%c0_543, %c128_544] : memref<4x512xf32, #tpu.memory_space<vmem>>, vector<2x256xf32>
    %c4_545 = arith.constant 4 : index
    %c0_546 = arith.constant 0 : index
    %c0_547 = arith.constant 0 : index
    %556 = vector.load %arg21[%c4_545, %c0_546, %c0_547] : memref<9x4x2xf32, #tpu.memory_space<vmem>>, vector<1x4x2xf32>
    %557 = vector.shape_cast %556 : vector<1x4x2xf32> to vector<4x2xf32>
    %cst_548 = arith.constant dense<0.000000e+00> : vector<4x256xf32>
    %558 = tpu.matmul %557, %555, %cst_548 {dimension_numbers = #tpu.dot_dimension_numbers<[1], [0], [0], [1], [0, 0, 1, 1], [], []>} : vector<4x2xf32>, vector<2x256xf32>, vector<4x256xf32> -> vector<4x256xf32>
    %559 = arith.addf %554, %558 : vector<4x256xf32>
    %c0_549 = arith.constant 0 : index
    %c129_550 = arith.constant 129 : index
    %560 = vector.load %arg24[%c0_549, %c129_550] : memref<4x512xf32, #tpu.memory_space<vmem>>, vector<2x256xf32>
    %c5_551 = arith.constant 5 : index
    %c0_552 = arith.constant 0 : index
    %c0_553 = arith.constant 0 : index
    %561 = vector.load %arg4[%c5_551, %c0_552, %c0_553] : memref<9x1x256xf32, #tpu.memory_space<vmem>>, vector<1x1x256xf32>
    %562 = vector.shape_cast %561 : vector<1x1x256xf32> to vector<1x256xf32>
    %563 = vector.broadcast %562 : vector<1x256xf32> to vector<2x256xf32>
    %564 = arith.mulf %560, %563 : vector<2x256xf32>
    %c5_554 = arith.constant 5 : index
    %c0_555 = arith.constant 0 : index
    %c0_556 = arith.constant 0 : index
    %565 = vector.load %arg21[%c5_554, %c0_555, %c0_556] : memref<9x4x2xf32, #tpu.memory_space<vmem>>, vector<1x4x2xf32>
    %566 = vector.shape_cast %565 : vector<1x4x2xf32> to vector<4x2xf32>
    %cst_557 = arith.constant dense<0.000000e+00> : vector<4x256xf32>
    %567 = tpu.matmul %566, %564, %cst_557 {dimension_numbers = #tpu.dot_dimension_numbers<[1], [0], [0], [1], [0, 0, 1, 1], [], []>} : vector<4x2xf32>, vector<2x256xf32>, vector<4x256xf32> -> vector<4x256xf32>
    %568 = arith.addf %559, %567 : vector<4x256xf32>
    %c0_558 = arith.constant 0 : index
    %c143_559 = arith.constant 143 : index
    %569 = vector.load %arg24[%c0_558, %c143_559] : memref<4x512xf32, #tpu.memory_space<vmem>>, vector<2x256xf32>
    %c6_560 = arith.constant 6 : index
    %c0_561 = arith.constant 0 : index
    %c0_562 = arith.constant 0 : index
    %570 = vector.load %arg4[%c6_560, %c0_561, %c0_562] : memref<9x1x256xf32, #tpu.memory_space<vmem>>, vector<1x1x256xf32>
    %571 = vector.shape_cast %570 : vector<1x1x256xf32> to vector<1x256xf32>
    %572 = vector.broadcast %571 : vector<1x256xf32> to vector<2x256xf32>
    %573 = arith.mulf %569, %572 : vector<2x256xf32>
    %c6_563 = arith.constant 6 : index
    %c0_564 = arith.constant 0 : index
    %c0_565 = arith.constant 0 : index
    %574 = vector.load %arg21[%c6_563, %c0_564, %c0_565] : memref<9x4x2xf32, #tpu.memory_space<vmem>>, vector<1x4x2xf32>
    %575 = vector.shape_cast %574 : vector<1x4x2xf32> to vector<4x2xf32>
    %cst_566 = arith.constant dense<0.000000e+00> : vector<4x256xf32>
    %576 = tpu.matmul %575, %573, %cst_566 {dimension_numbers = #tpu.dot_dimension_numbers<[1], [0], [0], [1], [0, 0, 1, 1], [], []>} : vector<4x2xf32>, vector<2x256xf32>, vector<4x256xf32> -> vector<4x256xf32>
    %577 = arith.addf %568, %576 : vector<4x256xf32>
    %c0_567 = arith.constant 0 : index
    %c144_568 = arith.constant 144 : index
    %578 = vector.load %arg24[%c0_567, %c144_568] : memref<4x512xf32, #tpu.memory_space<vmem>>, vector<2x256xf32>
    %c7_569 = arith.constant 7 : index
    %c0_570 = arith.constant 0 : index
    %c0_571 = arith.constant 0 : index
    %579 = vector.load %arg4[%c7_569, %c0_570, %c0_571] : memref<9x1x256xf32, #tpu.memory_space<vmem>>, vector<1x1x256xf32>
    %580 = vector.shape_cast %579 : vector<1x1x256xf32> to vector<1x256xf32>
    %581 = vector.broadcast %580 : vector<1x256xf32> to vector<2x256xf32>
    %582 = arith.mulf %578, %581 : vector<2x256xf32>
    %c7_572 = arith.constant 7 : index
    %c0_573 = arith.constant 0 : index
    %c0_574 = arith.constant 0 : index
    %583 = vector.load %arg21[%c7_572, %c0_573, %c0_574] : memref<9x4x2xf32, #tpu.memory_space<vmem>>, vector<1x4x2xf32>
    %584 = vector.shape_cast %583 : vector<1x4x2xf32> to vector<4x2xf32>
    %cst_575 = arith.constant dense<0.000000e+00> : vector<4x256xf32>
    %585 = tpu.matmul %584, %582, %cst_575 {dimension_numbers = #tpu.dot_dimension_numbers<[1], [0], [0], [1], [0, 0, 1, 1], [], []>} : vector<4x2xf32>, vector<2x256xf32>, vector<4x256xf32> -> vector<4x256xf32>
    %586 = arith.addf %577, %585 : vector<4x256xf32>
    %c0_576 = arith.constant 0 : index
    %c145_577 = arith.constant 145 : index
    %587 = vector.load %arg24[%c0_576, %c145_577] : memref<4x512xf32, #tpu.memory_space<vmem>>, vector<2x256xf32>
    %c8_578 = arith.constant 8 : index
    %c0_579 = arith.constant 0 : index
    %c0_580 = arith.constant 0 : index
    %588 = vector.load %arg4[%c8_578, %c0_579, %c0_580] : memref<9x1x256xf32, #tpu.memory_space<vmem>>, vector<1x1x256xf32>
    %589 = vector.shape_cast %588 : vector<1x1x256xf32> to vector<1x256xf32>
    %590 = vector.broadcast %589 : vector<1x256xf32> to vector<2x256xf32>
    %591 = arith.mulf %587, %590 : vector<2x256xf32>
    %c8_581 = arith.constant 8 : index
    %c0_582 = arith.constant 0 : index
    %c0_583 = arith.constant 0 : index
    %592 = vector.load %arg21[%c8_581, %c0_582, %c0_583] : memref<9x4x2xf32, #tpu.memory_space<vmem>>, vector<1x4x2xf32>
    %593 = vector.shape_cast %592 : vector<1x4x2xf32> to vector<4x2xf32>
    %cst_584 = arith.constant dense<0.000000e+00> : vector<4x256xf32>
    %594 = tpu.matmul %593, %591, %cst_584 {dimension_numbers = #tpu.dot_dimension_numbers<[1], [0], [0], [1], [0, 0, 1, 1], [], []>} : vector<4x2xf32>, vector<2x256xf32>, vector<4x256xf32> -> vector<4x256xf32>
    %595 = arith.addf %586, %594 : vector<4x256xf32>
    %cst_585 = arith.constant 0.000000e+00 : f32
    %596 = vector.broadcast %cst_585 : f32 to vector<4x256xf32>
    %597 = arith.cmpf oge, %595, %596 : vector<4x256xf32>
    %cst_586 = arith.constant 2.000000e-01 : f32
    %598 = vector.broadcast %cst_586 : f32 to vector<4x256xf32>
    %599 = arith.mulf %595, %598 : vector<4x256xf32>
    %600 = arith.select %597, %595, %599 : vector<4x256xi1>, vector<4x256xf32>
    %cst_587 = arith.constant 0.000000e+00 : f32
    %601 = vector.broadcast %cst_587 : f32 to vector<4x256xf32>
    %c0_588 = arith.constant 0 : index
    %c128_589 = arith.constant 128 : index
    %602 = vector.load %arg24[%c0_588, %c128_589] : memref<4x512xf32, #tpu.memory_space<vmem>>, vector<4x256xf32>
    tpu.vector_store %arg24[%c0_588, %c128_589], %600 {strides = array<i32>} : memref<4x512xf32, #tpu.memory_space<vmem>>, vector<4x256xf32>,
    %c0_590 = arith.constant 0 : index
    %c111_591 = arith.constant 111 : index
    %603 = vector.load %arg24[%c0_590, %c111_591] : memref<4x512xf32, #tpu.memory_space<vmem>>, vector<4x256xf32>
    %c0_592 = arith.constant 0 : index
    %c0_593 = arith.constant 0 : index
    %c0_594 = arith.constant 0 : index
    %604 = vector.load %arg4[%c0_592, %c0_593, %c0_594] : memref<9x1x256xf32, #tpu.memory_space<vmem>>, vector<1x1x256xf32>
    %605 = vector.shape_cast %604 : vector<1x1x256xf32> to vector<1x256xf32>
    %606 = vector.broadcast %605 : vector<1x256xf32> to vector<4x256xf32>
    %607 = arith.mulf %603, %606 : vector<4x256xf32>
    %c0_595 = arith.constant 0 : index
    %c0_596 = arith.constant 0 : index
    %c0_597 = arith.constant 0 : index
    %608 = vector.load %arg22[%c0_595, %c0_596, %c0_597] : memref<9x4x4xf32, #tpu.memory_space<vmem>>, vector<1x4x4xf32>
    %609 = vector.shape_cast %608 : vector<1x4x4xf32> to vector<4x4xf32>
    %cst_598 = arith.constant dense<0.000000e+00> : vector<4x256xf32>
    %610 = tpu.matmul %609, %607, %cst_598 {dimension_numbers = #tpu.dot_dimension_numbers<[1], [0], [0], [1], [0, 0, 1, 1], [], []>} : vector<4x4xf32>, vector<4x256xf32>, vector<4x256xf32> -> vector<4x256xf32>
    %611 = arith.addf %601, %610 : vector<4x256xf32>
    %c0_599 = arith.constant 0 : index
    %c112_600 = arith.constant 112 : index
    %612 = vector.load %arg24[%c0_599, %c112_600] : memref<4x512xf32, #tpu.memory_space<vmem>>, vector<4x256xf32>
    %c1_601 = arith.constant 1 : index
    %c0_602 = arith.constant 0 : index
    %c0_603 = arith.constant 0 : index
    %613 = vector.load %arg4[%c1_601, %c0_602, %c0_603] : memref<9x1x256xf32, #tpu.memory_space<vmem>>, vector<1x1x256xf32>
    %614 = vector.shape_cast %613 : vector<1x1x256xf32> to vector<1x256xf32>
    %615 = vector.broadcast %614 : vector<1x256xf32> to vector<4x256xf32>
    %616 = arith.mulf %612, %615 : vector<4x256xf32>
    %c1_604 = arith.constant 1 : index
    %c0_605 = arith.constant 0 : index
    %c0_606 = arith.constant 0 : index
    %617 = vector.load %arg22[%c1_604, %c0_605, %c0_606] : memref<9x4x4xf32, #tpu.memory_space<vmem>>, vector<1x4x4xf32>
    %618 = vector.shape_cast %617 : vector<1x4x4xf32> to vector<4x4xf32>
    %cst_607 = arith.constant dense<0.000000e+00> : vector<4x256xf32>
    %619 = tpu.matmul %618, %616, %cst_607 {dimension_numbers = #tpu.dot_dimension_numbers<[1], [0], [0], [1], [0, 0, 1, 1], [], []>} : vector<4x4xf32>, vector<4x256xf32>, vector<4x256xf32> -> vector<4x256xf32>
    %620 = arith.addf %611, %619 : vector<4x256xf32>
    %c0_608 = arith.constant 0 : index
    %c113_609 = arith.constant 113 : index
    %621 = vector.load %arg24[%c0_608, %c113_609] : memref<4x512xf32, #tpu.memory_space<vmem>>, vector<4x256xf32>
    %c2_610 = arith.constant 2 : index
    %c0_611 = arith.constant 0 : index
    %c0_612 = arith.constant 0 : index
    %622 = vector.load %arg4[%c2_610, %c0_611, %c0_612] : memref<9x1x256xf32, #tpu.memory_space<vmem>>, vector<1x1x256xf32>
    %623 = vector.shape_cast %622 : vector<1x1x256xf32> to vector<1x256xf32>
    %624 = vector.broadcast %623 : vector<1x256xf32> to vector<4x256xf32>
    %625 = arith.mulf %621, %624 : vector<4x256xf32>
    %c2_613 = arith.constant 2 : index
    %c0_614 = arith.constant 0 : index
    %c0_615 = arith.constant 0 : index
    %626 = vector.load %arg22[%c2_613, %c0_614, %c0_615] : memref<9x4x4xf32, #tpu.memory_space<vmem>>, vector<1x4x4xf32>
    %627 = vector.shape_cast %626 : vector<1x4x4xf32> to vector<4x4xf32>
    %cst_616 = arith.constant dense<0.000000e+00> : vector<4x256xf32>
    %628 = tpu.matmul %627, %625, %cst_616 {dimension_numbers = #tpu.dot_dimension_numbers<[1], [0], [0], [1], [0, 0, 1, 1], [], []>} : vector<4x4xf32>, vector<4x256xf32>, vector<4x256xf32> -> vector<4x256xf32>
    %629 = arith.addf %620, %628 : vector<4x256xf32>
    %c0_617 = arith.constant 0 : index
    %c127_618 = arith.constant 127 : index
    %630 = vector.load %arg24[%c0_617, %c127_618] : memref<4x512xf32, #tpu.memory_space<vmem>>, vector<4x256xf32>
    %c3_619 = arith.constant 3 : index
    %c0_620 = arith.constant 0 : index
    %c0_621 = arith.constant 0 : index
    %631 = vector.load %arg4[%c3_619, %c0_620, %c0_621] : memref<9x1x256xf32, #tpu.memory_space<vmem>>, vector<1x1x256xf32>
    %632 = vector.shape_cast %631 : vector<1x1x256xf32> to vector<1x256xf32>
    %633 = vector.broadcast %632 : vector<1x256xf32> to vector<4x256xf32>
    %634 = arith.mulf %630, %633 : vector<4x256xf32>
    %c3_622 = arith.constant 3 : index
    %c0_623 = arith.constant 0 : index
    %c0_624 = arith.constant 0 : index
    %635 = vector.load %arg22[%c3_622, %c0_623, %c0_624] : memref<9x4x4xf32, #tpu.memory_space<vmem>>, vector<1x4x4xf32>
    %636 = vector.shape_cast %635 : vector<1x4x4xf32> to vector<4x4xf32>
    %cst_625 = arith.constant dense<0.000000e+00> : vector<4x256xf32>
    %637 = tpu.matmul %636, %634, %cst_625 {dimension_numbers = #tpu.dot_dimension_numbers<[1], [0], [0], [1], [0, 0, 1, 1], [], []>} : vector<4x4xf32>, vector<4x256xf32>, vector<4x256xf32> -> vector<4x256xf32>
    %638 = arith.addf %629, %637 : vector<4x256xf32>
    %c0_626 = arith.constant 0 : index
    %c128_627 = arith.constant 128 : index
    %639 = vector.load %arg24[%c0_626, %c128_627] : memref<4x512xf32, #tpu.memory_space<vmem>>, vector<4x256xf32>
    %c4_628 = arith.constant 4 : index
    %c0_629 = arith.constant 0 : index
    %c0_630 = arith.constant 0 : index
    %640 = vector.load %arg22[%c4_628, %c0_629, %c0_630] : memref<9x4x4xf32, #tpu.memory_space<vmem>>, vector<1x4x4xf32>
    %641 = vector.shape_cast %640 : vector<1x4x4xf32> to vector<4x4xf32>
    %cst_631 = arith.constant dense<0.000000e+00> : vector<4x256xf32>
    %642 = tpu.matmul %641, %639, %cst_631 {dimension_numbers = #tpu.dot_dimension_numbers<[1], [0], [0], [1], [0, 0, 1, 1], [], []>} : vector<4x4xf32>, vector<4x256xf32>, vector<4x256xf32> -> vector<4x256xf32>
    %643 = arith.addf %638, %642 : vector<4x256xf32>
    %c0_632 = arith.constant 0 : index
    %c129_633 = arith.constant 129 : index
    %644 = vector.load %arg24[%c0_632, %c129_633] : memref<4x512xf32, #tpu.memory_space<vmem>>, vector<4x256xf32>
    %c5_634 = arith.constant 5 : index
    %c0_635 = arith.constant 0 : index
    %c0_636 = arith.constant 0 : index
    %645 = vector.load %arg4[%c5_634, %c0_635, %c0_636] : memref<9x1x256xf32, #tpu.memory_space<vmem>>, vector<1x1x256xf32>
    %646 = vector.shape_cast %645 : vector<1x1x256xf32> to vector<1x256xf32>
    %647 = vector.broadcast %646 : vector<1x256xf32> to vector<4x256xf32>
    %648 = arith.mulf %644, %647 : vector<4x256xf32>
    %c5_637 = arith.constant 5 : index
    %c0_638 = arith.constant 0 : index
    %c0_639 = arith.constant 0 : index
    %649 = vector.load %arg22[%c5_637, %c0_638, %c0_639] : memref<9x4x4xf32, #tpu.memory_space<vmem>>, vector<1x4x4xf32>
    %650 = vector.shape_cast %649 : vector<1x4x4xf32> to vector<4x4xf32>
    %cst_640 = arith.constant dense<0.000000e+00> : vector<4x256xf32>
    %651 = tpu.matmul %650, %648, %cst_640 {dimension_numbers = #tpu.dot_dimension_numbers<[1], [0], [0], [1], [0, 0, 1, 1], [], []>} : vector<4x4xf32>, vector<4x256xf32>, vector<4x256xf32> -> vector<4x256xf32>
    %652 = arith.addf %643, %651 : vector<4x256xf32>
    %c0_641 = arith.constant 0 : index
    %c143_642 = arith.constant 143 : index
    %653 = vector.load %arg24[%c0_641, %c143_642] : memref<4x512xf32, #tpu.memory_space<vmem>>, vector<4x256xf32>
    %c6_643 = arith.constant 6 : index
    %c0_644 = arith.constant 0 : index
    %c0_645 = arith.constant 0 : index
    %654 = vector.load %arg4[%c6_643, %c0_644, %c0_645] : memref<9x1x256xf32, #tpu.memory_space<vmem>>, vector<1x1x256xf32>
    %655 = vector.shape_cast %654 : vector<1x1x256xf32> to vector<1x256xf32>
    %656 = vector.broadcast %655 : vector<1x256xf32> to vector<4x256xf32>
    %657 = arith.mulf %653, %656 : vector<4x256xf32>
    %c6_646 = arith.constant 6 : index
    %c0_647 = arith.constant 0 : index
    %c0_648 = arith.constant 0 : index
    %658 = vector.load %arg22[%c6_646, %c0_647, %c0_648] : memref<9x4x4xf32, #tpu.memory_space<vmem>>, vector<1x4x4xf32>
    %659 = vector.shape_cast %658 : vector<1x4x4xf32> to vector<4x4xf32>
    %cst_649 = arith.constant dense<0.000000e+00> : vector<4x256xf32>
    %660 = tpu.matmul %659, %657, %cst_649 {dimension_numbers = #tpu.dot_dimension_numbers<[1], [0], [0], [1], [0, 0, 1, 1], [], []>} : vector<4x4xf32>, vector<4x256xf32>, vector<4x256xf32> -> vector<4x256xf32>
    %661 = arith.addf %652, %660 : vector<4x256xf32>
    %c0_650 = arith.constant 0 : index
    %c144_651 = arith.constant 144 : index
    %662 = vector.load %arg24[%c0_650, %c144_651] : memref<4x512xf32, #tpu.memory_space<vmem>>, vector<4x256xf32>
    %c7_652 = arith.constant 7 : index
    %c0_653 = arith.constant 0 : index
    %c0_654 = arith.constant 0 : index
    %663 = vector.load %arg4[%c7_652, %c0_653, %c0_654] : memref<9x1x256xf32, #tpu.memory_space<vmem>>, vector<1x1x256xf32>
    %664 = vector.shape_cast %663 : vector<1x1x256xf32> to vector<1x256xf32>
    %665 = vector.broadcast %664 : vector<1x256xf32> to vector<4x256xf32>
    %666 = arith.mulf %662, %665 : vector<4x256xf32>
    %c7_655 = arith.constant 7 : index
    %c0_656 = arith.constant 0 : index
    %c0_657 = arith.constant 0 : index
    %667 = vector.load %arg22[%c7_655, %c0_656, %c0_657] : memref<9x4x4xf32, #tpu.memory_space<vmem>>, vector<1x4x4xf32>
    %668 = vector.shape_cast %667 : vector<1x4x4xf32> to vector<4x4xf32>
    %cst_658 = arith.constant dense<0.000000e+00> : vector<4x256xf32>
    %669 = tpu.matmul %668, %666, %cst_658 {dimension_numbers = #tpu.dot_dimension_numbers<[1], [0], [0], [1], [0, 0, 1, 1], [], []>} : vector<4x4xf32>, vector<4x256xf32>, vector<4x256xf32> -> vector<4x256xf32>
    %670 = arith.addf %661, %669 : vector<4x256xf32>
    %c0_659 = arith.constant 0 : index
    %c145_660 = arith.constant 145 : index
    %671 = vector.load %arg24[%c0_659, %c145_660] : memref<4x512xf32, #tpu.memory_space<vmem>>, vector<4x256xf32>
    %c8_661 = arith.constant 8 : index
    %c0_662 = arith.constant 0 : index
    %c0_663 = arith.constant 0 : index
    %672 = vector.load %arg4[%c8_661, %c0_662, %c0_663] : memref<9x1x256xf32, #tpu.memory_space<vmem>>, vector<1x1x256xf32>
    %673 = vector.shape_cast %672 : vector<1x1x256xf32> to vector<1x256xf32>
    %674 = vector.broadcast %673 : vector<1x256xf32> to vector<4x256xf32>
    %675 = arith.mulf %671, %674 : vector<4x256xf32>
    %c8_664 = arith.constant 8 : index
    %c0_665 = arith.constant 0 : index
    %c0_666 = arith.constant 0 : index
    %676 = vector.load %arg22[%c8_664, %c0_665, %c0_666] : memref<9x4x4xf32, #tpu.memory_space<vmem>>, vector<1x4x4xf32>
    %677 = vector.shape_cast %676 : vector<1x4x4xf32> to vector<4x4xf32>
    %cst_667 = arith.constant dense<0.000000e+00> : vector<4x256xf32>
    %678 = tpu.matmul %677, %675, %cst_667 {dimension_numbers = #tpu.dot_dimension_numbers<[1], [0], [0], [1], [0, 0, 1, 1], [], []>} : vector<4x4xf32>, vector<4x256xf32>, vector<4x256xf32> -> vector<4x256xf32>
    %679 = arith.addf %670, %678 : vector<4x256xf32>
    %680 = arith.subf %345, %176 : vector<4x256xf32>
    %681 = arith.mulf %680, %679 : vector<4x256xf32>
    %682 = arith.addf %176, %681 : vector<4x256xf32>
    %c0_668 = arith.constant 0 : index
    %c0_669 = arith.constant 0 : index
    %c0_670 = arith.constant 0 : index
    %683 = vector.load %arg23[%c0_668, %c0_669, %c0_670] : memref<1x4x256xf32, #tpu.memory_space<vmem>>, vector<1x4x256xf32>
    %684 = vector.shape_cast %683 : vector<1x4x256xf32> to vector<4x256xf32>
    %685 = vector.shape_cast %682 : vector<4x256xf32> to vector<1x4x256xf32>
    tpu.vector_store %arg23[%c0_668, %c0_669, %c0_670], %685 {strides = array<i32>} : memref<1x4x256xf32, #tpu.memory_space<vmem>>, vector<1x4x256xf32>,
    return
  }
  func.func @transform_0(%arg0: i32) -> (i32, i32, i32) {
    %c0_i32 = arith.constant 0 : i32
    %c0_i32_0 = arith.constant 0 : i32
    %c0_i32_1 = arith.constant 0 : i32
    return %arg0, %c0_i32, %c0_i32_0 : i32, i32, i32
  }
  func.func @transform_1(%arg0: i32) -> (i32, i32, i32) {
    %c0_i32 = arith.constant 0 : i32
    %c0_i32_0 = arith.constant 0 : i32
    %c0_i32_1 = arith.constant 0 : i32
    return %arg0, %c0_i32, %c0_i32_0 : i32, i32, i32
  }
  func.func @transform_2(%arg0: i32) -> (i32, i32, i32) {
    %c0_i32 = arith.constant 0 : i32
    %c0_i32_0 = arith.constant 0 : i32
    %c0_i32_1 = arith.constant 0 : i32
    return %arg0, %c0_i32, %c0_i32_0 : i32, i32, i32
  }
  func.func @transform_3(%arg0: i32) -> (i32, i32, i32) {
    %c0_i32 = arith.constant 0 : i32
    %c0_i32_0 = arith.constant 0 : i32
    %c0_i32_1 = arith.constant 0 : i32
    %c0_i32_2 = arith.constant 0 : i32
    return %c0_i32, %c0_i32_0, %c0_i32_1 : i32, i32, i32
  }
  func.func @transform_4(%arg0: i32) -> (i32, i32, i32) {
    %c0_i32 = arith.constant 0 : i32
    %c0_i32_0 = arith.constant 0 : i32
    %c0_i32_1 = arith.constant 0 : i32
    %c0_i32_2 = arith.constant 0 : i32
    return %c0_i32, %c0_i32_0, %c0_i32_1 : i32, i32, i32
  }
  func.func @transform_5(%arg0: i32) -> (i32, i32) {
    %c0_i32 = arith.constant 0 : i32
    %c0_i32_0 = arith.constant 0 : i32
    %c0_i32_1 = arith.constant 0 : i32
    return %c0_i32, %c0_i32_0 : i32, i32
  }
  func.func @transform_6(%arg0: i32) -> (i32, i32, i32) {
    %c0_i32 = arith.constant 0 : i32
    %c0_i32_0 = arith.constant 0 : i32
    %c0_i32_1 = arith.constant 0 : i32
    %c0_i32_2 = arith.constant 0 : i32
    return %c0_i32, %c0_i32_0, %c0_i32_1 : i32, i32, i32
  }
  func.func @transform_7(%arg0: i32) -> (i32, i32) {
    %c0_i32 = arith.constant 0 : i32
    %c0_i32_0 = arith.constant 0 : i32
    %c0_i32_1 = arith.constant 0 : i32
    return %c0_i32, %c0_i32_0 : i32, i32
  }
  func.func @transform_8(%arg0: i32) -> (i32, i32, i32) {
    %c0_i32 = arith.constant 0 : i32
    %c0_i32_0 = arith.constant 0 : i32
    %c0_i32_1 = arith.constant 0 : i32
    %c0_i32_2 = arith.constant 0 : i32
    return %c0_i32, %c0_i32_0, %c0_i32_1 : i32, i32, i32
  }
  func.func @transform_9(%arg0: i32) -> (i32, i32) {
    %c0_i32 = arith.constant 0 : i32
    %c0_i32_0 = arith.constant 0 : i32
    %c0_i32_1 = arith.constant 0 : i32
    return %c0_i32, %c0_i32_0 : i32, i32
  }
  func.func @transform_10(%arg0: i32) -> (i32, i32, i32) {
    %c0_i32 = arith.constant 0 : i32
    %c0_i32_0 = arith.constant 0 : i32
    %c0_i32_1 = arith.constant 0 : i32
    %c0_i32_2 = arith.constant 0 : i32
    return %c0_i32, %c0_i32_0, %c0_i32_1 : i32, i32, i32
  }
  func.func @transform_11(%arg0: i32) -> (i32, i32) {
    %c0_i32 = arith.constant 0 : i32
    %c0_i32_0 = arith.constant 0 : i32
    %c0_i32_1 = arith.constant 0 : i32
    return %c0_i32, %c0_i32_0 : i32, i32
  }
  func.func @transform_12(%arg0: i32) -> (i32, i32) {
    %c0_i32 = arith.constant 0 : i32
    %c0_i32_0 = arith.constant 0 : i32
    %c0_i32_1 = arith.constant 0 : i32
    return %c0_i32, %c0_i32_0 : i32, i32
  }
  func.func @transform_13(%arg0: i32) -> (i32, i32) {
    %c0_i32 = arith.constant 0 : i32
    %c0_i32_0 = arith.constant 0 : i32
    %c0_i32_1 = arith.constant 0 : i32
    return %c0_i32, %c0_i32_0 : i32, i32
  }
  func.func @transform_14(%arg0: i32) -> (i32, i32) {
    %c0_i32 = arith.constant 0 : i32
    %c0_i32_0 = arith.constant 0 : i32
    %c0_i32_1 = arith.constant 0 : i32
    return %c0_i32, %c0_i32_0 : i32, i32
  }
  func.func @transform_15(%arg0: i32) -> (i32, i32) {
    %c0_i32 = arith.constant 0 : i32
    %c0_i32_0 = arith.constant 0 : i32
    %c0_i32_1 = arith.constant 0 : i32
    return %c0_i32, %c0_i32_0 : i32, i32
  }
  func.func @transform_16(%arg0: i32) -> (i32, i32) {
    %c0_i32 = arith.constant 0 : i32
    %c0_i32_0 = arith.constant 0 : i32
    %c0_i32_1 = arith.constant 0 : i32
    return %c0_i32, %c0_i32_0 : i32, i32
  }
  func.func @transform_17(%arg0: i32) -> (i32, i32) {
    %c0_i32 = arith.constant 0 : i32
    %c0_i32_0 = arith.constant 0 : i32
    %c0_i32_1 = arith.constant 0 : i32
    return %c0_i32, %c0_i32_0 : i32, i32
  }
  func.func @transform_18(%arg0: i32) -> (i32, i32, i32) {
    %c0_i32 = arith.constant 0 : i32
    %c0_i32_0 = arith.constant 0 : i32
    %c0_i32_1 = arith.constant 0 : i32
    %c0_i32_2 = arith.constant 0 : i32
    return %c0_i32, %c0_i32_0, %c0_i32_1 : i32, i32, i32
  }
  func.func @transform_19(%arg0: i32) -> (i32, i32, i32) {
    %c0_i32 = arith.constant 0 : i32
    %c0_i32_0 = arith.constant 0 : i32
    %c0_i32_1 = arith.constant 0 : i32
    %c0_i32_2 = arith.constant 0 : i32
    return %c0_i32, %c0_i32_0, %c0_i32_1 : i32, i32, i32
  }
  func.func @transform_20(%arg0: i32) -> (i32, i32, i32) {
    %c0_i32 = arith.constant 0 : i32
    %c0_i32_0 = arith.constant 0 : i32
    %c0_i32_1 = arith.constant 0 : i32
    %c0_i32_2 = arith.constant 0 : i32
    return %c0_i32, %c0_i32_0, %c0_i32_1 : i32, i32, i32
  }
  func.func @transform_21(%arg0: i32) -> (i32, i32, i32) {
    %c0_i32 = arith.constant 0 : i32
    %c0_i32_0 = arith.constant 0 : i32
    %c0_i32_1 = arith.constant 0 : i32
    %c0_i32_2 = arith.constant 0 : i32
    return %c0_i32, %c0_i32_0, %c0_i32_1 : i32, i32, i32
  }
  func.func @transform_22(%arg0: i32) -> (i32, i32, i32) {
    %c0_i32 = arith.constant 0 : i32
    %c0_i32_0 = arith.constant 0 : i32
    %c0_i32_1 = arith.constant 0 : i32
    return %arg0, %c0_i32, %c0_i32_0 : i32, i32, i32
  }
}

</mosaic_0001>

<bundles_post_ra>
// kernel: fasff_forward.1
= control target key start
LH: loop header
LB: loop body
LE: loop exit
PB: predicated region body
PF: predicated region fallthrough
CT: control target
= control target key end

     0   :  { %s11297_s0 = inlined_call_operand.vmem [shape: f32[2,4,256], index: 0, kind: input, shape index: {}]   ;;  %s11298_s1 = inlined_call_operand.vmem [shape: f32[2,4,256], index: 1, kind: input, shape index: {}]   ;;  %s11299_s2 = inlined_call_operand.vmem [shape: f32[2,4,256], index: 2, kind: input, shape index: {}]   ;;  %s11300_s3 = inlined_call_operand.vmem [shape: f32[9,1,256], index: 3, kind: input, shape index: {}]   ;;  %s11301_s4 = inlined_call_operand.vmem [shape: f32[9,4,4], index: 4, kind: input, shape index: {}]   ;;  %s11302_s5 = inlined_call_operand.vmem [shape: f32[4,1], index: 5, kind: input, shape index: {}]   ;;  %s11303_s6 = inlined_call_operand.vmem [shape: f32[9,4,4], index: 6, kind: input, shape index: {}]   ;;  %s11304_s7 = inlined_call_operand.vmem [shape: f32[4,1], index: 7, kind: input, shape index: {}]   ;;  %s11305_s8 = inlined_call_operand.vmem [shape: f32[9,4,4], index: 8, kind: input, shape index: {}]   ;;  %s11306_s9 = inlined_call_operand.vmem [shape: f32[4,1], index: 9, kind: input, shape index: {}]   ;;  %s11307_s10 = inlined_call_operand.vmem [shape: f32[9,4,4], index: 10, kind: input, shape index: {}]   ;;  %s11308_s11 = inlined_call_operand.vmem [shape: f32[4,1], index: 11, kind: input, shape index: {}]   ;;  %s11309_s12 = inlined_call_operand.vmem [shape: f32[2,4], index: 12, kind: input, shape index: {}]   ;;  %s11310_s13 = inlined_call_operand.vmem [shape: f32[2,1], index: 13, kind: input, shape index: {}]   ;;  %s11311_s14 = inlined_call_operand.vmem [shape: f32[2,4], index: 14, kind: input, shape index: {}]   ;;  %s11312_s15 = inlined_call_operand.vmem [shape: f32[2,1], index: 15, kind: input, shape index: {}]   ;;  %s11313_s16 = inlined_call_operand.vmem [shape: f32[2,4], index: 16, kind: input, shape index: {}]   ;;  %s11314_s17 = inlined_call_operand.vmem [shape: f32[2,1], index: 17, kind: input, shape index: {}]   ;;  %s11315_s18 = inlined_call_operand.vmem [shape: f32[9,4,2], index: 18, kind: input, shape index: {}]   ;;  %s11316_s19 = inlined_call_operand.vmem [shape: f32[9,4,2], index: 19, kind: input, shape index: {}]   ;;  %s11317_s20 = inlined_call_operand.vmem [shape: f32[9,4,2], index: 20, kind: input, shape index: {}]   ;;  %s11318_s21 = inlined_call_operand.vmem [shape: f32[9,4,4], index: 21, kind: input, shape index: {}]   ;;  %s11319_s22 = inlined_call_operand.vmem [shape: f32[2,4,256], index: 22, kind: output, shape index: {}]  }
   0x1   :  { %11343 = sst [smem:[#allocation4_spill]] %s11297_s0 }
   0x2   :  { %11344 = sst [smem:[#allocation5_spill]] %s11298_s1 }
   0x3   :  { %11345 = sst [smem:[#allocation6_spill]] %s11299_s2 }
   0x4   :  { %11346 = sst [smem:[#allocation7_spill]] %s11300_s3  ;;  %s9771_s3 = smov 0  }
   0x5   :  { %11347 = sst [smem:[#allocation8_spill]] %s11301_s4 }
   0x6   :  { %11348 = sst [smem:[#allocation9_spill]] %s11302_s5 }
   0x7   :  { %11349 = sst [smem:[#allocation10_spill]] %s11303_s6 }
   0x8   :  { %11350 = sst [smem:[#allocation11_spill]] %s11306_s9 }
   0x9   :  { %11351 = sst [smem:[#allocation12_spill]] %s11317_s20 }
   0xa   :  { %11352 = sst [smem:[#allocation13_spill]] %s11318_s21 }
   0xb   :  { %11353 = sst [smem:[#allocation14_spill]] %s11319_s22 }
   0xc LB: > { %11354 = sst [smem:[#allocation3_spill]] %s9644_s3  ;;  %s9113_s28 = sadd.s32 4294967295, %s9644_s3   ;;  %s9644_s3 = sphi %s9771_s3, %s32_s3  }
   0xd   : > { %p9117_p0 = scmp.ge.s32.totalorder %s9644_s3, 1  ;;  %p632_p1 = scmp.lt.s32.totalorder %s9644_s3, 3 }
   0xf   : > { %p633_p2 = pnand %p9117_p0, %p632_p1 }
  0x10   : > { %v734_v0 = vlaneseq (!%p633_p2)  ;;  %s11355_s4 = sld [smem:[#allocation7_spill]] (!%p633_p2)  ;;  %p704_p3 = scmp.lt.s32.totalorder (!%p633_p2), %s9113_s28, 1  ;;  %v9646_v8 = vmov (!%p633_p2), 0.0   ;;  %vm768_vm0 = vcmask (!%p633_p2), 916480   ;;  %vm746_vm1 = vcmask (!%p633_p2), 908288  }
  0x11   : > { %636 = sbr.rel (%p633_p2) target bundleno = 2551 (0x9f7), region = 108  ;;  %724 = vst [vmem:[#allocation2] sm:$0xff] (!%p633_p2), %v9646_v8  ;;  %725 = vst [vmem:[#allocation2 + $0x8] sm:$0xff] (!%p633_p2), %v9646_v8  ;;  %861 = vmatprep.mubr.f32.mxu0 (!%p633_p2), %v9646_v8  ;;  %2737 = vmatprep.mubr.f32.mxu1 (!%p633_p2), %v9646_v8  ;;  %s11356_s23 = sld [smem:[#allocation4_spill]] (!%p633_p2)  ;;  %vm975_vm2 = vcmask (!%p633_p2), 924672   ;;  %vm1092_vm3 = vcmask (!%p633_p2), 1039360  }
  0x12   : > { %v735_v1 = vshrl.u32 (!%p633_p2), %v734_v0, 7  ;;  %s11339_s5 = smov (!%p633_p2), 112   ;;  %s11333_s24 = smov (!%p633_p2), 113   ;;  %vm1109_vm4 = vcmask (!%p633_p2), 7168   ;;  %vm992_vm5 = vcmask (!%p633_p2), 121856   ;;  %vm785_vm6 = vcmask (!%p633_p2), 130048  }
  0x13   : > { %s11335_s2 = smov (!%p633_p2), 111   ;;  %s11329_s27 = smov (!%p633_p2), 127   ;;  %vm877_vm7 = vcmask (!%p633_p2), 138240   ;;  %vm792_vm8 = vcmask (!%p633_p2), 1043456   ;;  %vm788_vm9 = vcmask (!%p633_p2), 31744   ;;  %vm5086_vm14 = vcmask (!%p633_p2), 1041408  }
  0x14   : > { %v9788_v5 = vsub.s32 (!%p633_p2), 0, %v735_v1  ;;  %v9790_v6 = vsub.s32 (!%p633_p2), 1, %v735_v1  ;;  %s11331_s30 = smov (!%p633_p2), 1   ;;  %s11325_s0 = smov (!%p633_p2), 15   ;;  %vm5082_vm15 = vcmask (!%p633_p2), 15360  }
  0x15   : > { %s11357_s25 = sld [smem:[#allocation9_spill]] (!%p633_p2)  ;;  %s11358_s26 = smov (!%p633_p2), 1  }
  0x16   : > { %v9126_v2 = vld [vmem:[%s11355_s4 + $0x2] sm:$0x3] (!%p633_p2)  ;;  %v732_v3 = vld [vmem:[%s11355_s4] sm:$0x3] (!%p633_p2)  ;;  %v9134_v4 = vld [vmem:[%s11355_s4 + $0x4] sm:$0x3] (!%p633_p2) }
  0x17   : > { %v9139_v7 = vld [vmem:[%s11355_s4 + $0x6] sm:$0x3] (!%p633_p2)  ;;  %v759_v9 = vrot.slane (!%p633_p2), %v9126_v2, %v9788_v5  ;;  %v763_v10 = vrot.slane (!%p633_p2), %v9126_v2, %v9790_v6  ;;  %v737_v11 = vrot.slane (!%p633_p2), %v732_v3, %v9788_v5  ;;  %v741_v12 = vrot.slane (!%p633_p2), %v732_v3, %v9790_v6  ;;  %v9148_v17 = vld [vmem:[%s11355_s4 + $0xa] sm:$0x3] (!%p633_p2)  ;;  %v9153_v19 = vld [vmem:[%s11355_s4 + $0xc] sm:$0x3] (!%p633_p2) }
  0x18   : > { %s11376_s28 = smov (!%p704_p3, %s9113_s28), 1  ;;  %v966_v13 = vrot.slane %v9134_v4, %v9788_v5  ;;  %v970_v14 = vrot.slane %v9134_v4, %v9790_v6  ;;  %v1083_v15 = vrot.slane %v9139_v7, %v9788_v5  ;;  %v1087_v16 = vrot.slane %v9139_v7, %v9790_v6  ;;  %v9158_v28 = vld [vmem:[%s11355_s4 + $0xe] sm:$0x3]  ;;  %v9163_v29 = vld [vmem:[%s11355_s4 + $0x10] sm:$0x3]  ;;  %s11360_s6 = smov 16  }
  0x19   : > { %v764_v18 = vcombine.low %v759_v9, %v763_v10  ;;  %s9813_s29 = sshll.u32 %s11376_s28, 3  ;;  %v742_v21 = vcombine.low %v737_v11, %v741_v12  ;;  %v1285_v22 = vrot.slane %v9148_v17, %v9788_v5  ;;  %v1289_v23 = vrot.slane %v9148_v17, %v9790_v6  ;;  %v1278_v12 = vld [vmem:[#allocation2 + $0xc] sm:$0xf]  ;;  %s11359_s28 = smov 127  }
  0x1a   : > { %v971_v20 = vcombine.low %v966_v13, %v970_v14  ;;  %s708_s1 = scalar_lea.vmem %s11356_s23, %s9813_s29  ;;  %v1088_v25 = vcombine.low %v1083_v15, %v1087_v16  ;;  %v1400_v26 = vrot.slane %v9153_v19, %v9788_v5  ;;  %v1404_v27 = vrot.slane %v9153_v19, %v9790_v6  ;;  %s11327_s23 = smov 16  }
  0x1b   : > { %765 = vrot.lane.b32.xlu0 %v764_v18, %s11339_s5  ;;  %v9822_v24 = vld [vmem:[%s708_s1] sm:$0xff]  ;;  %v1290_v30 = vcombine.low %v1285_v22, %v1289_v23  ;;  %v1515_v31 = vrot.slane %v9158_v28, %v9788_v5  ;;  %v1519_v32 = vrot.slane %v9158_v28, %v9790_v6  ;;  %v1630_v34 = vrot.slane %v9163_v29, %v9788_v5  ;;  %s11323_s1 = smov 17   ;;  %s11368_s9 = sld [smem:[#allocation11_spill]] }
  0x1c   : > { %972 = vrot.lane.b32.xlu1 %v971_v20, %s11333_s24  ;;  %729 = vst [vmem:[#allocation2 + $0x4] sm:$0xff] %v9822_v24  ;;  %v1405_v33 = vcombine.low %v1400_v26, %v1404_v27  ;;  %v1634_v35 = vrot.slane %v9163_v29, %v9790_v6  ;;  %v1508_v27 = vld [vmem:[#allocation2 + $0xc] sm:$0xf] }
  0x1d   : > { %v1520_v36 = vcombine.low %v1515_v31, %v1519_v32  ;;  %v1623_v32 = vld [vmem:[#allocation2 + $0xc] sm:$0xf] }
  0x1e   : > { %v1635_v37 = vcombine.low %v1630_v34, %v1634_v35  ;;  %v1737_v34 = vld [vmem:[%s11357_s25] sm:$0xf] }
  0x1f   : > { %743 = vrot.lane.b32.xlu0 %v742_v21, %s11335_s2  ;;  %v1393_v21 = vld [vmem:[#allocation2 + $0xc] sm:$0xf]  ;;  %v9168_v35 = vld [vmem:[%s11355_s4 + $0x2] sm:$0x3] }
  0x20   : > { %1089 = vrot.lane.b32.xlu1 %v1088_v25, %s11329_s27 }
  0x23   : > { %1291 = vrot.lane.b32.xlu0 %v1290_v30, %s11331_s30  ;;  %v731_v39 = vld [vmem:[#allocation2 + $0x8] sm:$0xf]  ;;  %v730_v40 = vld [vmem:[#allocation2] sm:$0xff] }
  0x24   : > { %1406 = vrot.lane.b32.xlu1 %v1405_v33, %s11325_s0  ;;  %v959_v58 = vld [vmem:[#allocation2 + $0x8] sm:$0xf] }
  0x25   : > { %v1076_v3 = vld [vmem:[#allocation2 + $0x8] sm:$0xf] }
  0x27   : > { %1521 = vrot.lane.b32.xlu0 %v1520_v36, %s11327_s23  ;;  %v9655_v36 = vmov 0  }
  0x28   : > { %1636 = vrot.lane.b32.xlu1 %v1635_v37, %s11323_s1  ;;  %9627 = vset.pattern.permute.xlu0 %v9655_v36  ;;  %v1783_v37 = vrot.slane %v9168_v35, %v9788_v5 }
  0x29   : > { %9628 = vset.pattern.permute.xlu1 %v9655_v36 }
  0x8d   : > { %v766_v38 = vpop.permute.xlu0 %765 }
  0x8e   : > { %v767_v41 = vrot.slane %v766_v38, 4  ;;  %v973_v42 = vpop.permute.xlu1 %972 }
  0x8f   : > { %v974_v48 = vrot.slane %v973_v42, 4 }
  0x90   : > { %v769_v43 = vsel %vm768_vm0, %v767_v41, %v766_v38  ;;  %v773_v44 = vmul.f32 %v767_v41, %v731_v39  ;;  %v1787_v38 = vrot.slane %v9168_v35, %v9790_v6  ;;  %v9190_v41 = vld [vmem:[%s11355_s4 + $0xa] sm:$0x3] }
  0x91   : > { %v772_v45 = vmul.f32 %v769_v43, %v730_v40  ;;  %v744_v46 = vpop.permute.xlu0 %743  ;;  %v976_v53 = vsel %vm975_vm2, %v974_v48, %v973_v42  ;;  %v980_v63 = vmul.f32 %v974_v48, %v959_v58  ;;  %v2297_v48 = vrot.slane %v9190_v41, %v9788_v5  ;;  %v9195_v58 = vld [vmem:[%s11355_s4 + $0xc] sm:$0x3] }
  0x92   : > { %v745_v47 = vrot.slane %v744_v46, 4  ;;  %783 = vrot.lane.b32.xlu1 %v773_v44, %s11327_s23  ;;  %v1090_v50 = vpop.permute.xlu1 %1089  ;;  %v979_v56 = vmul.f32 %v976_v53, %v730_v40 }
  0x93   : > { %v778_v49 = vcombine.high %v772_v45, %v772_v45  ;;  %v1091_v54 = vrot.slane %v1090_v50, 4 }
  0x94   : > { %v747_v51 = vsel %vm746_vm1, %v745_v47, %v744_v46  ;;  %v751_v59 = vmul.f32 %v745_v47, %v731_v39  ;;  %v985_v62 = vcombine.high %v979_v56, %v979_v56  ;;  %v9176_v39 = vld [vmem:[%s11355_s4 + $0x4] sm:$0x3]  ;;  %v9181_v46 = vld [vmem:[%s11355_s4 + $0x6] sm:$0x3]  ;;  %v1788_v47 = vcombine.low %v1783_v37, %v1787_v38 }
  0x95   : > { %v750_v52 = vmul.f32 %v747_v51, %v730_v40  ;;  %781 = vrot.lane.b32.xlu0 %v778_v49, %s11327_s23  ;;  %v1093_v57 = vsel %vm1092_vm3, %v1091_v54, %v1090_v50  ;;  %v1292_v60 = vpop.permute.xlu0 %1291  ;;  %v1097_v9 = vmul.f32 %v1091_v54, %v1076_v3  ;;  %v1984_v42 = vrot.slane %v9176_v39, %v9788_v5  ;;  %v9200_v50 = vld [vmem:[%s11355_s4 + $0xe] sm:$0x3] }
  0x96   : > { %v1096_v61 = vmul.f32 %v1093_v57, %v730_v40  ;;  %v1293_v0 = vrot.slane %v1292_v60, 4  ;;  %v1407_v1 = vpop.permute.xlu1 %1406  ;;  %v1758_v40 = vld [vmem:[%s11355_s4] sm:$0x3]  ;;  %v1988_v43 = vrot.slane %v9176_v39, %v9790_v6  ;;  %v2301_v49 = vrot.slane %v9190_v41, %v9790_v6 }
  0x97   : > { %v870_v55 = vcombine.high %v750_v52, %v750_v52  ;;  %v1408_v7 = vrot.slane %v1407_v1, 4  ;;  %v1763_v44 = vrot.slane %v1758_v40, %v9788_v5  ;;  %v2098_v53 = vrot.slane %v9181_v46, %v9788_v5 }
  0x98   : > { %v1102_v2 = vcombine.high %v1096_v61, %v1096_v61  ;;  %v1294_v4 = vsel %vm1109_vm4, %v1293_v0, %v1292_v60  ;;  %v1298_v16 = vmul.f32 %v1293_v0, %v1278_v12  ;;  %v1989_v51 = vcombine.low %v1984_v42, %v1988_v43 }
  0x99   : > { %779 = vrot.lane.b32.xlu0 %v772_v45, %s11327_s23  ;;  %873 = vrot.lane.b32.xlu1 %v870_v55, %s11323_s1  ;;  %v1297_v10 = vmul.f32 %v1294_v4, %v9822_v24  ;;  %v1409_v11 = vsel %vm992_vm5, %v1408_v7, %v1407_v1  ;;  %v1522_v13 = vpop.permute.xlu0 %1521  ;;  %v1413_v25 = vmul.f32 %v1408_v7, %v1393_v21  ;;  %s11367_s23 = sld [smem:[#allocation10_spill]] }
  0x9a   : > { %v1412_v14 = vmul.f32 %v1409_v11, %v9822_v24  ;;  %v1523_v17 = vrot.slane %v1522_v13, 4  ;;  %v1637_v18 = vpop.permute.xlu1 %1636  ;;  %v1767_v45 = vrot.slane %v1758_v40, %v9790_v6  ;;  %v2102_v54 = vrot.slane %v9181_v46, %v9790_v6 }
  0x9b   : > { %v1303_v15 = vcombine.high %v1297_v10, %v1297_v10  ;;  %v1638_v22 = vrot.slane %v1637_v18, 4  ;;  %v2302_v55 = vcombine.low %v2297_v48, %v2301_v49  ;;  %v2529_v57 = vrot.slane %v9200_v50, %v9790_v6 }
  0x9c   : > { %v1418_v19 = vcombine.high %v1412_v14, %v1412_v14  ;;  %v1524_v20 = vsel %vm785_vm6, %v1523_v17, %v1522_v13  ;;  %v1528_v30 = vmul.f32 %v1523_v17, %v1508_v27  ;;  %v2411_v60 = vrot.slane %v9195_v58, %v9788_v5 }
  0x9d   : > { %875 = vrot.lane.b32.xlu0 %v751_v59, %s11323_s1  ;;  %871 = vrot.lane.b32.xlu1 %v750_v52, %s11323_s1  ;;  %v1527_v23 = vmul.f32 %v1524_v20, %v9822_v24  ;;  %v1639_v26 = vsel %vm877_vm7, %v1638_v22, %v1637_v18  ;;  %v1643_v33 = vmul.f32 %v1638_v22, %v1623_v32  ;;  %s11363_s1 = sld [smem:[#allocation5_spill]] }
  0x9e   : > { %v1642_v28 = vmul.f32 %v1639_v26, %v9822_v24  ;;  %v1768_v52 = vcombine.low %v1763_v44, %v1767_v45  ;;  %v2103_v59 = vcombine.low %v2098_v53, %v2102_v54  ;;  %v1196_v27 = vcombine.high %v9822_v24, %v9822_v24  ;;  %v9210_v53 = vld [vmem:[%s11355_s4 + $0x2] sm:$0x3] }
  0x9f   : > { %v1533_v29 = vcombine.high %v1527_v23, %v1527_v23  ;;  %v2782_v54 = vrot.slane %v9210_v53, %v9788_v5 }
  0xa0   : > { %v1648_v31 = vcombine.high %v1642_v28, %v1642_v28 }
  0xa1   : > { %988 = vrot.lane.b32.xlu0 %v985_v62, %s11325_s0  ;;  %990 = vrot.lane.b32.xlu1 %v980_v63, %s11325_s0 }
  0xa3   : > { %s713_s25 = scalar_lea.vmem %s11363_s1, %s9813_s29  ;;  %s11364_s1 = smov 111  }
  0xa5   : > { %986 = vrot.lane.b32.xlu0 %v979_v56, %s11325_s0  ;;  %1105 = vrot.lane.b32.xlu1 %v1102_v2, %s11331_s30  ;;  %v2525_v56 = vrot.slane %v9200_v50, %v9788_v5  ;;  %s11361_s0 = smov 15  }
  0xa7   : > { %v2530_v62 = vcombine.low %v2525_v56, %v2529_v57 }
  0xa9   : > { %1107 = vrot.lane.b32.xlu0 %v1097_v9, %s11331_s30  ;;  %1103 = vrot.lane.b32.xlu1 %v1096_v61, %s11331_s30  ;;  %v2415_v61 = vrot.slane %v9195_v58, %v9790_v6  ;;  %s11362_s30 = sld [smem:[#allocation8_spill]] }
  0xab   : > { %v2416_v63 = vcombine.low %v2411_v60, %v2415_v61 }
  0xad   : > { %1306 = vrot.lane.b32.xlu0 %v1303_v15, %s11329_s27  ;;  %1308 = vrot.lane.b32.xlu1 %v1298_v16, %s11329_s27 }
  0xaf   : > { %v9127_v7 = vld [vmem:[%s11362_s30 + $0x4] sm:$0xf]  ;;  %v752_v16 = vld [vmem:[%s11362_s30] sm:$0xf]  ;;  %v9144_v35 = vld [vmem:[%s11362_s30 + $0x10] sm:$0xf] }
  0xb0   : > { %v9149_v40 = vld [vmem:[%s11362_s30 + $0x14] sm:$0xf]  ;;  %v9154_v45 = vld [vmem:[%s11362_s30 + $0x18] sm:$0xf]  ;;  %v9159_v50 = vld [vmem:[%s11362_s30 + $0x1c] sm:$0xf] }
  0xb1   : > { %1304 = vrot.lane.b32.xlu0 %v1297_v10, %s11329_s27  ;;  %1421 = vrot.lane.b32.xlu1 %v1418_v19, %s11333_s24  ;;  %s11369_s27 = smov 112  }
  0xb5   : > { %1423 = vrot.lane.b32.xlu0 %v1413_v25, %s11333_s24  ;;  %1419 = vrot.lane.b32.xlu1 %v1412_v14, %s11333_s24 }
  0xb9   : > { %1536 = vrot.lane.b32.xlu0 %v1533_v29, %s11339_s5  ;;  %1538 = vrot.lane.b32.xlu1 %v1528_v30, %s11339_s5  ;;  %v9140_v30 = vld [vmem:[%s11362_s30 + $0xc] sm:$0xf] }
  0xbd   : > { %1534 = vrot.lane.b32.xlu0 %v1527_v23, %s11339_s5  ;;  %1651 = vrot.lane.b32.xlu1 %v1648_v31, %s11335_s2  ;;  %v9135_v23 = vld [vmem:[%s11362_s30 + $0x8] sm:$0xf] }
  0xc1   : > { %1653 = vrot.lane.b32.xlu0 %v1643_v33, %s11335_s2  ;;  %1649 = vrot.lane.b32.xlu1 %v1642_v28, %s11335_s2 }
  0xc5   : > { %1740 = vperm.xlu0 %9627, %v1737_v34   ;;  %1789 = vrot.lane.b32.xlu1 %v1788_v47, %s11339_s5 }
  0xc9   : > { %1990 = vrot.lane.b32.xlu0 %v1989_v51, %s11333_s24  ;;  %1769 = vrot.lane.b32.xlu1 %v1768_v52, %s11335_s2  ;;  %v9164_v52 = vld [vmem:[%s11362_s30 + $0x20] sm:$0xf]  ;;  %s11366_s24 = smov 113   ;;  %s11370_s30 = sld [smem:[#allocation6_spill]] }
  0xcd   : > { %2303 = vrot.lane.b32.xlu0 %v2302_v55, %s11358_s26  ;;  %2104 = vrot.lane.b32.xlu1 %v2103_v59, %s11359_s28  ;;  %v2786_v55 = vrot.slane %v9210_v53, %v9790_v6  ;;  %v2291_v53 = vld [vmem:[#allocation2 + $0xc] sm:$0xf] }
  0xcf   : > { %v2787_v56 = vcombine.low %v2782_v54, %v2786_v55  ;;  %v9237_v54 = vld [vmem:[%s11355_s4 + $0xc] sm:$0x3]  ;;  %s718_s2 = scalar_lea.vmem %s11370_s30, %s9813_s29 }
  0xd1   : > { %2531 = vrot.lane.b32.xlu0 %v2530_v62, %s11360_s6  ;;  %2417 = vrot.lane.b32.xlu1 %v2416_v63, %s11361_s0 }
  0xd5   : > { %2788 = vrot.lane.b32.xlu1 %v2787_v56, %s11339_s5 }
 0x104   : > { %v784_v0 = vpop.permute.xlu1 %783 }
 0x107   : > { %v782_v1 = vpop.permute.xlu0 %781 }
 0x108   : > { %v787_v2 = vsel %vm785_vm6, %v782_v1, %v784_v0 }
 0x109   : > { %9128 = vmatprep.subr.msk.mxu0 %vm792_vm8, %v787_v2 }
 0x10b   : > { %v780_v3 = vpop.permute.xlu0 %779  ;;  %v874_v4 = vpop.permute.xlu1 %873 }
 0x10c   : > { %v786_v9 = vsel %vm785_vm6, %v780_v3, %v782_v1 }
 0x10d   : > { %9129 = vmatpush1.msk.msra.mxu0 %vm792_vm8, %v786_v9 }
 0x10e   : > { %9130 = vmatmul.mubr.msk.f32.vlgmr.msra.gmra.mrb[0].mxu0 %vm788_vm9, %v9127_v7  ;;  %v2757_v7 = vld [vmem:[%s11355_s4] sm:$0x3] }
 0x10f   : > { %v876_v10 = vpop.permute.xlu0 %875  ;;  %v872_v11 = vpop.permute.xlu1 %871  ;;  %951 = vmatprep.mubr.f32.mxu0 %v9646_v8 }
 0x110   : > { %v879_v12 = vsel %vm877_vm7, %v874_v4, %v876_v10  ;;  %v878_v13 = vsel %vm877_vm7, %v872_v11, %v874_v4  ;;  %v10027_v10 = vld [vmem:[%s713_s25] sm:$0xff]  ;;  %s11365_s25 = smov 17  }
 0x111   : > { %9131 = vmatprep.subr.msk.mxu0 %vm792_vm8, %v879_v12 }
 0x112   : > { %9132 = vmatpush1.msk.msra.mxu0 %vm792_vm8, %v878_v13 }
 0x113   : > { %v989_v14 = vpop.permute.xlu0 %988  ;;  %v991_v15 = vpop.permute.xlu1 %990 }
 0x114   : > { %v994_v17 = vsel %vm992_vm5, %v989_v14, %v991_v15  ;;  %v2762_v15 = vrot.slane %v2757_v7, %v9788_v5 }
 0x115   : > { %9136 = vmatprep.subr.msk.mxu0 %vm792_vm8, %v994_v17 }
 0x116   : > { %9133 = vmatmul.mubr.msk.f32.vlgmr.msra.gmra.mrb[0].mxu0 %vm788_vm9, %v752_v16  ;;  %v2766_v16 = vrot.slane %v2757_v7, %v9790_v6 }
 0x117   : > { %v987_v18 = vpop.permute.xlu0 %986  ;;  %v1106_v19 = vpop.permute.xlu1 %1105  ;;  %1066 = vmatprep.mubr.f32.mxu0 %v9646_v8 }
 0x118   : > { %v993_v20 = vsel %vm992_vm5, %v987_v18, %v989_v14 }
 0x119   : > { %9137 = vmatpush1.msk.msra.mxu0 %vm792_vm8, %v993_v20 }
 0x11b   : > { %v1108_v21 = vpop.permute.xlu0 %1107  ;;  %v1104_v22 = vpop.permute.xlu1 %1103 }
 0x11c   : > { %v1111_v25 = vsel %vm1109_vm4, %v1106_v19, %v1108_v21  ;;  %v1110_v26 = vsel %vm1109_vm4, %v1104_v22, %v1106_v19 }
 0x11d   : > { %9141 = vmatprep.subr.msk.mxu0 %vm792_vm8, %v1111_v25  ;;  %v9218_v25 = vld [vmem:[%s11355_s4 + $0x4] sm:$0x3] }
 0x11e   : > { %9138 = vmatmul.mubr.msk.f32.vlgmr.msra.gmra.mrb[0].mxu0 %vm788_vm9, %v9135_v23  ;;  %v2767_v23 = vcombine.low %v2762_v15, %v2766_v16 }
 0x11f   : > { %9142 = vmatpush1.msk.msra.mxu0 %vm792_vm8, %v1110_v26  ;;  %1183 = vmatprep.mubr.f32.mxu0 %v9646_v8  ;;  %v1307_v28 = vpop.permute.xlu0 %1306  ;;  %v1309_v29 = vpop.permute.xlu1 %1308 }
 0x120   : > { %9145 = vmatprep.subr.msk.mxu0 %vm792_vm8, %v1196_v27  ;;  %v1311_v31 = vsel %vm1092_vm3, %v1307_v28, %v1309_v29  ;;  %v2983_v29 = vrot.slane %v9218_v25, %v9788_v5 }
 0x123   : > { %v1305_v32 = vpop.permute.xlu0 %1304  ;;  %v1422_v33 = vpop.permute.xlu1 %1421 }
 0x124   : > { %v1310_v36 = vsel %vm1092_vm3, %v1305_v32, %v1307_v28 }
 0x126   : > { %9143 = vmatmul.mubr.msk.f32.vlgmr.msra.gmra.mrb[0].mxu0 %vm788_vm9, %v9140_v30  ;;  %v2987_v30 = vrot.slane %v9218_v25, %v9790_v6 }
 0x127   : > { %9146 = vmatpush1.msk.msra.mxu0 %vm792_vm8, %v9822_v24  ;;  %1268 = vmatprep.mubr.f32.mxu0 %v9646_v8  ;;  %v1424_v34 = vpop.permute.xlu0 %1423  ;;  %v1420_v38 = vpop.permute.xlu1 %1419 }
 0x128   : > { %9150 = vmatprep.subr.msk.mxu0 %vm792_vm8, %v1311_v31  ;;  %v1426_v37 = vsel %vm975_vm2, %v1422_v33, %v1424_v34  ;;  %v1425_v41 = vsel %vm975_vm2, %v1420_v38, %v1422_v33  ;;  %v2988_v34 = vcombine.low %v2983_v29, %v2987_v30 }
 0x12b   : > { %v1537_v24 = vpop.permute.xlu0 %1536  ;;  %v1539_v39 = vpop.permute.xlu1 %1538 }
 0x12c   : > { %v1541_v42 = vsel %vm768_vm0, %v1537_v24, %v1539_v39 }
 0x12e   : > { %9147 = vmatmul.mubr.msk.f32.vlgmr.msra.gmra.mrb[0].mxu0 %vm788_vm9, %v9144_v35  ;;  %v9223_v35 = vld [vmem:[%s11355_s4 + $0x6] sm:$0x3] }
 0x12f   : > { %9151 = vmatpush1.msk.msra.mxu0 %vm792_vm8, %v1310_v36  ;;  %1383 = vmatprep.mubr.f32.mxu0 %v9646_v8  ;;  %v1535_v43 = vpop.permute.xlu0 %1534  ;;  %v1652_v46 = vpop.permute.xlu1 %1651  ;;  %v3101_v39 = vrot.slane %v9223_v35, %v9790_v6 }
 0x130   : > { %9155 = vmatprep.subr.msk.mxu0 %vm792_vm8, %v1426_v37  ;;  %v1540_v47 = vsel %vm768_vm0, %v1535_v43, %v1537_v24  ;;  %v3097_v24 = vrot.slane %v9223_v35, %v9788_v5 }
 0x132   : > { %v3102_v43 = vcombine.low %v3097_v24, %v3101_v39 }
 0x133   : > { %v1654_v44 = vpop.permute.xlu0 %1653  ;;  %v1650_v49 = vpop.permute.xlu1 %1649 }
 0x134   : > { %v1656_v48 = vsel %vm746_vm1, %v1652_v46, %v1654_v44  ;;  %v1655_v51 = vsel %vm746_vm1, %v1650_v49, %v1652_v46  ;;  %v9232_v44 = vld [vmem:[%s11355_s4 + $0xa] sm:$0x3] }
 0x135   : > { %v3296_v46 = vrot.slane %v9232_v44, %v9788_v5 }
 0x136   : > { %9152 = vmatmul.mubr.msk.f32.vlgmr.msra.gmra.mrb[0].mxu0 %vm788_vm9, %v9149_v40 }
 0x137   : > { %9156 = vmatpush1.msk.msra.mxu0 %vm792_vm8, %v1425_v41  ;;  %1498 = vmatprep.mubr.f32.mxu0 %v9646_v8  ;;  %v1790_v3 = vpop.permute.xlu1 %1789 }
 0x138   : > { %9160 = vmatprep.subr.msk.mxu0 %vm792_vm8, %v1541_v42  ;;  %v1791_v4 = vrot.slane %v1790_v3, 4 }
 0x13a   : > { %v1792_v9 = vsel %vm768_vm0, %v1791_v4, %v1790_v3 }
 0x13b   : > { %v1770_v11 = vpop.permute.xlu1 %1769 }
 0x13c   : > { %v1771_v13 = vrot.slane %v1770_v11, 4 }
 0x13e   : > { %9157 = vmatmul.mubr.msk.f32.vlgmr.msra.gmra.mrb[0].mxu0 %vm788_vm9, %v9154_v45  ;;  %v1772_v22 = vsel %vm746_vm1, %v1771_v13, %v1770_v11 }
 0x13f   : > { %9161 = vmatpush1.msk.msra.mxu0 %vm792_vm8, %v1540_v47  ;;  %1613 = vmatprep.mubr.f32.mxu0 %v9646_v8  ;;  %v2105_v37 = vpop.permute.xlu1 %2104  ;;  %v3300_v47 = vrot.slane %v9232_v44, %v9790_v6 }
 0x140   : > { %9165 = vmatprep.subr.msk.mxu0 %vm792_vm8, %v1656_v48  ;;  %v2106_v38 = vrot.slane %v2105_v37, 4 }
 0x142   : > { %v2107_v42 = vsel %vm1092_vm3, %v2106_v38, %v2105_v37 }
 0x144   : > { %v1741_v57 = vpop.permute.xlu0 %1740 }
 0x146   : > { %9162 = vmatmul.mubr.msk.f32.vlgmr.msra.gmra.mrb[0].mxu0 %vm788_vm9, %v9159_v50 }
 0x147   : > { %9166 = vmatpush1.msk.msra.mxu0 %vm792_vm8, %v1655_v51  ;;  %1728 = vmatprep.mubr.f32.mxu0 %v9646_v8 }
 0x148   : > { %v1991_v26 = vpop.permute.xlu0 %1990 }
 0x149   : > { %v1992_v28 = vrot.slane %v1991_v26, 4 }
 0x14b   : > { %v1993_v33 = vsel %vm975_vm2, %v1992_v28, %v1991_v26 }
 0x14c   : > { %v2304_v49 = vpop.permute.xlu0 %2303 }
 0x14d   : > { %v2305_v51 = vrot.slane %v2304_v49, 4 }
 0x14e   : > { %9167 = vmatmul.mubr.msk.f32.vlgmr.msra.gmra.mrb[0].mxu0 %vm788_vm9, %v9164_v52  ;;  %v3301_v52 = vcombine.low %v3296_v46, %v3300_v47 }
 0x14f   : > { %1881 = vmatprep.mubr.f32.mxu0 %v9646_v8  ;;  %v2306_v55 = vsel %vm1109_vm4, %v2305_v51, %v2304_v49  ;;  %v2310_v56 = vmul.f32 %v2305_v51, %v2291_v53 }
 0x221   : > { %v1730_v58 = vpop.f32.mrb[0].mxu0 }
 0x222   : > { %v1743_v59 = vadd.f32 %v1741_v57, %v1730_v58  ;;  %v1732_v60 = vpop.f32.mrb[1].mxu0  ;;  %v3414_v58 = vrot.slane %v9237_v54, %v9790_v6 }
 0x223   : > { %v1744_v61 = vadd.f32 %v1741_v57, %v1732_v60  ;;  %v3410_v57 = vrot.slane %v9237_v54, %v9788_v5 }
 0x224   : > { %vm1745_vm10 = vcmp.ge.f32.partialorder %v1743_v59, 0.0  ;;  %v1747_v62 = vmul.f32 0.2, %v1743_v59 }
 0x225   : > { %vm1746_vm11 = vcmp.ge.f32.partialorder %v1744_v61, 0.0  ;;  %v1748_v63 = vmul.f32 0.2, %v1744_v61 }
 0x226   : > { %v1749_v0 = vsel %vm1745_vm10, %v1743_v59, %v1747_v62  ;;  %v2418_v59 = vpop.permute.xlu1 %2417  ;;  %v3415_v62 = vcombine.low %v3410_v57, %v3414_v58 }
 0x227   : > { %v10013_v1 = vsel %vm1746_vm11, %v1744_v61, %v1748_v63  ;;  %v2419_v61 = vrot.slane %v2418_v59, 4  ;;  %v2405_v63 = vld [vmem:[#allocation2 + $0xc] sm:$0xf] }
 0x228   : > { %v10016_v2 = vcombine.low %v1749_v0, %v10013_v1  ;;  %v9242_v0 = vld [vmem:[%s11355_s4 + $0xe] sm:$0x3] }
 0x229   : > { %v2424_v7 = vmul.f32 %v2419_v61, %v2405_v63  ;;  %v3528_v11 = vrot.slane %v9242_v0, %v9790_v6 }
 0x22a   : > { %1755 = vst [vmem:[#allocation2 + $0x4] sm:$0xff] %v10016_v2  ;;  %v2309_v60 = vmul.f32 %v2306_v55, %v10016_v2 }
 0x22c   : > { %v2315_v3 = vcombine.high %v2309_v60, %v2309_v60 }
 0x231   : > { %v1756_v12 = vld [vmem:[#allocation2] sm:$0xff]  ;;  %v1757_v14 = vld [vmem:[#allocation2 + $0x8] sm:$0xf] }
 0x232   : > { %v1795_v17 = vmul.f32 %v1792_v9, %v1756_v12  ;;  %v1978_v18 = vld [vmem:[#allocation2 + $0x8] sm:$0xf]  ;;  %v1796_v20 = vmul.f32 %v1791_v4, %v1757_v14  ;;  %v1775_v27 = vmul.f32 %v1772_v22, %v1756_v12  ;;  %v1776_v31 = vmul.f32 %v1771_v13, %v1757_v14  ;;  %v2789_v14 = vpop.permute.xlu1 %2788 }
 0x233   : > { %v2092_v19 = vld [vmem:[#allocation2 + $0x8] sm:$0xf]  ;;  %v1996_v36 = vmul.f32 %v1993_v33, %v1756_v12  ;;  %v1997_v40 = vmul.f32 %v1992_v28, %v1978_v18  ;;  %v2110_v45 = vmul.f32 %v2107_v42, %v1756_v12  ;;  %v2420_v4 = vsel %vm992_vm5, %v2419_v61, %v2418_v59  ;;  %v2532_v12 = vpop.permute.xlu0 %2531  ;;  %v9247_v18 = vld [vmem:[%s11355_s4 + $0x10] sm:$0x3] }
 0x234   : > { %2754 = vst [vmem:[#allocation2 + $0x4] sm:$0xff] %v10027_v10  ;;  %v1801_v21 = vcombine.high %v1795_v17, %v1795_v17  ;;  %1806 = vrot.lane.b32.xlu1 %v1796_v20, %s11360_s6  ;;  %v1890_v32 = vcombine.high %v1775_v27, %v1775_v27  ;;  %v2111_v48 = vmul.f32 %v2106_v38, %v2092_v19  ;;  %v2533_v15 = vrot.slane %v2532_v12, 4 }
 0x235   : > { %v2002_v41 = vcombine.high %v1996_v36, %v1996_v36  ;;  %v2116_v50 = vcombine.high %v2110_v45, %v2110_v45  ;;  %v3524_v9 = vrot.slane %v9242_v0, %v9788_v5  ;;  %v2423_v13 = vmul.f32 %v2420_v4, %v10016_v2 }
 0x236   : > { %1804 = vrot.lane.b32.xlu0 %v1801_v21, %s11360_s6  ;;  %v2790_v19 = vrot.slane %v2789_v14, 4  ;;  %v2534_v21 = vsel %vm785_vm6, %v2533_v15, %v2532_v12  ;;  %v3642_v25 = vrot.slane %v9247_v18, %v9790_v6 }
 0x237   : > { %v3529_v16 = vcombine.low %v3524_v9, %v3528_v11  ;;  %v2429_v20 = vcombine.high %v2423_v13, %v2423_v13  ;;  %v2537_v28 = vmul.f32 %v2534_v21, %v10016_v2  ;;  %v3290_v21 = vld [vmem:[#allocation2 + $0xc] sm:$0xf] }
 0x238   : > { %2768 = vrot.lane.b32.xlu1 %v2767_v23, %s11364_s1  ;;  %v3638_v23 = vrot.slane %v9247_v18, %v9788_v5 }
 0x23a   : > { %1802 = vrot.lane.b32.xlu0 %v1795_v17, %s11360_s6  ;;  %v2519_v17 = vld [vmem:[#allocation2 + $0xc] sm:$0xf]  ;;  %v3643_v29 = vcombine.low %v3638_v23, %v3642_v25  ;;  %v9635_v25 = vcombine.low %v10013_v1, %v10013_v1 }
 0x23b   : > { %v2538_v22 = vmul.f32 %v2533_v15, %v2519_v17  ;;  %v10094_v26 = vld [vmem:[#allocation2] sm:$0xff]  ;;  %v2977_v55 = vld [vmem:[#allocation2 + $0x8] sm:$0xf] }
 0x23c   : > { %1895 = vrot.lane.b32.xlu1 %v1776_v31, %s11365_s25  ;;  %v2756_v31 = vld [vmem:[#allocation2 + $0x8] sm:$0xf] }
 0x23d   : > { %v2795_v33 = vmul.f32 %v2790_v19, %v2756_v31  ;;  %v3091_v9 = vld [vmem:[#allocation2 + $0x8] sm:$0xf] }
 0x23e   : > { %1893 = vrot.lane.b32.xlu0 %v1890_v32, %s11365_s25  ;;  %v2543_v32 = vcombine.high %v2537_v28, %v2537_v28 }
 0x240   : > { %2989 = vrot.lane.b32.xlu1 %v2988_v34, %s11366_s24 }
 0x242   : > { %1891 = vrot.lane.b32.xlu0 %v1775_v27, %s11365_s25  ;;  %v2791_v27 = vsel %vm768_vm0, %v2790_v19, %v2789_v14 }
 0x243   : > { %v2794_v30 = vmul.f32 %v2791_v27, %v10094_v26 }
 0x244   : > { %2007 = vrot.lane.b32.xlu1 %v1997_v40, %s11361_s0  ;;  %v9169_v40 = vld [vmem:[%s11367_s23 + $0x4] sm:$0xf] }
 0x245   : > { %v2800_v34 = vcombine.high %v2794_v30, %v2794_v30 }
 0x246   : > { %2005 = vrot.lane.b32.xlu0 %v2002_v41, %s11361_s0 }
 0x248   : > { %3103 = vrot.lane.b32.xlu1 %v3102_v43, %s11359_s28 }
 0x24a   : > { %2003 = vrot.lane.b32.xlu0 %v1996_v36, %s11361_s0 }
 0x24c   : > { %2121 = vrot.lane.b32.xlu1 %v2111_v48, %s11358_s26 }
 0x24e   : > { %2119 = vrot.lane.b32.xlu0 %v2116_v50, %s11358_s26 }
 0x250   : > { %3302 = vrot.lane.b32.xlu1 %v3301_v52, %s11358_s26  ;;  %v1777_v52 = vld [vmem:[%s11367_s23] sm:$0xf] }
 0x252   : > { %2117 = vrot.lane.b32.xlu0 %v2110_v45, %s11358_s26 }
 0x254   : > { %2320 = vrot.lane.b32.xlu1 %v2310_v56, %s11359_s28 }
 0x256   : > { %2316 = vrot.lane.b32.xlu0 %v2309_v60, %s11359_s28 }
 0x258   : > { %3416 = vrot.lane.b32.xlu1 %v3415_v62, %s11361_s0 }
 0x25a   : > { %2318 = vrot.lane.b32.xlu0 %v2315_v3, %s11359_s28  ;;  %v9177_v3 = vld [vmem:[%s11367_s23 + $0x8] sm:$0xf] }
 0x25c   : > { %2434 = vrot.lane.b32.xlu1 %v2424_v7, %s11366_s24 }
 0x25e   : > { %2430 = vrot.lane.b32.xlu0 %v2423_v13, %s11366_s24 }
 0x260   : > { %3530 = vrot.lane.b32.xlu1 %v3529_v16, %s11360_s6 }
 0x262   : > { %2432 = vrot.lane.b32.xlu0 %v2429_v20, %s11366_s24  ;;  %v9182_v20 = vld [vmem:[%s11367_s23 + $0xc] sm:$0xf] }
 0x264   : > { %2548 = vrot.lane.b32.xlu1 %v2538_v22, %s11339_s5 }
 0x266   : > { %2544 = vrot.lane.b32.xlu0 %v2537_v28, %s11339_s5 }
 0x268   : > { %3644 = vrot.lane.b32.xlu1 %v3643_v29, %s11365_s25 }
 0x26a   : > { %2546 = vrot.lane.b32.xlu0 %v2543_v32, %s11339_s5 }
 0x26c   : > { %2805 = vrot.lane.b32.xlu1 %v2795_v33, %s11360_s6  ;;  %v9186_v33 = vld [vmem:[%s11367_s23 + $0x10] sm:$0xf] }
 0x26e   : > { %2803 = vrot.lane.b32.xlu0 %v2800_v34, %s11360_s6  ;;  %v3404_v34 = vld [vmem:[#allocation2 + $0xc] sm:$0xf] }
 0x272   : > { %2801 = vrot.lane.b32.xlu0 %v2794_v30, %s11360_s6 }
 0x2a6   : > { %v1807_v35 = vpop.permute.xlu1 %1806 }
 0x2a8   : > { %v1805_v36 = vpop.permute.xlu0 %1804 }
 0x2a9   : > { %v1809_v37 = vsel %vm785_vm6, %v1805_v36, %v1807_v35 }
 0x2aa   : > { %9170 = vmatprep.subr.msk.mxu0 %vm792_vm8, %v1809_v37  ;;  %v2769_v38 = vpop.permute.xlu1 %2768 }
 0x2ab   : > { %v2770_v24 = vrot.slane %v2769_v38, 4 }
 0x2ac   : > { %v1803_v39 = vpop.permute.xlu0 %1802 }
 0x2ad   : > { %v1808_v41 = vsel %vm785_vm6, %v1803_v39, %v1805_v36  ;;  %v2771_v42 = vsel %vm746_vm1, %v2770_v24, %v2769_v38  ;;  %v2775_v43 = vmul.f32 %v2770_v24, %v2756_v31 }
 0x2ae   : > { %9171 = vmatpush1.msk.msra.mxu0 %vm792_vm8, %v1808_v41  ;;  %v2774_v44 = vmul.f32 %v2771_v42, %v10094_v26  ;;  %v1896_v45 = vpop.permute.xlu1 %1895 }
 0x2af   : > { %9172 = vmatmul.mubr.msk.f32.vlgmr.msra.gmra.mrb[2].mxu0 %vm788_vm9, %v9169_v40  ;;  %2894 = vrot.lane.b32.xlu0 %v2775_v43, %s11365_s25 }
 0x2b0   : > { %v1894_v46 = vpop.permute.xlu0 %1893  ;;  %1970 = vmatprep.mubr.f32.mxu0 %v9646_v8  ;;  %v2889_v47 = vcombine.high %v2774_v44, %v2774_v44 }
 0x2b1   : > { %v1898_v48 = vsel %vm877_vm7, %v1894_v46, %v1896_v45  ;;  %v9191_v45 = vld [vmem:[%s11367_s23 + $0x14] sm:$0xf] }
 0x2b2   : > { %9173 = vmatprep.subr.msk.mxu0 %vm792_vm8, %v1898_v48  ;;  %2892 = vrot.lane.b32.xlu1 %v2889_v47, %s11365_s25  ;;  %v2990_v49 = vpop.permute.xlu1 %2989 }
 0x2b3   : > { %v2991_v50 = vrot.slane %v2990_v49, 4 }
 0x2b4   : > { %v1892_v51 = vpop.permute.xlu0 %1891 }
 0x2b5   : > { %v1897_v53 = vsel %vm877_vm7, %v1892_v51, %v1894_v46  ;;  %v2992_v54 = vsel %vm975_vm2, %v2991_v50, %v2990_v49  ;;  %v2996_v59 = vmul.f32 %v2991_v50, %v2977_v55  ;;  %v3518_v46 = vld [vmem:[#allocation2 + $0xc] sm:$0xf] }
 0x2b6   : > { %9174 = vmatpush1.msk.msra.mxu0 %vm792_vm8, %v1897_v53  ;;  %v2995_v56 = vmul.f32 %v2992_v54, %v10094_v26  ;;  %2890 = vrot.lane.b32.xlu1 %v2774_v44, %s11365_s25  ;;  %v2008_v57 = vpop.permute.xlu1 %2007 }
 0x2b7   : > { %9175 = vmatmul.mubr.msk.f32.vlgmr.msra.gmra.mrb[2].mxu0 %vm788_vm9, %v1777_v52 }
 0x2b8   : > { %v2006_v58 = vpop.permute.xlu0 %2005  ;;  %2082 = vmatprep.mubr.f32.mxu0 %v9646_v8  ;;  %v3001_v60 = vcombine.high %v2995_v56, %v2995_v56 }
 0x2b9   : > { %v2010_v61 = vsel %vm992_vm5, %v2006_v58, %v2008_v57 }
 0x2ba   : > { %9178 = vmatprep.subr.msk.mxu0 %vm792_vm8, %v2010_v61  ;;  %3006 = vrot.lane.b32.xlu1 %v2996_v59, %s11361_s0  ;;  %v3104_v62 = vpop.permute.xlu1 %3103  ;;  %v3632_v59 = vld [vmem:[#allocation2 + $0xc] sm:$0xf] }
 0x2bb   : > { %3004 = vrot.lane.b32.xlu0 %v3001_v60, %s11361_s0  ;;  %v3105_v63 = vrot.slane %v3104_v62, 4 }
 0x2bc   : > { %v2004_v0 = vpop.permute.xlu0 %2003 }
 0x2bd   : > { %v2009_v4 = vsel %vm992_vm5, %v2004_v0, %v2006_v58  ;;  %v3106_v7 = vsel %vm1092_vm3, %v3105_v63, %v3104_v62  ;;  %v3110_v14 = vmul.f32 %v3105_v63, %v3091_v9  ;;  %v9196_v58 = vld [vmem:[%s11367_s23 + $0x18] sm:$0xf]  ;;  %v9252_v9 = vld [vmem:[%s11355_s4 + $0x2] sm:$0x3] }
 0x2be   : > { %9179 = vmatpush1.msk.msra.mxu0 %vm792_vm8, %v2009_v4  ;;  %v3109_v11 = vmul.f32 %v3106_v7, %v10094_v26  ;;  %v2122_v12 = vpop.permute.xlu1 %2121 }
 0x2bf   : > { %3002 = vrot.lane.b32.xlu0 %v2995_v56, %s11361_s0  ;;  %9180 = vmatmul.mubr.msk.f32.vlgmr.msra.gmra.mrb[2].mxu0 %vm788_vm9, %v9177_v3  ;;  %v9205_v3 = vld [vmem:[%s11355_s4 + $0x10] sm:$0x3] }
 0x2c0   : > { %v2120_v13 = vpop.permute.xlu0 %2119  ;;  %2196 = vmatprep.mubr.f32.mxu0 %v9646_v8  ;;  %v3115_v15 = vcombine.high %v3109_v11, %v3109_v11 }
 0x2c1   : > { %v2124_v16 = vsel %vm1109_vm4, %v2120_v13, %v2122_v12 }
 0x2c2   : > { %9183 = vmatprep.subr.msk.mxu0 %vm792_vm8, %v2124_v16  ;;  %3118 = vrot.lane.b32.xlu1 %v3115_v15, %s11358_s26  ;;  %v3303_v17 = vpop.permute.xlu1 %3302  ;;  %v3791_v15 = vrot.slane %v9252_v9, %v9788_v5  ;;  %v3795_v16 = vrot.slane %v9252_v9, %v9790_v6 }
 0x2c3   : > { %3120 = vrot.lane.b32.xlu0 %v3110_v14, %s11358_s26  ;;  %v3304_v18 = vrot.slane %v3303_v17, 4  ;;  %v2643_v14 = vrot.slane %v9205_v3, %v9790_v6 }
 0x2c4   : > { %v2118_v19 = vpop.permute.xlu0 %2117 }
 0x2c5   : > { %v2123_v22 = vsel %vm1109_vm4, %v2118_v19, %v2120_v13  ;;  %v3305_v23 = vsel %vm1109_vm4, %v3304_v18, %v3303_v17  ;;  %v3309_v28 = vmul.f32 %v3304_v18, %v3290_v21  ;;  %v2639_v13 = vrot.slane %v9205_v3, %v9788_v5  ;;  %v3766_v17 = vld [vmem:[%s11355_s4] sm:$0x3]  ;;  %v9201_v21 = vld [vmem:[%s11367_s23 + $0x1c] sm:$0xf] }
 0x2c6   : > { %9184 = vmatpush1.msk.msra.mxu0 %vm792_vm8, %v2123_v22  ;;  %v3308_v26 = vmul.f32 %v3305_v23, %v10027_v10  ;;  %3116 = vrot.lane.b32.xlu1 %v3109_v11, %s11358_s26  ;;  %v2321_v27 = vpop.permute.xlu1 %2320  ;;  %v3745_v18 = vld [vmem:[%s11368_s9] sm:$0xf]  ;;  %s11371_s9 = sld [smem:[#allocation12_spill]] }
 0x2c7   : > { %9185 = vmatmul.mubr.msk.f32.vlgmr.msra.gmra.mrb[2].mxu0 %vm788_vm9, %v9182_v20  ;;  %9187 = vmatprep.subr.msk.mxu0 %vm792_vm8, %v9635_v25  ;;  %v9260_v20 = vld [vmem:[%s11355_s4 + $0x4] sm:$0x3]  ;;  %v2644_v22 = vcombine.low %v2639_v13, %v2643_v14  ;;  %v3771_v25 = vrot.slane %v3766_v17, %v9788_v5  ;;  %v9233_v13 = vld [vmem:[%s11305_s8 + $0x14] sm:$0xf] }
 0x2c8   : > { %v2317_v29 = vpop.permute.xlu0 %2316  ;;  %2281 = vmatprep.mubr.f32.mxu0 %v9646_v8  ;;  %9188 = vmatpush1.msk.msra.mxu0 %vm792_vm8, %v10016_v2  ;;  %v3314_v30 = vcombine.high %v3308_v26, %v3308_v26 }
 0x2ca   : > { %3317 = vrot.lane.b32.xlu0 %v3314_v30, %s11359_s28  ;;  %v3417_v1 = vpop.permute.xlu1 %3416  ;;  %3319 = vrot.lane.b32.xlu1 %v3309_v28, %s11359_s28  ;;  %v3992_v28 = vrot.slane %v9260_v20, %v9788_v5  ;;  %v9265_v30 = vld [vmem:[%s11355_s4 + $0x6] sm:$0x3] }
 0x2cb   : > { %v3418_v31 = vrot.slane %v3417_v1, 4 }
 0x2cc   : > { %v2319_v32 = vpop.permute.xlu0 %2318 }
 0x2cd   : > { %v2322_v35 = vsel %vm1092_vm3, %v2317_v29, %v2319_v32  ;;  %v2323_v36 = vsel %vm1092_vm3, %v2319_v32, %v2321_v27  ;;  %v3419_v37 = vsel %vm992_vm5, %v3418_v31, %v3417_v1  ;;  %v3423_v39 = vmul.f32 %v3418_v31, %v3404_v34  ;;  %v9274_v1 = vld [vmem:[%s11355_s4 + $0xa] sm:$0x3]  ;;  %v9211_v31 = vld [vmem:[%s11305_s8 + $0x4] sm:$0xf] }
 0x2ce   : > { %9192 = vmatprep.subr.msk.mxu0 %vm792_vm8, %v2323_v36  ;;  %v3422_v38 = vmul.f32 %v3419_v37, %v10027_v10  ;;  %3315 = vrot.lane.b32.xlu0 %v3308_v26, %s11359_s28  ;;  %v2435_v24 = vpop.permute.xlu1 %2434  ;;  %v3775_v26 = vrot.slane %v3766_v17, %v9790_v6  ;;  %v3796_v27 = vcombine.low %v3791_v15, %v3795_v16 }
 0x2cf   : > { %9189 = vmatmul.mubr.msk.f32.vlgmr.msra.gmra.mrb[2].mxu0 %vm788_vm9, %v9186_v33  ;;  %v3996_v29 = vrot.slane %v9260_v20, %v9790_v6  ;;  %v4106_v33 = vrot.slane %v9265_v30, %v9788_v5  ;;  %v4110_v34 = vrot.slane %v9265_v30, %v9790_v6  ;;  %v4305_v36 = vrot.slane %v9274_v1, %v9788_v5 }
 0x2d0   : > { %9193 = vmatpush1.msk.msra.mxu0 %vm792_vm8, %v2322_v35  ;;  %v2431_v40 = vpop.permute.xlu0 %2430  ;;  %2395 = vmatprep.mubr.f32.mxu0 %v9646_v8  ;;  %v3428_v41 = vcombine.high %v3422_v38, %v3422_v38  ;;  %v3776_v32 = vcombine.low %v3771_v25, %v3775_v26  ;;  %v4309_v37 = vrot.slane %v9274_v1, %v9790_v6  ;;  %v9243_v26 = vld [vmem:[%s11305_s8 + $0x1c] sm:$0xf] }
 0x2d1   : > { %v3997_v35 = vcombine.low %v3992_v28, %v3996_v29  ;;  %v9284_v28 = vld [vmem:[%s11355_s4 + $0xe] sm:$0x3] }
 0x2d2   : > { %3431 = vrot.lane.b32.xlu1 %v3428_v41, %s11366_s24  ;;  %v3531_v42 = vpop.permute.xlu1 %3530  ;;  %3433 = vrot.lane.b32.xlu0 %v3423_v39, %s11366_s24  ;;  %v4310_v39 = vcombine.low %v4305_v36, %v4309_v37  ;;  %v2633_v29 = vld [vmem:[#allocation2 + $0xc] sm:$0xf] }
 0x2d3   : > { %v3532_v43 = vrot.slane %v3531_v42, 4 }
 0x2d4   : > { %v2433_v44 = vpop.permute.xlu0 %2432 }
 0x2d5   : > { %v2436_v47 = vsel %vm975_vm2, %v2431_v40, %v2433_v44  ;;  %v2437_v48 = vsel %vm975_vm2, %v2433_v44, %v2435_v24  ;;  %v3533_v49 = vsel %vm785_vm6, %v3532_v43, %v3531_v42  ;;  %v3537_v52 = vmul.f32 %v3532_v43, %v3518_v46 }
 0x2d6   : > { %9197 = vmatprep.subr.msk.mxu0 %vm792_vm8, %v2437_v48  ;;  %v3536_v50 = vmul.f32 %v3533_v49, %v10027_v10  ;;  %3429 = vrot.lane.b32.xlu1 %v3422_v38, %s11366_s24  ;;  %v2549_v51 = vpop.permute.xlu1 %2548  ;;  %v9279_v38 = vld [vmem:[%s11355_s4 + $0xc] sm:$0x3]  ;;  %v4111_v24 = vcombine.low %v4106_v33, %v4110_v34  ;;  %v728_v33 = vld [vmem:[%s718_s2] sm:$0xff] }
 0x2d7   : > { %9194 = vmatmul.mubr.msk.f32.vlgmr.msra.gmra.mrb[2].mxu0 %vm788_vm9, %v9191_v45  ;;  %v4419_v40 = vrot.slane %v9279_v38, %v9788_v5  ;;  %v4423_v41 = vrot.slane %v9279_v38, %v9790_v6  ;;  %v4770_v36 = vcombine.high %v728_v33, %v728_v33  ;;  %v9248_v38 = vld [vmem:[%s11305_s8 + $0x20] sm:$0xf] }
 0x2d8   : > { %9198 = vmatpush1.msk.msra.mxu0 %vm792_vm8, %v2436_v47  ;;  %v2545_v53 = vpop.permute.xlu0 %2544  ;;  %2509 = vmatprep.mubr.f32.mxu0 %v9646_v8  ;;  %v3542_v54 = vcombine.high %v3536_v50, %v3536_v50  ;;  %v2776_v47 = vld [vmem:[%s11305_s8] sm:$0xf] }
 0x2d9   : > { %v4424_v42 = vcombine.low %v4419_v40, %v4423_v41 }
 0x2da   : > { %3545 = vrot.lane.b32.xlu0 %v3542_v54, %s11339_s5  ;;  %v3645_v55 = vpop.permute.xlu1 %3644  ;;  %3547 = vrot.lane.b32.xlu1 %v3537_v52, %s11339_s5 }
 0x2db   : > { %v3646_v56 = vrot.slane %v3645_v55, 4 }
 0x2dc   : > { %v2547_v57 = vpop.permute.xlu0 %2546 }
 0x2dd   : > { %v2550_v60 = vsel %vm768_vm0, %v2545_v53, %v2547_v57  ;;  %v2551_v61 = vsel %vm768_vm0, %v2547_v57, %v2549_v51  ;;  %v3647_v62 = vsel %vm877_vm7, %v3646_v56, %v3645_v55  ;;  %v3651_v0 = vmul.f32 %v3646_v56, %v3632_v59  ;;  %v9219_v53 = vld [vmem:[%s11305_s8 + $0x8] sm:$0xf] }
 0x2de   : > { %9202 = vmatprep.subr.msk.mxu0 %vm792_vm8, %v2551_v61  ;;  %v3650_v63 = vmul.f32 %v3647_v62, %v10027_v10  ;;  %3543 = vrot.lane.b32.xlu0 %v3536_v50, %s11339_s5  ;;  %v2806_v4 = vpop.permute.xlu1 %2805 }
 0x2df   : > { %9199 = vmatmul.mubr.msk.f32.vlgmr.msra.gmra.mrb[2].mxu0 %vm788_vm9, %v9196_v58  ;;  %v3208_v58 = vcombine.high %v10027_v10, %v10027_v10 }
 0x2e0   : > { %9203 = vmatpush1.msk.msra.mxu0 %vm792_vm8, %v2550_v60  ;;  %2623 = vmatprep.mubr.f32.mxu0 %v9646_v8  ;;  %v2804_v7 = vpop.permute.xlu0 %2803  ;;  %v3656_v11 = vcombine.high %v3650_v63, %v3650_v63  ;;  %v9224_v60 = vld [vmem:[%s11305_s8 + $0xc] sm:$0xf] }
 0x2e1   : > { %v2808_v12 = vsel %vm785_vm6, %v2804_v7, %v2806_v4  ;;  %v9228_v4 = vld [vmem:[%s11305_s8 + $0x10] sm:$0xf] }
 0x2e2   : > { %9212 = vmatprep.subr.msk.mxu0 %vm792_vm8, %v2808_v12  ;;  %3661 = vrot.lane.b32.xlu0 %v3651_v0, %s11364_s1 }
 0x2e3   : > { %3659 = vrot.lane.b32.xlu1 %v3656_v11, %s11364_s1 }
 0x2e4   : > { %v2802_v19 = vpop.permute.xlu0 %2801 }
 0x2e5   : > { %v2807_v23 = vsel %vm785_vm6, %v2802_v19, %v2804_v7  ;;  %v9238_v19 = vld [vmem:[%s11305_s8 + $0x18] sm:$0xf] }
 0x2e6   : > { %3748 = vperm.xlu0 %9627, %v3745_v18  }
 0x2e7   : > { %3657 = vrot.lane.b32.xlu1 %v3650_v63, %s11364_s1  ;;  %9204 = vmatmul.mubr.msk.f32.vlgmr.msra.gmra.mrb[2].mxu0 %vm788_vm9, %v9201_v21 }
 0x2e8   : > { %9213 = vmatpush1.msk.msra.mxu0 %vm792_vm8, %v2807_v23  ;;  %2880 = vmatprep.mubr.f32.mxu0 %v9646_v8 }
 0x2ea   : > { %3797 = vrot.lane.b32.xlu0 %v3796_v27, %s11369_s27 }
 0x2eb   : > { %2645 = vrot.lane.b32.xlu1 %v2644_v22, %s11365_s25  ;;  %9214 = vmatmul.mubr.msk.f32.vlgmr.msra.gmra.mrb[4].mxu0 %vm788_vm9, %v9211_v31  ;;  %v4533_v31 = vrot.slane %v9284_v28, %v9788_v5 }
 0x2ec   : > { %2969 = vmatprep.mubr.f32.mxu0 %v9646_v8 }
 0x2ee   : > { %3998 = vrot.lane.b32.xlu0 %v3997_v35, %s11366_s24 }
 0x2ef   : > { %3777 = vrot.lane.b32.xlu1 %v3776_v32, %s11364_s1  ;;  %v4537_v32 = vrot.slane %v9284_v28, %v9790_v6 }
 0x2f2   : > { %4311 = vrot.lane.b32.xlu0 %v4310_v39, %s11358_s26  ;;  %v9289_v39 = vld [vmem:[%s11355_s4 + $0x10] sm:$0x3] }
 0x2f3   : > { %4112 = vrot.lane.b32.xlu1 %v4111_v24, %s11359_s28  ;;  %v4538_v24 = vcombine.low %v4533_v31, %v4537_v32  ;;  %v4651_v41 = vrot.slane %v9289_v39, %v9790_v6 }
 0x2f7   : > { %4425 = vrot.lane.b32.xlu1 %v4424_v42, %s11361_s0  ;;  %v4762_v42 = vld [vmem:[%s11309_s12] sm:$0x3] }
 0x321   : > { %v2895_v43 = vpop.permute.xlu0 %2894 }
 0x324   : > { %v2893_v44 = vpop.permute.xlu1 %2892 }
 0x325   : > { %v2897_v45 = vsel %vm877_vm7, %v2893_v44, %v2895_v43 }
 0x326   : > { %9215 = vmatprep.subr.msk.mxu0 %vm792_vm8, %v2897_v45 }
 0x328   : > { %v2891_v46 = vpop.permute.xlu1 %2890 }
 0x329   : > { %v2896_v48 = vsel %vm877_vm7, %v2891_v46, %v2893_v44 }
 0x32a   : > { %9216 = vmatpush1.msk.msra.mxu0 %vm792_vm8, %v2896_v48 }
 0x32b   : > { %9217 = vmatmul.mubr.msk.f32.vlgmr.msra.gmra.mrb[4].mxu0 %vm788_vm9, %v2776_v47 }
 0x32c   : > { %v3007_v50 = vpop.permute.xlu1 %3006  ;;  %3081 = vmatprep.mubr.f32.mxu0 %v9646_v8 }
 0x32d   : > { %v3005_v49 = vpop.permute.xlu0 %3004 }
 0x32e   : > { %v3009_v51 = vsel %vm992_vm5, %v3005_v49, %v3007_v50 }
 0x32f   : > { %9220 = vmatprep.subr.msk.mxu0 %vm792_vm8, %v3009_v51 }
 0x331   : > { %v3003_v52 = vpop.permute.xlu0 %3002 }
 0x332   : > { %v3008_v54 = vsel %vm992_vm5, %v3003_v52, %v3005_v49 }
 0x333   : > { %9221 = vmatpush1.msk.msra.mxu0 %vm792_vm8, %v3008_v54 }
 0x334   : > { %9222 = vmatmul.mubr.msk.f32.vlgmr.msra.gmra.mrb[4].mxu0 %vm788_vm9, %v9219_v53  ;;  %v3119_v56 = vpop.permute.xlu1 %3118 }
 0x335   : > { %v3121_v55 = vpop.permute.xlu0 %3120  ;;  %3195 = vmatprep.mubr.f32.mxu0 %v9646_v8 }
 0x336   : > { %v3123_v57 = vsel %vm1109_vm4, %v3119_v56, %v3121_v55 }
 0x337   : > { %9225 = vmatprep.subr.msk.mxu0 %vm792_vm8, %v3123_v57  ;;  %v9206_v57 = vld [vmem:[%s11367_s23 + $0x20] sm:$0xf] }
 0x338   : > { %v3117_v59 = vpop.permute.xlu1 %3116 }
 0x339   : > { %v3122_v61 = vsel %vm1109_vm4, %v3117_v59, %v3119_v56 }
 0x33a   : > { %9226 = vmatpush1.msk.msra.mxu0 %vm792_vm8, %v3122_v61 }
 0x33b   : > { %9229 = vmatprep.subr.msk.mxu0 %vm792_vm8, %v3208_v58 }
 0x33c   : > { %9227 = vmatmul.mubr.msk.f32.vlgmr.msra.gmra.mrb[4].mxu0 %vm788_vm9, %v9224_v60  ;;  %v3318_v62 = vpop.permute.xlu0 %3317  ;;  %v3320_v63 = vpop.permute.xlu1 %3319 }
 0x33d   : > { %9230 = vmatpush1.msk.msra.mxu0 %vm792_vm8, %v10027_v10  ;;  %3280 = vmatprep.mubr.f32.mxu0 %v9646_v8  ;;  %v3322_v0 = vsel %vm1092_vm3, %v3318_v62, %v3320_v63 }
 0x33e   : > { %9234 = vmatprep.subr.msk.mxu0 %vm792_vm8, %v3322_v0 }
 0x340   : > { %v3316_v3 = vpop.permute.xlu0 %3315 }
 0x341   : > { %v3321_v7 = vsel %vm1092_vm3, %v3316_v3, %v3318_v62 }
 0x344   : > { %9231 = vmatmul.mubr.msk.f32.vlgmr.msra.gmra.mrb[4].mxu0 %vm788_vm9, %v9228_v4  ;;  %v3432_v9 = vpop.permute.xlu1 %3431  ;;  %v3434_v11 = vpop.permute.xlu0 %3433 }
 0x345   : > { %9235 = vmatpush1.msk.msra.mxu0 %vm792_vm8, %v3321_v7  ;;  %3394 = vmatprep.mubr.f32.mxu0 %v9646_v8  ;;  %v3436_v10 = vsel %vm975_vm2, %v3432_v9, %v3434_v11 }
 0x346   : > { %9239 = vmatprep.subr.msk.mxu0 %vm792_vm8, %v3436_v10 }
 0x348   : > { %v3430_v12 = vpop.permute.xlu1 %3429 }
 0x349   : > { %v3435_v14 = vsel %vm975_vm2, %v3430_v12, %v3432_v9 }
 0x34c   : > { %9236 = vmatmul.mubr.msk.f32.vlgmr.msra.gmra.mrb[4].mxu0 %vm788_vm9, %v9233_v13  ;;  %v3546_v15 = vpop.permute.xlu0 %3545  ;;  %v3548_v16 = vpop.permute.xlu1 %3547 }
 0x34d   : > { %9240 = vmatpush1.msk.msra.mxu0 %vm792_vm8, %v3435_v14  ;;  %3508 = vmatprep.mubr.f32.mxu0 %v9646_v8  ;;  %v3550_v17 = vsel %vm768_vm0, %v3546_v15, %v3548_v16 }
 0x34e   : > { %9244 = vmatprep.subr.msk.mxu0 %vm792_vm8, %v3550_v17 }
 0x350   : > { %v3544_v18 = vpop.permute.xlu0 %3543 }
 0x351   : > { %v3549_v20 = vsel %vm768_vm0, %v3544_v18, %v3546_v15 }
 0x354   : > { %9241 = vmatmul.mubr.msk.f32.vlgmr.msra.gmra.mrb[4].mxu0 %vm788_vm9, %v9238_v19  ;;  %v3662_v22 = vpop.permute.xlu0 %3661 }
 0x355   : > { %9245 = vmatpush1.msk.msra.mxu0 %vm792_vm8, %v3549_v20  ;;  %v3660_v21 = vpop.permute.xlu1 %3659  ;;  %3622 = vmatprep.mubr.f32.mxu0 %v9646_v8 }
 0x356   : > { %v3664_v23 = vsel %vm746_vm1, %v3660_v21, %v3662_v22 }
 0x357   : > { %9249 = vmatprep.subr.msk.mxu0 %vm792_vm8, %v3664_v23 }
 0x359   : > { %v3658_v25 = vpop.permute.xlu1 %3657 }
 0x35a   : > { %v3663_v27 = vsel %vm746_vm1, %v3658_v25, %v3660_v21 }
 0x35c   : > { %9246 = vmatmul.mubr.msk.f32.vlgmr.msra.gmra.mrb[4].mxu0 %vm788_vm9, %v9243_v26 }
 0x35d   : > { %9250 = vmatpush1.msk.msra.mxu0 %vm792_vm8, %v3663_v27  ;;  %v2646_v30 = vpop.permute.xlu1 %2645  ;;  %3736 = vmatprep.mubr.f32.mxu0 %v9646_v8 }
 0x35e   : > { %v2647_v1 = vrot.slane %v2646_v30, 4  ;;  %9294 = vmatprep.subr.msk.mxu0 %vm792_vm8, %v4770_v36 }
 0x360   : > { %v2648_v34 = vsel %vm877_vm7, %v2647_v1, %v2646_v30  ;;  %v2652_v35 = vmul.f32 %v2647_v1, %v2633_v29 }
 0x361   : > { %v2651_v37 = vmul.f32 %v2648_v34, %v10016_v2  ;;  %v4647_v2 = vrot.slane %v9289_v39, %v9788_v5  ;;  %v3778_v47 = vpop.permute.xlu1 %3777 }
 0x362   : > { %2662 = vrot.lane.b32.xlu1 %v2652_v35, %s11364_s1  ;;  %v3779_v9 = vrot.slane %v3778_v47, 4 }
 0x363   : > { %v2657_v40 = vcombine.high %v2651_v37, %v2651_v37  ;;  %v4652_v43 = vcombine.low %v4647_v2, %v4651_v41 }
 0x364   : > { %9251 = vmatmul.mubr.msk.f32.vlgmr.msra.gmra.mrb[4].mxu0 %vm788_vm9, %v9248_v38  ;;  %v3780_v10 = vsel %vm746_vm1, %v3779_v9, %v3778_v47 }
 0x365   : > { %2660 = vrot.lane.b32.xlu0 %v2657_v40, %s11364_s1  ;;  %9295 = vmatpush1.msk.msra.mxu0 %vm792_vm8, %v728_v33  ;;  %v3749_v46 = vpop.permute.xlu0 %3748  ;;  %v10373_v49 = vpop.permute.xlu1 %4112  ;;  %v4299_v33 = vld [vmem:[#allocation2 + $0xc] sm:$0xf] }
 0x366   : > { %4539 = vrot.lane.b32.xlu1 %v4538_v24, %s11360_s6  ;;  %4842 = vmatprep.mubr.f32.mxu0 %v9646_v8  ;;  %v4114_v21 = vrot.slane %v10373_v49, 4 }
 0x368   : > { %9296 = vmatmul.mubr.msk.f32.vlgmr.msra.gmra.mrb[6].mxu0 %vm788_vm9, %v4762_v42  ;;  %v4115_v23 = vsel %vm1092_vm3, %v4114_v21, %v10373_v49 }
 0x369   : > { %2658 = vrot.lane.b32.xlu0 %v2651_v37, %s11364_s1  ;;  %5016 = vmatprep.mubr.f32.mxu0 %v9646_v8  ;;  %v3798_v48 = vpop.permute.xlu0 %3797  ;;  %v10375_v51 = vpop.permute.xlu1 %4425 }
 0x36a   : > { %v3799_v11 = vrot.slane %v3798_v48, 4  ;;  %v4427_v32 = vrot.slane %v10375_v51, 4 }
 0x36c   : > { %v3800_v12 = vsel %vm768_vm0, %v3799_v11, %v3798_v48  ;;  %v4428_v36 = vsel %vm992_vm5, %v4427_v32, %v10375_v51  ;;  %v4527_v48 = vld [vmem:[#allocation2 + $0xc] sm:$0xf] }
 0x36d   : > { %4653 = vrot.lane.b32.xlu0 %v4652_v43, %s11365_s25  ;;  %v3999_v50 = vpop.permute.xlu0 %3998 }
 0x36e   : > { %v4000_v19 = vrot.slane %v3999_v50, 4 }
 0x370   : > { %v4001_v22 = vsel %vm975_vm2, %v4000_v19, %v3999_v50 }
 0x371   : > { %v4312_v52 = vpop.permute.xlu0 %4311 }
 0x372   : > { %v4313_v1 = vrot.slane %v4312_v52, 4 }
 0x374   : > { %v4314_v34 = vsel %vm1109_vm4, %v4313_v1, %v4312_v52  ;;  %v4318_v37 = vmul.f32 %v4313_v1, %v4299_v33 }
 0x3ba   : > { %v10369_v44 = vpop.f32.mrb[2].mxu0 }
 0x3bb   : > { %v10371_v45 = vpop.f32.mrb[3].mxu0 }
 0x3d4   : > { %v2663_v53 = vpop.permute.xlu1 %2662 }
 0x3d7   : > { %v2661_v54 = vpop.permute.xlu0 %2660 }
 0x3d8   : > { %v2665_v55 = vsel %vm746_vm1, %v2661_v54, %v2663_v53  ;;  %v4540_v39 = vpop.permute.xlu1 %4539 }
 0x3d9   : > { %9207 = vmatprep.subr.msk.mxu1 %vm792_vm8, %v2665_v55  ;;  %v4541_v42 = vrot.slane %v4540_v39, 4 }
 0x3db   : > { %v2659_v56 = vpop.permute.xlu0 %2658  ;;  %v4542_v49 = vsel %vm785_vm6, %v4541_v42, %v4540_v39  ;;  %v4546_v53 = vmul.f32 %v4541_v42, %v4527_v48 }
 0x3dc   : > { %v2664_v58 = vsel %vm746_vm1, %v2659_v56, %v2661_v54 }
 0x3dd   : > { %9208 = vmatpush1.msk.msra.mxu1 %vm792_vm8, %v2664_v58  ;;  %v9303_v58 = vld [vmem:[%s11355_s4 + $0x2] sm:$0x3] }
 0x3de   : > { %9209 = vmatmul.mubr.msk.f32.vlgmr.msra.gmra.mrb[0].mxu1 %vm788_vm9, %v9206_v57  ;;  %v4641_v57 = vld [vmem:[#allocation2 + $0xc] sm:$0xf] }
 0x3df   : > { %3889 = vmatprep.mubr.f32.mxu1 %v9646_v8  ;;  %v4654_v2 = vpop.permute.xlu0 %4653 }
 0x3e0   : > { %v4655_v47 = vrot.slane %v4654_v2, 4 }
 0x3e2   : > { %v4656_v51 = vsel %vm877_vm7, %v4655_v47, %v4654_v2 }
 0x437   : > { %v3738_v59 = vpop.f32.mrb[4].mxu0 }
 0x438   : > { %v3751_v60 = vadd.f32 %v3749_v46, %v3738_v59  ;;  %v3740_v61 = vpop.f32.mrb[5].mxu0  ;;  %v4660_v59 = vmul.f32 %v4655_v47, %v4641_v57 }
 0x439   : > { %v3752_v62 = vadd.f32 %v3749_v46, %v3740_v61  ;;  %v4413_v46 = vld [vmem:[#allocation2 + $0xc] sm:$0xf]  ;;  %v5059_v61 = vrot.slane %v9303_v58, %v9790_v6 }
 0x43a   : > { %vm3753_vm12 = vcmp.ge.f32.partialorder %v3751_v60, 0.0  ;;  %v3755_v63 = vmul.f32 0.2, %v3751_v60  ;;  %v4432_v50 = vmul.f32 %v4427_v32, %v4413_v46 }
 0x43b   : > { %vm3754_vm13 = vcmp.ge.f32.partialorder %v3752_v62, 0.0  ;;  %v3756_v0 = vmul.f32 0.2, %v3752_v62 }
 0x43c   : > { %v3757_v3 = vsel %vm3753_vm12, %v3751_v60, %v3755_v63  ;;  %v5055_v60 = vrot.slane %v9303_v58, %v9788_v5  ;;  %v9311_v63 = vld [vmem:[%s11355_s4 + $0x4] sm:$0x3] }
 0x43d   : > { %v10386_v4 = vsel %vm3754_vm13, %v3752_v62, %v3756_v0  ;;  %v4754_v62 = vld [vmem:[%s11308_s11] sm:$0xf] }
 0x43e   : > { %v10389_v7 = vcombine.low %v3757_v3, %v10386_v4  ;;  %v2746_v0 = vld [vmem:[%s11304_s7] sm:$0xf] }
 0x43f   : > { %v5030_v3 = vld [vmem:[%s11355_s4] sm:$0x3] }
 0x440   : > { %3763 = vst [vmem:[#allocation2 + $0x4] sm:$0xff] %v10389_v7  ;;  %v4317_v24 = vmul.f32 %v4314_v34, %v10389_v7  ;;  %v4431_v40 = vmul.f32 %v4428_v36, %v10389_v7  ;;  %v4545_v52 = vmul.f32 %v4542_v49, %v10389_v7  ;;  %v4659_v54 = vmul.f32 %v4656_v51, %v10389_v7  ;;  %v4850_v34 = vld [vmem:[%s11312_s15] sm:$0x3]  ;;  %v9253_v49 = vld [vmem:[%s11307_s10 + $0x4] sm:$0xf] }
 0x442   : > { %v4323_v41 = vcombine.high %v4317_v24, %v4317_v24  ;;  %v4437_v43 = vcombine.high %v4431_v40, %v4431_v40  ;;  %v4551_v55 = vcombine.high %v4545_v52, %v4545_v52  ;;  %v4665_v56 = vcombine.high %v4659_v54, %v4659_v54 }
 0x447   : > { %v3765_v13 = vld [vmem:[#allocation2 + $0x8] sm:$0xf]  ;;  %v3764_v14 = vld [vmem:[#allocation2] sm:$0xff] }
 0x448   : > { %v3804_v15 = vmul.f32 %v3799_v11, %v3765_v13  ;;  %v3803_v16 = vmul.f32 %v3800_v12, %v3764_v14  ;;  %v3783_v17 = vmul.f32 %v3780_v10, %v3764_v14  ;;  %v3986_v25 = vld [vmem:[#allocation2 + $0x8] sm:$0xf]  ;;  %v3784_v26 = vmul.f32 %v3779_v9, %v3765_v13 }
 0x449   : > { %v4004_v27 = vmul.f32 %v4001_v22, %v3764_v14  ;;  %v4005_v28 = vmul.f32 %v4000_v19, %v3986_v25  ;;  %v4118_v29 = vmul.f32 %v4115_v23, %v3764_v14  ;;  %v4100_v35 = vld [vmem:[#allocation2 + $0x8] sm:$0xf]  ;;  %v5060_v9 = vcombine.low %v5055_v60, %v5059_v61 }
 0x44a   : > { %3814 = vrot.lane.b32.xlu0 %v3804_v15, %s11360_s6  ;;  %v3809_v18 = vcombine.high %v3803_v16, %v3803_v16  ;;  %v3898_v20 = vcombine.high %v3783_v17, %v3783_v17  ;;  %v4119_v38 = vmul.f32 %v4114_v21, %v4100_v35  ;;  %v5258_v11 = vrot.slane %v9311_v63, %v9788_v5  ;;  %v9325_v12 = vld [vmem:[%s11355_s4 + $0xa] sm:$0x3]  ;;  %v4763_v15 = vld [vmem:[%s11310_s13] sm:$0x3] }
 0x44b   : > { %v4010_v30 = vcombine.high %v4004_v27, %v4004_v27  ;;  %v4124_v31 = vcombine.high %v4118_v29, %v4118_v29  ;;  %v5262_v10 = vrot.slane %v9311_v63, %v9790_v6  ;;  %v5035_v13 = vrot.slane %v5030_v3, %v9788_v5 }
 0x44c   : > { %3812 = vrot.lane.b32.xlu1 %v3809_v18, %s11360_s6  ;;  %v5039_v14 = vrot.slane %v5030_v3, %v9790_v6  ;;  %v5571_v18 = vrot.slane %v9325_v12, %v9788_v5  ;;  %v5575_v19 = vrot.slane %v9325_v12, %v9790_v6  ;;  %v9636_v3 = vcombine.low %v10386_v4, %v10386_v4 }
 0x44e   : > { %3901 = vrot.lane.b32.xlu0 %v3898_v20, %s11365_s25  ;;  %v10465_v20 = vpop.f32.mrb[6].mxu0  ;;  %v5040_v21 = vcombine.low %v5035_v13, %v5039_v14 }
 0x44f   : > { %v10469_v25 = vpop.f32.mrb[7].mxu0 }
 0x450   : > { %3810 = vrot.lane.b32.xlu1 %v3803_v16, %s11360_s6  ;;  %v9316_v16 = vld [vmem:[%s11355_s4 + $0x6] sm:$0x3] }
 0x451   : > { %v5372_v22 = vrot.slane %v9316_v16, %v9788_v5  ;;  %v5376_v23 = vrot.slane %v9316_v16, %v9790_v6 }
 0x452   : > { %3899 = vrot.lane.b32.xlu0 %v3783_v17, %s11365_s25  ;;  %v5263_v17 = vcombine.low %v5258_v11, %v5262_v10  ;;  %v9266_v11 = vld [vmem:[%s11307_s10 + $0xc] sm:$0xf] }
 0x454   : > { %3903 = vrot.lane.b32.xlu1 %v3784_v26, %s11365_s25  ;;  %v9330_v26 = vld [vmem:[%s11355_s4 + $0xc] sm:$0x3] }
 0x455   : > { %v5689_v1 = vrot.slane %v9330_v26, %v9790_v6 }
 0x456   : > { %4015 = vrot.lane.b32.xlu0 %v4005_v28, %s11361_s0  ;;  %v9340_v28 = vld [vmem:[%s11355_s4 + $0x10] sm:$0x3] }
 0x457   : > { %v5913_v32 = vrot.slane %v9340_v28, %v9788_v5  ;;  %v5917_v33 = vrot.slane %v9340_v28, %v9790_v6 }
 0x458   : > { %4013 = vrot.lane.b32.xlu1 %v4010_v30, %s11361_s0  ;;  %v5685_v30 = vrot.slane %v9330_v26, %v9788_v5 }
 0x45a   : > { %4127 = vrot.lane.b32.xlu0 %v4124_v31, %s11358_s26  ;;  %v9335_v31 = vld [vmem:[%s11355_s4 + $0xe] sm:$0x3]  ;;  %v5690_v35 = vcombine.low %v5685_v30, %v5689_v1 }
 0x45b   : > { %v5799_v36 = vrot.slane %v9335_v31, %v9788_v5 }
 0x45c   : > { %4011 = vrot.lane.b32.xlu1 %v4004_v27, %s11361_s0  ;;  %v5576_v27 = vcombine.low %v5571_v18, %v5575_v19  ;;  %v9275_v19 = vld [vmem:[%s11307_s10 + $0x14] sm:$0xf] }
 0x45e   : > { %4125 = vrot.lane.b32.xlu0 %v4118_v29, %s11358_s26  ;;  %v5377_v29 = vcombine.low %v5372_v22, %v5376_v23 }
 0x460   : > { %4129 = vrot.lane.b32.xlu1 %v4119_v38, %s11358_s26  ;;  %v5918_v38 = vcombine.low %v5913_v32, %v5917_v33  ;;  %v9285_v32 = vld [vmem:[%s11307_s10 + $0x1c] sm:$0xf] }
 0x462   : > { %4328 = vrot.lane.b32.xlu0 %v4318_v37, %s11359_s28  ;;  %v5803_v37 = vrot.slane %v9335_v31, %v9790_v6 }
 0x464   : > { %4326 = vrot.lane.b32.xlu1 %v4323_v41, %s11359_s28 }
 0x466   : > { %4440 = vrot.lane.b32.xlu0 %v4437_v43, %s11366_s24 }
 0x468   : > { %4324 = vrot.lane.b32.xlu1 %v4317_v24, %s11359_s28  ;;  %v5804_v24 = vcombine.low %v5799_v36, %v5803_v37 }
 0x46a   : > { %4438 = vrot.lane.b32.xlu0 %v4431_v40, %s11366_s24 }
 0x46c   : > { %4442 = vrot.lane.b32.xlu1 %v4432_v50, %s11366_s24 }
 0x46e   : > { %4556 = vrot.lane.b32.xlu0 %v4546_v53, %s11369_s27 }
 0x470   : > { %4554 = vrot.lane.b32.xlu1 %v4551_v55, %s11369_s27  ;;  %v3785_v55 = vld [vmem:[%s11307_s10] sm:$0xf] }
 0x472   : > { %4668 = vrot.lane.b32.xlu0 %v4665_v56, %s11364_s1 }
 0x474   : > { %4552 = vrot.lane.b32.xlu1 %v4545_v52, %s11369_s27 }
 0x476   : > { %4666 = vrot.lane.b32.xlu0 %v4659_v54, %s11364_s1 }
 0x478   : > { %4670 = vrot.lane.b32.xlu1 %v4660_v59, %s11364_s1 }
 0x47a   : > { %4757 = vperm.xlu0 %9627, %v4754_v62   ;;  %v9261_v62 = vld [vmem:[%s11307_s10 + $0x8] sm:$0xf] }
 0x47c   : > { %2749 = vperm.xlu1 %9628, %v2746_v0  }
 0x47e   : > { %5061 = vrot.lane.b32.xlu0 %v5060_v9, %s11369_s27 }
 0x480   : > { %4766 = vperm.xlu1 %9628, %v4763_v15   ;;  %v9270_v15 = vld [vmem:[%s11307_s10 + $0x10] sm:$0xf] }
 0x482   : > { %5264 = vrot.lane.b32.xlu0 %v5263_v17, %s11366_s24 }
 0x484   : > { %5041 = vrot.lane.b32.xlu1 %v5040_v21, %s11364_s1 }
 0x486   : > { %5577 = vrot.lane.b32.xlu0 %v5576_v27, %s11358_s26  ;;  %v9280_v27 = vld [vmem:[%s11307_s10 + $0x18] sm:$0xf] }
 0x488   : > { %5378 = vrot.lane.b32.xlu1 %v5377_v29, %s11359_s28 }
 0x48a   : > { %4853 = vperm.xlu0 %9627, %v4850_v34  }
 0x48c   : > { %5691 = vrot.lane.b32.xlu1 %v5690_v35, %s11361_s0 }
 0x48e   : > { %5919 = vrot.lane.b32.xlu0 %v5918_v38, %s11365_s25 }
 0x490   : > { %5805 = vrot.lane.b32.xlu1 %v5804_v24, %s11360_s6 }
 0x4b1   : > { %v2739_v39 = vpop.f32.mrb[0].mxu1 }
 0x4b2   : > { %v10497_v40 = vadd.f32 %v2739_v39, %v10369_v44  ;;  %v2741_v2 = vpop.f32.mrb[1].mxu1 }
 0x4b3   : > { %v10500_v41 = vadd.f32 %v2741_v2, %v10371_v45  ;;  %v9290_v2 = vld [vmem:[%s11307_s10 + $0x20] sm:$0xf] }
 0x4bc   : > { %v3815_v42 = vpop.permute.xlu0 %3814 }
 0x4be   : > { %v3813_v43 = vpop.permute.xlu1 %3812 }
 0x4bf   : > { %v3817_v46 = vsel %vm785_vm6, %v3813_v43, %v3815_v42 }
 0x4c0   : > { %v3902_v47 = vpop.permute.xlu0 %3901  ;;  %9254 = vmatprep.subr.msk.mxu1 %vm792_vm8, %v3817_v46 }
 0x4c2   : > { %v3811_v48 = vpop.permute.xlu1 %3810 }
 0x4c3   : > { %v3816_v50 = vsel %vm785_vm6, %v3811_v48, %v3813_v43 }
 0x4c4   : > { %v3900_v44 = vpop.permute.xlu0 %3899  ;;  %9255 = vmatpush1.msk.msra.mxu1 %vm792_vm8, %v3816_v50 }
 0x4c5   : > { %9256 = vmatmul.mubr.msk.f32.vlgmr.msra.gmra.mrb[2].mxu1 %vm788_vm9, %v9253_v49  ;;  %v3905_v52 = vsel %vm877_vm7, %v3900_v44, %v3902_v47 }
 0x4c6   : > { %v3904_v45 = vpop.permute.xlu1 %3903  ;;  %3978 = vmatprep.mubr.f32.mxu1 %v9646_v8 }
 0x4c7   : > { %v3906_v51 = vsel %vm877_vm7, %v3902_v47, %v3904_v45 }
 0x4c8   : > { %v4016_v53 = vpop.permute.xlu0 %4015  ;;  %9257 = vmatprep.subr.msk.mxu1 %vm792_vm8, %v3906_v51 }
 0x4c9   : > { %9258 = vmatpush1.msk.msra.mxu1 %vm792_vm8, %v3905_v52 }
 0x4ca   : > { %v4014_v54 = vpop.permute.xlu1 %4013 }
 0x4cb   : > { %v4018_v56 = vsel %vm992_vm5, %v4014_v54, %v4016_v53 }
 0x4cc   : > { %v4128_v57 = vpop.permute.xlu0 %4127  ;;  %9262 = vmatprep.subr.msk.mxu1 %vm792_vm8, %v4018_v56 }
 0x4cd   : > { %9259 = vmatmul.mubr.msk.f32.vlgmr.msra.gmra.mrb[2].mxu1 %vm788_vm9, %v3785_v55  ;;  %v9348_v55 = vld [vmem:[%s11355_s4 + $0x2] sm:$0x3] }
 0x4ce   : > { %v4012_v58 = vpop.permute.xlu1 %4011  ;;  %4090 = vmatprep.mubr.f32.mxu1 %v9646_v8 }
 0x4cf   : > { %v4017_v59 = vsel %vm992_vm5, %v4012_v58, %v4014_v54 }
 0x4d0   : > { %9263 = vmatpush1.msk.msra.mxu1 %vm792_vm8, %v4017_v59  ;;  %v4126_v60 = vpop.permute.xlu0 %4125 }
 0x4d1   : > { %v4131_v0 = vsel %vm1109_vm4, %v4126_v60, %v4128_v57  ;;  %v6145_v60 = vrot.slane %v9348_v55, %v9788_v5 }
 0x4d2   : > { %v4130_v61 = vpop.permute.xlu1 %4129 }
 0x4d3   : > { %v4132_v63 = vsel %vm1109_vm4, %v4128_v57, %v4130_v61  ;;  %v6149_v61 = vrot.slane %v9348_v55, %v9790_v6  ;;  %v5793_v55 = vld [vmem:[#allocation2 + $0xc] sm:$0x3] }
 0x4d4   : > { %9267 = vmatprep.subr.msk.mxu1 %vm792_vm8, %v4132_v63  ;;  %v4329_v10 = vpop.permute.xlu0 %4328 }
 0x4d5   : > { %9264 = vmatmul.mubr.msk.f32.vlgmr.msra.gmra.mrb[2].mxu1 %vm788_vm9, %v9261_v62 }
 0x4d6   : > { %9268 = vmatpush1.msk.msra.mxu1 %vm792_vm8, %v4131_v0  ;;  %v4327_v9 = vpop.permute.xlu1 %4326  ;;  %4204 = vmatprep.mubr.f32.mxu1 %v9646_v8 }
 0x4d7   : > { %9271 = vmatprep.subr.msk.mxu1 %vm792_vm8, %v9636_v3  ;;  %v4331_v4 = vsel %vm1092_vm3, %v4327_v9, %v4329_v10  ;;  %v6150_v3 = vcombine.low %v6145_v60, %v6149_v61  ;;  %v9353_v10 = vld [vmem:[%s11355_s4 + $0x4] sm:$0x3] }
 0x4d8   : > { %v4441_v13 = vpop.permute.xlu0 %4440 }
 0x4da   : > { %v4325_v12 = vpop.permute.xlu1 %4324 }
 0x4db   : > { %v4330_v16 = vsel %vm1092_vm3, %v4325_v12, %v4327_v9 }
 0x4dd   : > { %9269 = vmatmul.mubr.msk.f32.vlgmr.msra.gmra.mrb[2].mxu1 %vm788_vm9, %v9266_v11 }
 0x4de   : > { %9272 = vmatpush1.msk.msra.mxu1 %vm792_vm8, %v10389_v7  ;;  %4289 = vmatprep.mubr.f32.mxu1 %v9646_v8  ;;  %v4443_v14 = vpop.permute.xlu1 %4442  ;;  %v4439_v7 = vpop.permute.xlu0 %4438 }
 0x4df   : > { %9276 = vmatprep.subr.msk.mxu1 %vm792_vm8, %v4331_v4  ;;  %v4445_v17 = vsel %vm975_vm2, %v4441_v13, %v4443_v14  ;;  %v4444_v21 = vsel %vm975_vm2, %v4439_v7, %v4441_v13  ;;  %v6259_v14 = vrot.slane %v9353_v10, %v9788_v5 }
 0x4e2   : > { %v4555_v18 = vpop.permute.xlu1 %4554  ;;  %v4557_v22 = vpop.permute.xlu0 %4556 }
 0x4e3   : > { %v4559_v26 = vsel %vm768_vm0, %v4555_v18, %v4557_v22 }
 0x4e5   : > { %9273 = vmatmul.mubr.msk.f32.vlgmr.msra.gmra.mrb[2].mxu1 %vm788_vm9, %v9270_v15  ;;  %v6263_v15 = vrot.slane %v9353_v10, %v9790_v6 }
 0x4e6   : > { %9277 = vmatpush1.msk.msra.mxu1 %vm792_vm8, %v4330_v16  ;;  %4403 = vmatprep.mubr.f32.mxu1 %v9646_v8  ;;  %v4553_v23 = vpop.permute.xlu1 %4552  ;;  %v4669_v29 = vpop.permute.xlu0 %4668 }
 0x4e7   : > { %9281 = vmatprep.subr.msk.mxu1 %vm792_vm8, %v4445_v17  ;;  %v4558_v30 = vsel %vm768_vm0, %v4553_v23, %v4555_v18  ;;  %v6264_v18 = vcombine.low %v6259_v14, %v6263_v15  ;;  %v5907_v14 = vld [vmem:[#allocation2 + $0xc] sm:$0x3]  ;;  %v9382_v15 = vld [vmem:[%s11355_s4 + $0x10] sm:$0x3] }
 0x4ea   : > { %v4671_v28 = vpop.permute.xlu1 %4670  ;;  %v4667_v31 = vpop.permute.xlu0 %4666 }
 0x4eb   : > { %v4673_v1 = vsel %vm746_vm1, %v4669_v29, %v4671_v28  ;;  %v4672_v35 = vsel %vm746_vm1, %v4667_v31, %v4669_v29  ;;  %v5565_v31 = vld [vmem:[#allocation2 + $0xc] sm:$0x3] }
 0x4ed   : > { %9278 = vmatmul.mubr.msk.f32.vlgmr.msra.gmra.mrb[2].mxu1 %vm788_vm9, %v9275_v19 }
 0x4ee   : > { %9282 = vmatpush1.msk.msra.mxu1 %vm792_vm8, %v4444_v21  ;;  %4517 = vmatprep.mubr.f32.mxu1 %v9646_v8  ;;  %v9358_v21 = vld [vmem:[%s11355_s4 + $0x6] sm:$0x3] }
 0x4ef   : > { %9286 = vmatprep.subr.msk.mxu1 %vm792_vm8, %v4559_v26  ;;  %v6373_v26 = vrot.slane %v9358_v21, %v9788_v5 }
 0x4f5   : > { %9283 = vmatmul.mubr.msk.f32.vlgmr.msra.gmra.mrb[2].mxu1 %vm788_vm9, %v9280_v27  ;;  %v6377_v27 = vrot.slane %v9358_v21, %v9790_v6 }
 0x4f6   : > { %9287 = vmatpush1.msk.msra.mxu1 %vm792_vm8, %v4558_v30  ;;  %4631 = vmatprep.mubr.f32.mxu1 %v9646_v8 }
 0x4f7   : > { %9291 = vmatprep.subr.msk.mxu1 %vm792_vm8, %v4673_v1  ;;  %v6378_v1 = vcombine.low %v6373_v26, %v6377_v27  ;;  %v9304_v27 = vld [vmem:[%s11315_s18 + $0x4] sm:$0xf] }
 0x4f9   : > { %v10582_v36 = vpop.permute.xlu0 %4757 }
 0x4fb   : > { %v2750_v33 = vpop.permute.xlu1 %2749 }
 0x4fc   : > { %v10576_v34 = vadd.f32 %v10500_v41, %v2750_v33  ;;  %v10592_v41 = vadd.f32 %v10497_v40, %v2750_v33  ;;  %v6027_v40 = vld [vmem:[%s11355_s4] sm:$0x3] }
 0x4fd   : > { %9288 = vmatmul.mubr.msk.f32.vlgmr.msra.gmra.mrb[2].mxu1 %vm788_vm9, %v9285_v32  ;;  %v5062_v42 = vpop.permute.xlu0 %5061  ;;  %v6032_v48 = vrot.slane %v6027_v40, %v9788_v5  ;;  %v6036_v49 = vrot.slane %v6027_v40, %v9790_v6  ;;  %v9367_v32 = vld [vmem:[%s11355_s4 + $0xa] sm:$0x3] }
 0x4fe   : > { %9292 = vmatpush1.msk.msra.mxu1 %vm792_vm8, %v4672_v35  ;;  %4745 = vmatprep.mubr.f32.mxu1 %v9646_v8  ;;  %v5063_v43 = vrot.slane %v5062_v42, 4 }
 0x4ff   : > { %9297 = vmatprep.subr.msk.mxu1 %vm792_vm8, %v10576_v34  ;;  %v4767_v37 = vpop.permute.xlu1 %4766  ;;  %v6037_v54 = vcombine.low %v6032_v48, %v6036_v49 }
 0x500   : > { %v4845_v38 = vadd.f32 %v10465_v20, %v4767_v37  ;;  %v4847_v24 = vadd.f32 %v10469_v25, %v4767_v37  ;;  %v4849_v20 = vld [vmem:[%s11311_s14] sm:$0x3]  ;;  %v5064_v46 = vsel %vm768_vm0, %v5063_v43, %v5062_v42 }
 0x501   : > { %v5265_v56 = vpop.permute.xlu0 %5264 }
 0x502   : > { %v5025_v39 = vcombine.low %v4845_v38, %v4847_v24  ;;  %v5266_v58 = vrot.slane %v5265_v56, 4  ;;  %v6572_v38 = vrot.slane %v9367_v32, %v9788_v5  ;;  %v6576_v24 = vrot.slane %v9367_v32, %v9790_v6 }
 0x503   : > { %v5042_v25 = vpop.permute.xlu1 %5041 }
 0x504   : > { %5027 = vst [vmem:[#allocation2 + $0x4] sm:$0x33] %v5025_v39  ;;  %v5043_v47 = vrot.slane %v5042_v25, 4  ;;  %v5267_v0 = vsel %vm975_vm2, %v5266_v58, %v5265_v56 }
 0x505   : > { %9293 = vmatmul.mubr.msk.f32.vlgmr.msra.gmra.mrb[2].mxu1 %vm788_vm9, %v9290_v2  ;;  %v5578_v29 = vpop.permute.xlu0 %5577 }
 0x506   : > { %9298 = vmatpush1.msk.msra.mxu1 %vm792_vm8, %v10592_v41  ;;  %4929 = vmatprep.mubr.f32.mxu1 %v9646_v8  ;;  %v5044_v52 = vsel %vm746_vm1, %v5043_v47, %v5042_v25  ;;  %v5579_v30 = vrot.slane %v5578_v29, 4  ;;  %v9372_v25 = vld [vmem:[%s11355_s4 + $0xc] sm:$0x3] }
 0x507   : > { %v5379_v9 = vpop.permute.xlu1 %5378 }
 0x508   : > { %v5380_v4 = vrot.slane %v5379_v9, 4  ;;  %v5580_v35 = vsel %vm1109_vm4, %v5579_v30, %v5578_v29  ;;  %v5584_v37 = vmul.f32 %v5579_v30, %v5565_v31 }
 0x509   : > { %9299 = vmatmul.mubr.msk.f32.vlgmr.msra.gmra.mrb[4].mxu1 %vm788_vm9, %v4849_v20  ;;  %v5679_v20 = vld [vmem:[#allocation2 + $0xc] sm:$0x3] }
 0x50a   : > { %5155 = vmatprep.mubr.f32.mxu1 %v9646_v8  ;;  %v5381_v7 = vsel %vm1092_vm3, %v5380_v4, %v5379_v9  ;;  %v4937_v9 = vld [vmem:[%s11314_s17] sm:$0x3] }
 0x50b   : > { %v5029_v50 = vld [vmem:[#allocation2 + $0x8] sm:$0x3]  ;;  %v5028_v44 = vld [vmem:[#allocation2] sm:$0x33]  ;;  %v5692_v39 = vpop.permute.xlu1 %5691 }
 0x50c   : > { %v5068_v45 = vmul.f32 %v5063_v43, %v5029_v50  ;;  %v5067_v51 = vmul.f32 %v5064_v46, %v5028_v44  ;;  %v5047_v57 = vmul.f32 %v5044_v52, %v5028_v44  ;;  %v5048_v59 = vmul.f32 %v5043_v47, %v5029_v50  ;;  %v5251_v63 = vld [vmem:[#allocation2] sm:$0x33]  ;;  %v5252_v11 = vld [vmem:[#allocation2 + $0x8] sm:$0x3]  ;;  %v10653_v46 = vpop.permute.xlu0 %4853 }
 0x50d   : > { %v5270_v12 = vmul.f32 %v5267_v0, %v5251_v63  ;;  %v5271_v13 = vmul.f32 %v5266_v58, %v5252_v11  ;;  %v5365_v17 = vld [vmem:[#allocation2] sm:$0x33]  ;;  %v5366_v19 = vld [vmem:[#allocation2 + $0x8] sm:$0x3]  ;;  %v5693_v42 = vrot.slane %v5692_v39, 4  ;;  %v6577_v43 = vcombine.low %v6572_v38, %v6576_v24 }
 0x50e   : > { %5078 = vrot.lane.b32.xlu0 %v5068_v45, %s11360_s6  ;;  %v5073_v53 = vcombine.high %v5067_v51, %v5067_v51  ;;  %v5164_v62 = vcombine.high %v5047_v57, %v5047_v57  ;;  %v5384_v22 = vmul.f32 %v5381_v7, %v5365_v17  ;;  %v5385_v23 = vmul.f32 %v5380_v4, %v5366_v19  ;;  %v5564_v33 = vld [vmem:[#allocation2 + $0x4] sm:$0x33]  ;;  %v9377_v0 = vld [vmem:[%s11355_s4 + $0xe] sm:$0x3] }
 0x50f   : > { %v5276_v16 = vcombine.high %v5270_v12, %v5270_v12  ;;  %v5583_v2 = vmul.f32 %v5580_v35, %v5564_v33  ;;  %v5678_v47 = vld [vmem:[#allocation2 + $0x4] sm:$0x33]  ;;  %v5694_v48 = vsel %vm992_vm5, %v5693_v42, %v5692_v39  ;;  %v5698_v49 = vmul.f32 %v5693_v42, %v5679_v20  ;;  %v5806_v45 = vpop.permute.xlu1 %5805  ;;  %v5049_v33 = vld [vmem:[%s11315_s18] sm:$0xf] }
 0x510   : > { %5076 = vrot.lane.b32.xlu1 %v5073_v53, %s11360_s6  ;;  %v5390_v28 = vcombine.high %v5384_v22, %v5384_v22  ;;  %v6686_v50 = vrot.slane %v9372_v25, %v9788_v5  ;;  %v6690_v44 = vrot.slane %v9372_v25, %v9790_v6  ;;  %v5920_v52 = vpop.permute.xlu0 %5919  ;;  %v5807_v53 = vrot.slane %v5806_v45, 4  ;;  %v5792_v58 = vld [vmem:[#allocation2 + $0x4] sm:$0x33] }
 0x511   : > { %v5589_v40 = vcombine.high %v5583_v2, %v5583_v2  ;;  %v5921_v56 = vrot.slane %v5920_v52, 4  ;;  %v5906_v61 = vld [vmem:[#allocation2 + $0x4] sm:$0x33]  ;;  %v6800_v10 = vrot.slane %v9377_v0, %v9788_v5  ;;  %v6914_v17 = vrot.slane %v9382_v15, %v9788_v5 }
 0x512   : > { %6038 = vrot.lane.b32.xlu0 %v6037_v54, %s11364_s1  ;;  %v6691_v54 = vcombine.low %v6686_v50, %v6690_v44  ;;  %v5812_v60 = vmul.f32 %v5807_v53, %v5793_v55  ;;  %v6918_v7 = vrot.slane %v9382_v15, %v9790_v6  ;;  %v9312_v42 = vld [vmem:[%s11315_s18 + $0x8] sm:$0xf]  ;;  %v9317_v50 = vld [vmem:[%s11315_s18 + $0xc] sm:$0xf]  ;;  %v9321_v55 = vld [vmem:[%s11315_s18 + $0x10] sm:$0xf] }
 0x514   : > { %5074 = vrot.lane.b32.xlu1 %v5067_v51, %s11360_s6  ;;  %v5697_v51 = vmul.f32 %v5694_v48, %v5678_v47  ;;  %v5479_v47 = vld [vmem:[#allocation2 + $0x4] sm:$0x33] }
 0x516   : > { %5169 = vrot.lane.b32.xlu0 %v5048_v59, %s11365_s25  ;;  %v5808_v59 = vsel %vm785_vm6, %v5807_v53, %v5806_v45  ;;  %v5483_v45 = vcombine.high %v5479_v47, %v5479_v47 }
 0x517   : > { %v5811_v63 = vmul.f32 %v5808_v59, %v5792_v58 }
 0x518   : > { %5167 = vrot.lane.b32.xlu1 %v5164_v62, %s11365_s25  ;;  %v5922_v62 = vsel %vm877_vm7, %v5921_v56, %v5920_v52 }
 0x519   : > { %v5817_v11 = vcombine.high %v5811_v63, %v5811_v63 }
 0x51a   : > { %6151 = vrot.lane.b32.xlu0 %v6150_v3, %s11369_s27  ;;  %v5925_v3 = vmul.f32 %v5922_v62, %v5906_v61  ;;  %v9326_v61 = vld [vmem:[%s11315_s18 + $0x14] sm:$0xf] }
 0x51c   : > { %5165 = vrot.lane.b32.xlu1 %v5047_v57, %s11365_s25  ;;  %v5703_v57 = vcombine.high %v5697_v51, %v5697_v51  ;;  %v5931_v4 = vcombine.high %v5925_v3, %v5925_v3 }
 0x51e   : > { %5281 = vrot.lane.b32.xlu0 %v5271_v13, %s11361_s0 }
 0x520   : > { %5279 = vrot.lane.b32.xlu1 %v5276_v16, %s11361_s0  ;;  %v5926_v16 = vmul.f32 %v5921_v56, %v5907_v14  ;;  %v9336_v14 = vld [vmem:[%s11315_s18 + $0x1c] sm:$0xf] }
 0x522   : > { %6265 = vrot.lane.b32.xlu0 %v6264_v18, %s11366_s24  ;;  %v6919_v18 = vcombine.low %v6914_v17, %v6918_v7 }
 0x524   : > { %5277 = vrot.lane.b32.xlu1 %v5270_v12, %s11361_s0  ;;  %v6804_v12 = vrot.slane %v9377_v0, %v9790_v6 }
 0x526   : > { %5395 = vrot.lane.b32.xlu0 %v5385_v23, %s11358_s26  ;;  %v6805_v13 = vcombine.low %v6800_v10, %v6804_v12  ;;  %v9331_v10 = vld [vmem:[%s11315_s18 + $0x18] sm:$0xf] }
 0x528   : > { %5393 = vrot.lane.b32.xlu1 %v5390_v28, %s11358_s26 }
 0x52a   : > { %6379 = vrot.lane.b32.xlu0 %v6378_v1, %s11359_s28 }
 0x52c   : > { %5391 = vrot.lane.b32.xlu1 %v5384_v22, %s11358_s26 }
 0x52e   : > { %5594 = vrot.lane.b32.xlu0 %v5584_v37, %s11359_s28 }
 0x530   : > { %5590 = vrot.lane.b32.xlu1 %v5583_v2, %s11359_s28 }
 0x532   : > { %6578 = vrot.lane.b32.xlu0 %v6577_v43, %s11358_s26 }
 0x534   : > { %5592 = vrot.lane.b32.xlu1 %v5589_v40, %s11359_s28 }
 0x536   : > { %5708 = vrot.lane.b32.xlu0 %v5698_v49, %s11366_s24 }
 0x538   : > { %5704 = vrot.lane.b32.xlu1 %v5697_v51, %s11366_s24 }
 0x53a   : > { %6692 = vrot.lane.b32.xlu0 %v6691_v54, %s11361_s0 }
 0x53c   : > { %5706 = vrot.lane.b32.xlu1 %v5703_v57, %s11366_s24 }
 0x53e   : > { %5822 = vrot.lane.b32.xlu0 %v5812_v60, %s11369_s27 }
 0x540   : > { %5818 = vrot.lane.b32.xlu1 %v5811_v63, %s11369_s27 }
 0x542   : > { %4940 = vperm.xlu0 %9627, %v4937_v9  }
 0x544   : > { %5820 = vrot.lane.b32.xlu1 %v5817_v11, %s11369_s27 }
 0x546   : > { %5934 = vrot.lane.b32.xlu0 %v5931_v4, %s11364_s1 }
 0x548   : > { %6806 = vrot.lane.b32.xlu1 %v6805_v13, %s11360_s6 }
 0x54a   : > { %5932 = vrot.lane.b32.xlu0 %v5925_v3, %s11364_s1 }
 0x54c   : > { %5936 = vrot.lane.b32.xlu1 %v5926_v16, %s11364_s1 }
 0x550   : > { %6920 = vrot.lane.b32.xlu1 %v6919_v18, %s11365_s25 }
 0x580   : > { %v5079_v19 = vpop.permute.xlu0 %5078 }
 0x582   : > { %v5077_v21 = vpop.permute.xlu1 %5076 }
 0x583   : > { %v5081_v22 = vsel %vm785_vm6, %v5077_v21, %v5079_v19 }
 0x584   : > { %9305 = vmatprep.subr.msk.mxu1 %vm5086_vm14, %v5081_v22  ;;  %v10690_v23 = vpop.permute.xlu0 %6038 }
 0x586   : > { %v5075_v26 = vpop.permute.xlu1 %5074 }
 0x587   : > { %v5080_v28 = vsel %vm785_vm6, %v5075_v26, %v5077_v21 }
 0x588   : > { %9306 = vmatpush1.msk.msra.mxu1 %vm5086_vm14, %v5080_v28  ;;  %v5170_v29 = vpop.permute.xlu0 %5169  ;;  %v4936_v28 = vld [vmem:[%s11313_s16] sm:$0x3] }
 0x589   : > { %9307 = vmatmul.mubr.msk.f32.vlgmr.msra.gmra.mrb[6].mxu1 %vm5082_vm15, %v9304_v27 }
 0x58a   : > { %v5168_v30 = vpop.permute.xlu1 %5167  ;;  %5244 = vmatprep.mubr.f32.mxu1 %v9646_v8 }
 0x58b   : > { %v5172_v1 = vsel %vm877_vm7, %v5168_v30, %v5170_v29 }
 0x58c   : > { %9308 = vmatprep.subr.msk.mxu1 %vm5086_vm14, %v5172_v1  ;;  %v10701_v31 = vpop.permute.xlu0 %6151 }
 0x58e   : > { %v5166_v32 = vpop.permute.xlu1 %5165 }
 0x58f   : > { %v5171_v35 = vsel %vm877_vm7, %v5166_v32, %v5168_v30 }
 0x590   : > { %9309 = vmatpush1.msk.msra.mxu1 %vm5086_vm14, %v5171_v35  ;;  %v5282_v37 = vpop.permute.xlu0 %5281  ;;  %v6040_v35 = vrot.slane %v10690_v23, 4 }
 0x591   : > { %9310 = vmatmul.mubr.msk.f32.vlgmr.msra.gmra.mrb[6].mxu1 %vm5082_vm15, %v5049_v33 }
 0x592   : > { %v5280_v38 = vpop.permute.xlu1 %5279  ;;  %5356 = vmatprep.mubr.f32.mxu1 %v9646_v8 }
 0x593   : > { %v5284_v24 = vsel %vm992_vm5, %v5280_v38, %v5282_v37  ;;  %v6041_v37 = vsel %vm746_vm1, %v6040_v35, %v10690_v23  ;;  %v9390_v23 = vld [vmem:[%s11355_s4 + $0x2] sm:$0x3] }
 0x594   : > { %9313 = vmatprep.subr.msk.mxu1 %vm5086_vm14, %v5284_v24  ;;  %v10712_v39 = vpop.permute.xlu0 %6265 }
 0x596   : > { %v5278_v2 = vpop.permute.xlu1 %5277 }
 0x597   : > { %v5283_v43 = vsel %vm992_vm5, %v5278_v2, %v5280_v38  ;;  %v6153_v2 = vrot.slane %v10701_v31, 4 }
 0x598   : > { %9314 = vmatpush1.msk.msra.mxu1 %vm5086_vm14, %v5283_v43  ;;  %v5396_v20 = vpop.permute.xlu0 %5395 }
 0x599   : > { %9315 = vmatmul.mubr.msk.f32.vlgmr.msra.gmra.mrb[6].mxu1 %vm5082_vm15, %v9312_v42 }
 0x59a   : > { %v5394_v25 = vpop.permute.xlu1 %5393  ;;  %5470 = vmatprep.mubr.f32.mxu1 %v9646_v8 }
 0x59b   : > { %v5398_v40 = vsel %vm1109_vm4, %v5394_v25, %v5396_v20 }
 0x59c   : > { %9318 = vmatprep.subr.msk.mxu1 %vm5086_vm14, %v5398_v40  ;;  %v10723_v48 = vpop.permute.xlu0 %6379 }
 0x59e   : > { %v5392_v49 = vpop.permute.xlu1 %5391 }
 0x59f   : > { %v5397_v44 = vsel %vm1109_vm4, %v5392_v49, %v5394_v25  ;;  %v6154_v49 = vsel %vm768_vm0, %v6153_v2, %v10701_v31 }
 0x5a0   : > { %9319 = vmatpush1.msk.msra.mxu1 %vm5086_vm14, %v5397_v44  ;;  %v5595_v51 = vpop.permute.xlu0 %5594 }
 0x5a1   : > { %9322 = vmatprep.subr.msk.mxu1 %vm5086_vm14, %v5483_v45  ;;  %9320 = vmatmul.mubr.msk.f32.vlgmr.msra.gmra.mrb[6].mxu1 %vm5082_vm15, %v9317_v50 }
 0x5a2   : > { %9323 = vmatpush1.msk.msra.mxu1 %vm5086_vm14, %v5479_v47  ;;  %v5591_v52 = vpop.permute.xlu1 %5590  ;;  %5555 = vmatprep.mubr.f32.mxu1 %v9646_v8 }
 0x5a4   : > { %v10734_v53 = vpop.permute.xlu0 %6578 }
 0x5a6   : > { %v5593_v54 = vpop.permute.xlu1 %5592 }
 0x5a7   : > { %v5596_v56 = vsel %vm1092_vm3, %v5591_v52, %v5593_v54  ;;  %v5597_v57 = vsel %vm1092_vm3, %v5593_v54, %v5595_v51  ;;  %v7146_v51 = vrot.slane %v9390_v23, %v9788_v5  ;;  %v7150_v52 = vrot.slane %v9390_v23, %v9790_v6 }
 0x5a8   : > { %9327 = vmatprep.subr.msk.mxu1 %vm5086_vm14, %v5597_v57  ;;  %v5709_v58 = vpop.permute.xlu0 %5708  ;;  %v6267_v54 = vrot.slane %v10712_v39, 4 }
 0x5a9   : > { %9324 = vmatmul.mubr.msk.f32.vlgmr.msra.gmra.mrb[6].mxu1 %vm5082_vm15, %v9321_v55 }
 0x5aa   : > { %v5705_v59 = vpop.permute.xlu1 %5704  ;;  %9328 = vmatpush1.msk.msra.mxu1 %vm5086_vm14, %v5596_v56  ;;  %5669 = vmatprep.mubr.f32.mxu1 %v9646_v8  ;;  %v7151_v56 = vcombine.low %v7146_v51, %v7150_v52  ;;  %v6268_v57 = vsel %vm975_vm2, %v6267_v54, %v10712_v39 }
 0x5ac   : > { %v10750_v0 = vpop.permute.xlu0 %6692 }
 0x5ae   : > { %v5707_v60 = vpop.permute.xlu1 %5706 }
 0x5af   : > { %v5710_v62 = vsel %vm975_vm2, %v5705_v59, %v5707_v60  ;;  %v5711_v63 = vsel %vm975_vm2, %v5707_v60, %v5709_v58  ;;  %v9395_v59 = vld [vmem:[%s11355_s4 + $0x4] sm:$0x3] }
 0x5b0   : > { %9332 = vmatprep.subr.msk.mxu1 %vm5086_vm14, %v5711_v63  ;;  %v5823_v9 = vpop.permute.xlu0 %5822  ;;  %v7264_v63 = vrot.slane %v9395_v59, %v9790_v6 }
 0x5b1   : > { %9329 = vmatmul.mubr.msk.f32.vlgmr.msra.gmra.mrb[6].mxu1 %vm5082_vm15, %v9326_v61 }
 0x5b2   : > { %v5819_v3 = vpop.permute.xlu1 %5818  ;;  %9333 = vmatpush1.msk.msra.mxu1 %vm5086_vm14, %v5710_v62  ;;  %5783 = vmatprep.mubr.f32.mxu1 %v9646_v8  ;;  %v7260_v62 = vrot.slane %v9395_v59, %v9788_v5 }
 0x5b6   : > { %v5821_v11 = vpop.permute.xlu1 %5820 }
 0x5b7   : > { %v5824_v12 = vsel %vm768_vm0, %v5819_v3, %v5821_v11  ;;  %v5825_v4 = vsel %vm768_vm0, %v5821_v11, %v5823_v9  ;;  %v6381_v3 = vrot.slane %v10723_v48, 4  ;;  %v7265_v11 = vcombine.low %v7260_v62, %v7264_v63 }
 0x5b8   : > { %9337 = vmatprep.subr.msk.mxu1 %vm5086_vm14, %v5825_v4  ;;  %v9400_v4 = vld [vmem:[%s11355_s4 + $0x6] sm:$0x3] }
 0x5b9   : > { %9334 = vmatmul.mubr.msk.f32.vlgmr.msra.gmra.mrb[6].mxu1 %vm5082_vm15, %v9331_v10  ;;  %v6382_v10 = vsel %vm1092_vm3, %v6381_v3, %v10723_v48 }
 0x5ba   : > { %9338 = vmatpush1.msk.msra.mxu1 %vm5086_vm14, %v5824_v12  ;;  %5897 = vmatprep.mubr.f32.mxu1 %v9646_v8  ;;  %v10765_v13 = vpop.permute.xlu1 %6806 }
 0x5be   : > { %v5937_v16 = vpop.permute.xlu1 %5936 }
 0x5c1   : > { %v10770_v15 = vpop.permute.xlu0 %4940  ;;  %9339 = vmatmul.mubr.msk.f32.vlgmr.msra.gmra.mrb[6].mxu1 %vm5082_vm15, %v9336_v14 }
 0x5c2   : > { %6011 = vmatprep.mubr.f32.mxu1 %v9646_v8 }
 0x5c5   : > { %v5935_v17 = vpop.permute.xlu0 %5934 }
 0x5c6   : > { %v5939_v7 = vsel %vm746_vm1, %v5935_v17, %v5937_v16 }
 0x5c7   : > { %9342 = vmatprep.subr.msk.mxu1 %vm5086_vm14, %v5939_v7  ;;  %v7378_v7 = vrot.slane %v9400_v4, %v9790_v6 }
 0x5c9   : > { %v5933_v18 = vpop.permute.xlu0 %5932 }
 0x5ca   : > { %v5938_v19 = vsel %vm746_vm1, %v5933_v18, %v5935_v17  ;;  %v7374_v17 = vrot.slane %v9400_v4, %v9788_v5  ;;  %v6580_v18 = vrot.slane %v10734_v53, 4 }
 0x5cb   : > { %9343 = vmatpush1.msk.msra.mxu1 %vm5086_vm14, %v5938_v19 }
 0x5d8   : > { %v4747_v21 = vpop.f32.mrb[2].mxu1 }
 0x5d9   : > { %v4749_v22 = vpop.f32.mrb[3].mxu1  ;;  %v10782_v27 = vadd.f32 %v10582_v36, %v4747_v21  ;;  %v7379_v21 = vcombine.low %v7374_v17, %v7378_v7 }
 0x5da   : > { %v10779_v26 = vadd.f32 %v10582_v36, %v4749_v22  ;;  %v9341_v36 = vld [vmem:[%s11315_s18 + $0x20] sm:$0xf]  ;;  %v6566_v22 = vld [vmem:[#allocation2 + $0xc] sm:$0x3] }
 0x5db   : > { %9344 = vmatmul.mubr.msk.f32.vlgmr.msra.gmra.mrb[6].mxu1 %vm5082_vm15, %v9341_v36 }
 0x5dc   : > { %v4931_v29 = vpop.f32.mrb[4].mxu1  ;;  %9300 = vmatprep.subr.msk.mxu0 %vm792_vm8, %v10779_v26  ;;  %6129 = vmatprep.mubr.f32.mxu1 %v9646_v8 }
 0x5dd   : > { %v4932_v30 = vadd.f32 %v4931_v29, %v10653_v46  ;;  %v4933_v1 = vpop.f32.mrb[5].mxu1  ;;  %9301 = vmatpush1.msk.msra.mxu0 %vm792_vm8, %v10782_v27 }
 0x5de   : > { %v4934_v32 = vadd.f32 %v4933_v1, %v10653_v46  ;;  %9302 = vmatmul.mubr.msk.f32.vlgmr.msra.gmra.mrb[8].mxu0 %vm788_vm9, %v4936_v28  ;;  %v7028_v46 = vld [vmem:[%s11355_s4] sm:$0x3]  ;;  %v6581_v28 = vsel %vm1109_vm4, %v6580_v18, %v10734_v53  ;;  %v6585_v1 = vmul.f32 %v6580_v18, %v6566_v22  ;;  %v9349_v22 = vld [vmem:[%s11316_s19 + $0x4] sm:$0xf] }
 0x5df   : > { %8158 = vmatprep.mubr.f32.mxu0 %v9646_v8  ;;  %v7033_v38 = vrot.slane %v7028_v46, %v9788_v5  ;;  %v7037_v24 = vrot.slane %v7028_v46, %v9790_v6 }
 0x5e0   : > { %v6022_v33 = vcombine.low %v4932_v30, %v4934_v32  ;;  %v9409_v30 = vld [vmem:[%s11355_s4 + $0xa] sm:$0x3] }
 0x5e1   : > { %v7038_v47 = vcombine.low %v7033_v38, %v7037_v24  ;;  %v7573_v36 = vrot.slane %v9409_v30, %v9788_v5 }
 0x5e2   : > { %6024 = vst [vmem:[#allocation2 + $0x4] sm:$0x33] %v6022_v33  ;;  %v7577_v33 = vrot.slane %v9409_v30, %v9790_v6 }
 0x5e4   : > { %v7578_v46 = vcombine.low %v7573_v36, %v7577_v33  ;;  %v9354_v33 = vld [vmem:[%s11316_s19 + $0x8] sm:$0xf] }
 0x5e9   : > { %v6026_v42 = vld [vmem:[#allocation2 + $0x8] sm:$0x3]  ;;  %v6025_v43 = vld [vmem:[#allocation2] sm:$0x33] }
 0x5ea   : > { %v6045_v20 = vmul.f32 %v6040_v35, %v6026_v42  ;;  %v6044_v25 = vmul.f32 %v6041_v37, %v6025_v43  ;;  %v6138_v50 = vld [vmem:[#allocation2] sm:$0x33]  ;;  %v6139_v44 = vld [vmem:[#allocation2 + $0x8] sm:$0x3]  ;;  %v6694_v35 = vrot.slane %v10750_v0, 4 }
 0x5eb   : > { %v6157_v45 = vmul.f32 %v6154_v49, %v6138_v50  ;;  %v6158_v31 = vmul.f32 %v6153_v2, %v6139_v44  ;;  %v6252_v58 = vld [vmem:[#allocation2] sm:$0x33]  ;;  %v6253_v60 = vld [vmem:[#allocation2 + $0x8] sm:$0x3]  ;;  %v6680_v37 = vld [vmem:[#allocation2 + $0xc] sm:$0x3] }
 0x5ec   : > { %6054 = vrot.lane.b32.xlu1 %v6045_v20, %s11365_s25  ;;  %v6049_v40 = vcombine.high %v6044_v25, %v6044_v25  ;;  %v6271_v61 = vmul.f32 %v6268_v57, %v6252_v58  ;;  %v6272_v39 = vmul.f32 %v6267_v54, %v6253_v60  ;;  %v6366_v12 = vld [vmem:[#allocation2] sm:$0x33]  ;;  %v6367_v14 = vld [vmem:[#allocation2 + $0x8] sm:$0x3]  ;;  %v6695_v38 = vsel %vm992_vm5, %v6694_v35, %v10750_v0  ;;  %v9414_v2 = vld [vmem:[%s11355_s4 + $0xc] sm:$0x3] }
 0x5ed   : > { %v6163_v55 = vcombine.high %v6157_v45, %v6157_v45  ;;  %v6385_v16 = vmul.f32 %v6382_v10, %v6366_v12  ;;  %v6386_v48 = vmul.f32 %v6381_v3, %v6367_v14  ;;  %v6565_v29 = vld [vmem:[#allocation2 + $0x4] sm:$0x33]  ;;  %v6699_v42 = vmul.f32 %v6694_v35, %v6680_v37  ;;  %v6794_v49 = vld [vmem:[#allocation2 + $0xc] sm:$0x3]  ;;  %v9419_v44 = vld [vmem:[%s11355_s4 + $0xe] sm:$0x3] }
 0x5ee   : > { %6052 = vrot.lane.b32.xlu0 %v6049_v40, %s11365_s25  ;;  %v6277_v9 = vcombine.high %v6271_v61, %v6271_v61  ;;  %v6584_v32 = vmul.f32 %v6581_v28, %v6565_v29  ;;  %v6679_v24 = vld [vmem:[#allocation2 + $0x4] sm:$0x33]  ;;  %v7687_v20 = vrot.slane %v9414_v2, %v9788_v5  ;;  %v6808_v40 = vrot.slane %v10765_v13, 4  ;;  %v6908_v58 = vld [vmem:[#allocation2 + $0xc] sm:$0x3] }
 0x5ef   : > { %v6391_v19 = vcombine.high %v6385_v16, %v6385_v16  ;;  %v6698_v43 = vmul.f32 %v6695_v38, %v6679_v24  ;;  %v6793_v23 = vld [vmem:[#allocation2 + $0x4] sm:$0x33]  ;;  %v7801_v54 = vrot.slane %v9419_v44, %v9788_v5  ;;  %v9424_v60 = vld [vmem:[%s11355_s4 + $0x10] sm:$0x3] }
 0x5f0   : > { %7039 = vrot.lane.b32.xlu1 %v7038_v47, %s11364_s1  ;;  %v6590_v53 = vcombine.high %v6584_v32, %v6584_v32  ;;  %v6809_v50 = vsel %vm785_vm6, %v6808_v40, %v10765_v13  ;;  %v6813_v51 = vmul.f32 %v6808_v40, %v6794_v49  ;;  %v6907_v57 = vld [vmem:[#allocation2 + $0x4] sm:$0x33]  ;;  %v7915_v63 = vrot.slane %v9424_v60, %v9788_v5 }
 0x5f1   : > { %v6704_v0 = vcombine.high %v6698_v43, %v6698_v43  ;;  %v6812_v52 = vmul.f32 %v6809_v50, %v6793_v23  ;;  %v7919_v3 = vrot.slane %v9424_v60, %v9790_v6  ;;  %v6480_v24 = vld [vmem:[#allocation2 + $0x4] sm:$0x33]  ;;  %v9363_v50 = vld [vmem:[%s11316_s19 + $0x10] sm:$0xf]  ;;  %v9373_v60 = vld [vmem:[%s11316_s19 + $0x18] sm:$0xf] }
 0x5f2   : > { %6050 = vrot.lane.b32.xlu0 %v6044_v25, %s11365_s25  ;;  %v7691_v25 = vrot.slane %v9414_v2, %v9790_v6 }
 0x5f3   : > { %v6818_v13 = vcombine.high %v6812_v52, %v6812_v52 }
 0x5f4   : > { %6168 = vrot.lane.b32.xlu1 %v6158_v31, %s11360_s6  ;;  %v7692_v47 = vcombine.low %v7687_v20, %v7691_v25  ;;  %v7805_v31 = vrot.slane %v9419_v44, %v9790_v6  ;;  %v6484_v20 = vcombine.high %v6480_v24, %v6480_v24 }
 0x5f6   : > { %6166 = vrot.lane.b32.xlu0 %v6163_v55, %s11360_s6 }
 0x5f8   : > { %7152 = vrot.lane.b32.xlu1 %v7151_v56, %s11369_s27  ;;  %v7806_v56 = vcombine.low %v7801_v54, %v7805_v31  ;;  %v9368_v31 = vld [vmem:[%s11316_s19 + $0x14] sm:$0xf] }
 0x5fa   : > { %6164 = vrot.lane.b32.xlu0 %v6157_v45, %s11360_s6  ;;  %v6921_v45 = vpop.permute.xlu1 %6920 }
 0x5fb   : > { %v6922_v55 = vrot.slane %v6921_v45, 4 }
 0x5fc   : > { %6282 = vrot.lane.b32.xlu1 %v6272_v39, %s11361_s0 }
 0x5fd   : > { %v6923_v59 = vsel %vm877_vm7, %v6922_v55, %v6921_v45  ;;  %v6927_v62 = vmul.f32 %v6922_v55, %v6908_v58 }
 0x5fe   : > { %6280 = vrot.lane.b32.xlu0 %v6277_v9, %s11361_s0  ;;  %v7920_v9 = vcombine.low %v7915_v63, %v7919_v3 }
 0x600   : > { %7266 = vrot.lane.b32.xlu1 %v7265_v11, %s11366_s24 }
 0x602   : > { %6278 = vrot.lane.b32.xlu0 %v6271_v61, %s11361_s0  ;;  %v6926_v61 = vmul.f32 %v6923_v59, %v6907_v57 }
 0x604   : > { %6396 = vrot.lane.b32.xlu1 %v6386_v48, %s11358_s26  ;;  %v6932_v39 = vcombine.high %v6926_v61, %v6926_v61 }
 0x606   : > { %6394 = vrot.lane.b32.xlu0 %v6391_v19, %s11358_s26 }
 0x608   : > { %7380 = vrot.lane.b32.xlu1 %v7379_v21, %s11359_s28 }
 0x60a   : > { %6392 = vrot.lane.b32.xlu0 %v6385_v16, %s11358_s26  ;;  %v6046_v16 = vld [vmem:[%s11316_s19] sm:$0xf] }
 0x60c   : > { %6595 = vrot.lane.b32.xlu1 %v6585_v1, %s11359_s28 }
 0x60e   : > { %6593 = vrot.lane.b32.xlu0 %v6590_v53, %s11359_s28 }
 0x610   : > { %7579 = vrot.lane.b32.xlu1 %v7578_v46, %s11358_s26 }
 0x612   : > { %6591 = vrot.lane.b32.xlu0 %v6584_v32, %s11359_s28 }
 0x614   : > { %6709 = vrot.lane.b32.xlu1 %v6699_v42, %s11366_s24  ;;  %v9359_v42 = vld [vmem:[%s11316_s19 + $0xc] sm:$0xf] }
 0x616   : > { %6707 = vrot.lane.b32.xlu0 %v6704_v0, %s11366_s24 }
 0x618   : > { %7693 = vrot.lane.b32.xlu1 %v7692_v47, %s11361_s0 }
 0x61a   : > { %6705 = vrot.lane.b32.xlu0 %v6698_v43, %s11366_s24 }
 0x61c   : > { %6823 = vrot.lane.b32.xlu1 %v6813_v51, %s11369_s27 }
 0x61e   : > { %6821 = vrot.lane.b32.xlu0 %v6818_v13, %s11369_s27 }
 0x620   : > { %7807 = vrot.lane.b32.xlu1 %v7806_v56, %s11360_s6 }
 0x622   : > { %6819 = vrot.lane.b32.xlu0 %v6812_v52, %s11369_s27 }
 0x624   : > { %6937 = vrot.lane.b32.xlu1 %v6927_v62, %s11364_s1 }
 0x626   : > { %6935 = vrot.lane.b32.xlu0 %v6932_v39, %s11364_s1 }
 0x628   : > { %7921 = vrot.lane.b32.xlu1 %v7920_v9, %s11365_s25  ;;  %v9378_v9 = vld [vmem:[%s11316_s19 + $0x1c] sm:$0xf] }
 0x62a   : > { %6933 = vrot.lane.b32.xlu0 %v6926_v61, %s11364_s1 }
 0x65e   : > { %v6055_v11 = vpop.permute.xlu1 %6054 }
 0x660   : > { %v6053_v10 = vpop.permute.xlu0 %6052 }
 0x661   : > { %v6057_v12 = vsel %vm877_vm7, %v6053_v10, %v6055_v11 }
 0x662   : > { %9345 = vmatprep.subr.msk.mxu1 %vm5086_vm14, %v6057_v12  ;;  %v10896_v4 = vpop.permute.xlu1 %7039 }
 0x664   : > { %v6051_v14 = vpop.permute.xlu0 %6050 }
 0x665   : > { %v6056_v17 = vsel %vm877_vm7, %v6051_v14, %v6053_v10 }
 0x666   : > { %9346 = vmatpush1.msk.msra.mxu1 %vm5086_vm14, %v6056_v17  ;;  %v6169_v7 = vpop.permute.xlu1 %6168  ;;  %v9383_v17 = vld [vmem:[%s11316_s19 + $0x20] sm:$0xf] }
 0x667   : > { %9347 = vmatmul.mubr.msk.f32.vlgmr.msra.gmra.mrb[6].mxu1 %vm5082_vm15, %v6046_v16 }
 0x668   : > { %v6167_v18 = vpop.permute.xlu0 %6166  ;;  %6243 = vmatprep.mubr.f32.mxu1 %v9646_v8 }
 0x669   : > { %v6171_v48 = vsel %vm785_vm6, %v6167_v18, %v6169_v7 }
 0x66a   : > { %9350 = vmatprep.subr.msk.mxu1 %vm5086_vm14, %v6171_v48  ;;  %v10907_v19 = vpop.permute.xlu1 %7152  ;;  %v7041_v48 = vrot.slane %v10896_v4, 4 }
 0x66c   : > { %v6165_v21 = vpop.permute.xlu0 %6164 }
 0x66d   : > { %v6170_v28 = vsel %vm785_vm6, %v6165_v21, %v6167_v18  ;;  %v7154_v18 = vrot.slane %v10907_v19, 4 }
 0x66e   : > { %9351 = vmatpush1.msk.msra.mxu1 %vm5086_vm14, %v6170_v28  ;;  %v6283_v29 = vpop.permute.xlu1 %6282 }
 0x66f   : > { %9352 = vmatmul.mubr.msk.f32.vlgmr.msra.gmra.mrb[6].mxu1 %vm5082_vm15, %v9349_v22  ;;  %v7155_v21 = vsel %vm768_vm0, %v7154_v18, %v10907_v19 }
 0x670   : > { %v6281_v30 = vpop.permute.xlu0 %6280  ;;  %6357 = vmatprep.mubr.f32.mxu1 %v9646_v8 }
 0x671   : > { %v6285_v1 = vsel %vm992_vm5, %v6281_v30, %v6283_v29 }
 0x672   : > { %9355 = vmatprep.subr.msk.mxu1 %vm5086_vm14, %v6285_v1  ;;  %v10918_v32 = vpop.permute.xlu1 %7266 }
 0x674   : > { %v6279_v36 = vpop.permute.xlu0 %6278 }
 0x675   : > { %v6284_v35 = vsel %vm992_vm5, %v6279_v36, %v6281_v30 }
 0x676   : > { %9356 = vmatpush1.msk.msra.mxu1 %vm5086_vm14, %v6284_v35  ;;  %v6397_v53 = vpop.permute.xlu1 %6396  ;;  %v7268_v35 = vrot.slane %v10918_v32, 4 }
 0x677   : > { %9357 = vmatmul.mubr.msk.f32.vlgmr.msra.gmra.mrb[6].mxu1 %vm5082_vm15, %v9354_v33 }
 0x678   : > { %v6395_v46 = vpop.permute.xlu0 %6394  ;;  %6471 = vmatprep.mubr.f32.mxu1 %v9646_v8 }
 0x679   : > { %v6399_v37 = vsel %vm1109_vm4, %v6395_v46, %v6397_v53 }
 0x67a   : > { %9360 = vmatprep.subr.msk.mxu1 %vm5086_vm14, %v6399_v37  ;;  %v10929_v38 = vpop.permute.xlu1 %7380 }
 0x67c   : > { %v6393_v2 = vpop.permute.xlu0 %6392 }
 0x67d   : > { %v6398_v43 = vsel %vm1109_vm4, %v6393_v2, %v6395_v46  ;;  %v7382_v46 = vrot.slane %v10929_v38, 4 }
 0x67e   : > { %9361 = vmatpush1.msk.msra.mxu1 %vm5086_vm14, %v6398_v43  ;;  %v6596_v25 = vpop.permute.xlu1 %6595 }
 0x67f   : > { %9362 = vmatmul.mubr.msk.f32.vlgmr.msra.gmra.mrb[6].mxu1 %vm5082_vm15, %v9359_v42  ;;  %9364 = vmatprep.subr.msk.mxu1 %vm5086_vm14, %v6484_v20 }
 0x680   : > { %v6594_v40 = vpop.permute.xlu0 %6593  ;;  %9365 = vmatpush1.msk.msra.mxu1 %vm5086_vm14, %v6480_v24  ;;  %6556 = vmatprep.mubr.f32.mxu1 %v9646_v8  ;;  %v7383_v24 = vsel %vm1092_vm3, %v7382_v46, %v10929_v38 }
 0x681   : > { %v6598_v0 = vsel %vm1092_vm3, %v6594_v40, %v6596_v25 }
 0x682   : > { %9369 = vmatprep.subr.msk.mxu1 %vm5086_vm14, %v6598_v0  ;;  %v10942_v47 = vpop.permute.xlu1 %7579 }
 0x683   : > { %v7581_v0 = vrot.slane %v10942_v47, 4 }
 0x684   : > { %v6592_v49 = vpop.permute.xlu0 %6591 }
 0x685   : > { %v6597_v23 = vsel %vm1092_vm3, %v6592_v49, %v6594_v40 }
 0x686   : > { %v6710_v44 = vpop.permute.xlu1 %6709 }
 0x687   : > { %9366 = vmatmul.mubr.msk.f32.vlgmr.msra.gmra.mrb[6].mxu1 %vm5082_vm15, %v9363_v50  ;;  %v7567_v50 = vld [vmem:[#allocation2 + $0xc] sm:$0x3] }
 0x688   : > { %9370 = vmatpush1.msk.msra.mxu1 %vm5086_vm14, %v6597_v23  ;;  %v6708_v45 = vpop.permute.xlu0 %6707  ;;  %6670 = vmatprep.mubr.f32.mxu1 %v9646_v8  ;;  %v7582_v23 = vsel %vm1109_vm4, %v7581_v0, %v10942_v47 }
 0x689   : > { %v6712_v51 = vsel %vm975_vm2, %v6708_v45, %v6710_v44 }
 0x68a   : > { %9374 = vmatprep.subr.msk.mxu1 %vm5086_vm14, %v6712_v51  ;;  %v10953_v52 = vpop.permute.xlu1 %7693 }
 0x68b   : > { %v7695_v38 = vrot.slane %v10953_v52, 4 }
 0x68c   : > { %v6706_v54 = vpop.permute.xlu0 %6705 }
 0x68d   : > { %v6711_v55 = vsel %vm975_vm2, %v6706_v54, %v6708_v45  ;;  %v7696_v51 = vsel %vm992_vm5, %v7695_v38, %v10953_v52 }
 0x68e   : > { %v6824_v13 = vpop.permute.xlu1 %6823 }
 0x68f   : > { %9371 = vmatmul.mubr.msk.f32.vlgmr.msra.gmra.mrb[6].mxu1 %vm5082_vm15, %v9368_v31  ;;  %v7586_v31 = vmul.f32 %v7581_v0, %v7567_v50 }
 0x690   : > { %9375 = vmatpush1.msk.msra.mxu1 %vm5086_vm14, %v6711_v55  ;;  %v6822_v56 = vpop.permute.xlu0 %6821  ;;  %6784 = vmatprep.mubr.f32.mxu1 %v9646_v8 }
 0x691   : > { %v6826_v57 = vsel %vm768_vm0, %v6822_v56, %v6824_v13 }
 0x692   : > { %9379 = vmatprep.subr.msk.mxu1 %vm5086_vm14, %v6826_v57  ;;  %v10964_v58 = vpop.permute.xlu1 %7807 }
 0x694   : > { %v6820_v59 = vpop.permute.xlu0 %6819 }
 0x695   : > { %v6825_v61 = vsel %vm768_vm0, %v6820_v59, %v6822_v56  ;;  %v7809_v59 = vrot.slane %v10964_v58, 4 }
 0x696   : > { %v6938_v62 = vpop.permute.xlu1 %6937 }
 0x697   : > { %9376 = vmatmul.mubr.msk.f32.vlgmr.msra.gmra.mrb[6].mxu1 %vm5082_vm15, %v9373_v60 }
 0x698   : > { %9380 = vmatpush1.msk.msra.mxu1 %vm5086_vm14, %v6825_v61  ;;  %v6936_v63 = vpop.permute.xlu0 %6935  ;;  %6898 = vmatprep.mubr.f32.mxu1 %v9646_v8  ;;  %v7681_v61 = vld [vmem:[#allocation2 + $0xc] sm:$0x3] }
 0x699   : > { %v6940_v3 = vsel %vm746_vm1, %v6936_v63, %v6938_v62  ;;  %v7795_v62 = vld [vmem:[#allocation2 + $0xc] sm:$0x3] }
 0x69a   : > { %9384 = vmatprep.subr.msk.mxu1 %vm5086_vm14, %v6940_v3  ;;  %v7922_v57 = vpop.permute.xlu1 %7921 }
 0x69b   : > { %v7923_v52 = vrot.slane %v7922_v57, 4 }
 0x69c   : > { %v6934_v39 = vpop.permute.xlu0 %6933 }
 0x69d   : > { %v6939_v11 = vsel %vm746_vm1, %v6934_v39, %v6936_v63  ;;  %v7810_v63 = vsel %vm785_vm6, %v7809_v59, %v10964_v58  ;;  %v7700_v39 = vmul.f32 %v7695_v38, %v7681_v61  ;;  %v7909_v58 = vld [vmem:[#allocation2 + $0xc] sm:$0x3] }
 0x69f   : > { %9381 = vmatmul.mubr.msk.f32.vlgmr.msra.gmra.mrb[6].mxu1 %vm5082_vm15, %v9378_v9 }
 0x6a0   : > { %9385 = vmatpush1.msk.msra.mxu1 %vm5086_vm14, %v6939_v11  ;;  %7012 = vmatprep.mubr.f32.mxu1 %v9646_v8  ;;  %v7924_v11 = vsel %vm877_vm7, %v7923_v52, %v7922_v57 }
 0x6a7   : > { %9386 = vmatmul.mubr.msk.f32.vlgmr.msra.gmra.mrb[6].mxu1 %vm5082_vm15, %v9383_v17 }
 0x6a8   : > { %7130 = vmatprep.mubr.f32.mxu1 %v9646_v8 }
 0x6b1   : > { %v5018_v10 = vpop.f32.mrb[8].mxu0 }
 0x6b2   : > { %v5019_v12 = vadd.f32 %v5018_v10, %v10770_v15  ;;  %v5020_v14 = vpop.f32.mrb[9].mxu0  ;;  %v7814_v10 = vmul.f32 %v7809_v59, %v7795_v62 }
 0x6b3   : > { %v5021_v16 = vadd.f32 %v5020_v14, %v10770_v15  ;;  %v7042_v15 = vsel %vm746_vm1, %v7041_v48, %v10896_v4  ;;  %v7269_v4 = vsel %vm975_vm2, %v7268_v35, %v10918_v32 }
 0x6b5   : > { %v7023_v7 = vcombine.low %v5019_v12, %v5021_v16 }
 0x6b7   : > { %7025 = vst [vmem:[#allocation2 + $0x4] sm:$0x33] %v7023_v7  ;;  %v7928_v7 = vmul.f32 %v7923_v52, %v7909_v58  ;;  %v9391_v52 = vld [vmem:[%s11371_s9 + $0x4] sm:$0xf] }
 0x6be   : > { %v7027_v22 = vld [vmem:[#allocation2 + $0x8] sm:$0x3]  ;;  %v7026_v28 = vld [vmem:[#allocation2] sm:$0x33] }
 0x6bf   : > { %v7046_v29 = vmul.f32 %v7041_v48, %v7027_v22  ;;  %v7045_v30 = vmul.f32 %v7042_v15, %v7026_v28  ;;  %v7139_v1 = vld [vmem:[#allocation2] sm:$0x33]  ;;  %v7140_v19 = vld [vmem:[#allocation2 + $0x8] sm:$0x3] }
 0x6c0   : > { %v7158_v36 = vmul.f32 %v7155_v21, %v7139_v1  ;;  %v7253_v37 = vld [vmem:[#allocation2] sm:$0x33]  ;;  %v7254_v2 = vld [vmem:[#allocation2 + $0x8] sm:$0x3]  ;;  %v7159_v43 = vmul.f32 %v7154_v18, %v7140_v19  ;;  %v9429_v18 = vld [vmem:[%s11355_s4 + $0x2] sm:$0x3] }
 0x6c1   : > { %7055 = vrot.lane.b32.xlu1 %v7046_v29, %s11365_s25  ;;  %v7050_v33 = vcombine.high %v7045_v30, %v7045_v30  ;;  %v7367_v42 = vld [vmem:[#allocation2] sm:$0x33]  ;;  %v7272_v20 = vmul.f32 %v7269_v4, %v7253_v37  ;;  %v7273_v25 = vmul.f32 %v7268_v35, %v7254_v2  ;;  %v7368_v44 = vld [vmem:[#allocation2 + $0x8] sm:$0x3]  ;;  %v8060_v15 = vrot.slane %v9429_v18, %v9788_v5  ;;  %v9451_v1 = vld [vmem:[%s11355_s4 + $0xa] sm:$0x3] }
 0x6c2   : > { %v7164_v53 = vcombine.high %v7158_v36, %v7158_v36  ;;  %v7386_v40 = vmul.f32 %v7383_v24, %v7367_v42  ;;  %v7566_v45 = vld [vmem:[#allocation2 + $0x4] sm:$0x33]  ;;  %v7387_v55 = vmul.f32 %v7382_v46, %v7368_v44  ;;  %v8035_v48 = vld [vmem:[%s11355_s4] sm:$0x3]  ;;  %v8064_v22 = vrot.slane %v9429_v18, %v9790_v6  ;;  %v9456_v46 = vld [vmem:[%s11355_s4 + $0xc] sm:$0x3] }
 0x6c3   : > { %7053 = vrot.lane.b32.xlu0 %v7050_v33, %s11365_s25  ;;  %v7278_v32 = vcombine.high %v7272_v20, %v7272_v20  ;;  %v7680_v54 = vld [vmem:[#allocation2 + $0x4] sm:$0x33]  ;;  %v7585_v13 = vmul.f32 %v7582_v23, %v7566_v45  ;;  %v8040_v28 = vrot.slane %v8035_v48, %v9788_v5  ;;  %v8044_v29 = vrot.slane %v8035_v48, %v9790_v6 }
 0x6c4   : > { %v7392_v49 = vcombine.high %v7386_v40, %v7386_v40  ;;  %v7699_v56 = vmul.f32 %v7696_v51, %v7680_v54  ;;  %v7794_v3 = vld [vmem:[#allocation2 + $0x4] sm:$0x33]  ;;  %v8065_v4 = vcombine.low %v8060_v15, %v8064_v22  ;;  %v8574_v24 = vrot.slane %v9451_v1, %v9788_v5 }
 0x6c5   : > { %7167 = vrot.lane.b32.xlu1 %v7164_v53, %s11360_s6  ;;  %v7591_v47 = vcombine.high %v7585_v13, %v7585_v13  ;;  %v7908_v9 = vld [vmem:[#allocation2 + $0x4] sm:$0x33]  ;;  %v7813_v12 = vmul.f32 %v7810_v63, %v7794_v3  ;;  %v8045_v19 = vcombine.low %v8040_v28, %v8044_v29  ;;  %v8578_v2 = vrot.slane %v9451_v1, %v9790_v6  ;;  %v9405_v28 = vld [vmem:[%s11371_s9 + $0x10] sm:$0xf] }
 0x6c6   : > { %v7705_v60 = vcombine.high %v7699_v56, %v7699_v56  ;;  %v7927_v14 = vmul.f32 %v7924_v11, %v7908_v9  ;;  %v9437_v21 = vld [vmem:[%s11355_s4 + $0x4] sm:$0x3] }
 0x6c7   : > { %7051 = vrot.lane.b32.xlu0 %v7045_v30, %s11365_s25  ;;  %v7819_v16 = vcombine.high %v7813_v12, %v7813_v12  ;;  %v9442_v30 = vld [vmem:[%s11355_s4 + $0x6] sm:$0x3]  ;;  %v8265_v33 = vrot.slane %v9437_v21, %v9790_v6 }
 0x6c8   : > { %v7933_v17 = vcombine.high %v7927_v14, %v7927_v14  ;;  %v8375_v35 = vrot.slane %v9442_v30, %v9788_v5  ;;  %v8379_v53 = vrot.slane %v9442_v30, %v9790_v6 }
 0x6c9   : > { %7165 = vrot.lane.b32.xlu1 %v7158_v36, %s11360_s6  ;;  %v8261_v36 = vrot.slane %v9437_v21, %v9788_v5 }
 0x6ca   : > { %v8380_v42 = vcombine.low %v8375_v35, %v8379_v53 }
 0x6cb   : > { %7169 = vrot.lane.b32.xlu0 %v7159_v43, %s11360_s6  ;;  %v8266_v37 = vcombine.low %v8261_v36, %v8265_v33  ;;  %v8688_v43 = vrot.slane %v9456_v46, %v9788_v5  ;;  %v9410_v33 = vld [vmem:[%s11371_s9 + $0x14] sm:$0xf] }
 0x6cd   : > { %7283 = vrot.lane.b32.xlu1 %v7273_v25, %s11361_s0  ;;  %v9461_v25 = vld [vmem:[%s11355_s4 + $0xe] sm:$0x3] }
 0x6ce   : > { %v8802_v0 = vrot.slane %v9461_v25, %v9788_v5 }
 0x6cf   : > { %7281 = vrot.lane.b32.xlu0 %v7278_v32, %s11361_s0  ;;  %v8579_v32 = vcombine.low %v8574_v24, %v8578_v2 }
 0x6d1   : > { %7395 = vrot.lane.b32.xlu1 %v7392_v49, %s11358_s26  ;;  %v8806_v49 = vrot.slane %v9461_v25, %v9790_v6 }
 0x6d3   : > { %7279 = vrot.lane.b32.xlu0 %v7272_v20, %s11361_s0  ;;  %v8692_v20 = vrot.slane %v9456_v46, %v9790_v6  ;;  %v8807_v44 = vcombine.low %v8802_v0, %v8806_v49 }
 0x6d5   : > { %7393 = vrot.lane.b32.xlu1 %v7386_v40, %s11358_s26  ;;  %v9466_v40 = vld [vmem:[%s11355_s4 + $0x10] sm:$0x3]  ;;  %v8693_v38 = vcombine.low %v8688_v43, %v8692_v20  ;;  %v9420_v20 = vld [vmem:[%s11371_s9 + $0x1c] sm:$0xf] }
 0x6d6   : > { %v8916_v50 = vrot.slane %v9466_v40, %v9788_v5  ;;  %v8920_v23 = vrot.slane %v9466_v40, %v9790_v6  ;;  %v7047_v6 = vld [vmem:[%s11371_s9] sm:$0xf] }
 0x6d7   : > { %7397 = vrot.lane.b32.xlu0 %v7387_v55, %s11358_s26  ;;  %v9425_v40 = vld [vmem:[%s11371_s9 + $0x20] sm:$0xf] }
 0x6d8   : > { %v8921_v45 = vcombine.low %v8916_v50, %v8920_v23 }
 0x6d9   : > { %7596 = vrot.lane.b32.xlu1 %v7586_v31, %s11359_s28 }
 0x6db   : > { %7594 = vrot.lane.b32.xlu0 %v7591_v47, %s11359_s28 }
 0x6dd   : > { %7708 = vrot.lane.b32.xlu1 %v7705_v60, %s11366_s24 }
 0x6df   : > { %7592 = vrot.lane.b32.xlu0 %v7585_v13, %s11359_s28 }
 0x6e1   : > { %7706 = vrot.lane.b32.xlu1 %v7699_v56, %s11366_s24 }
 0x6e3   : > { %7710 = vrot.lane.b32.xlu0 %v7700_v39, %s11366_s24 }
 0x6e5   : > { %7824 = vrot.lane.b32.xlu1 %v7814_v10, %s11369_s27  ;;  %v9396_v10 = vld [vmem:[%s11371_s9 + $0x8] sm:$0xf] }
 0x6e7   : > { %7822 = vrot.lane.b32.xlu0 %v7819_v16, %s11369_s27 }
 0x6e9   : > { %7936 = vrot.lane.b32.xlu1 %v7933_v17, %s11364_s1 }
 0x6eb   : > { %7820 = vrot.lane.b32.xlu0 %v7813_v12, %s11369_s27  ;;  %v7481_v12 = vld [vmem:[#allocation2 + $0x4] sm:$0x33] }
 0x6ec   : > { %v7485_v17 = vcombine.high %v7481_v12, %v7481_v12 }
 0x6ed   : > { %7934 = vrot.lane.b32.xlu1 %v7927_v14, %s11364_s1 }
 0x6ef   : > { %7938 = vrot.lane.b32.xlu0 %v7928_v7, %s11364_s1  ;;  %v9401_v7 = vld [vmem:[%s11371_s9 + $0xc] sm:$0xf] }
 0x6f1   : > { %8046 = vrot.lane.b32.xlu1 %v8045_v19, %s11364_s1  ;;  %v9415_v19 = vld [vmem:[%s11371_s9 + $0x18] sm:$0xf] }
 0x6f3   : > { %8066 = vrot.lane.b32.xlu0 %v8065_v4, %s11369_s27 }
 0x6f5   : > { %8381 = vrot.lane.b32.xlu1 %v8380_v42, %s11359_s28 }
 0x6f7   : > { %8267 = vrot.lane.b32.xlu0 %v8266_v37, %s11366_s24 }
 0x6f9   : > { %8694 = vrot.lane.b32.xlu1 %v8693_v38, %s11361_s0 }
 0x6fb   : > { %8580 = vrot.lane.b32.xlu0 %v8579_v32, %s11358_s26 }
 0x6fd   : > { %8922 = vrot.lane.b32.xlu1 %v8921_v45, %s11365_s25 }
 0x6ff   : > { %8808 = vrot.lane.b32.xlu0 %v8807_v44, %s11360_s6 }
 0x733   : > { %v7056_v51 = vpop.permute.xlu1 %7055 }
 0x735   : > { %v7054_v54 = vpop.permute.xlu0 %7053 }
 0x736   : > { %v7058_v31 = vsel %vm877_vm7, %v7054_v54, %v7056_v51 }
 0x737   : > { %9387 = vmatprep.subr.msk.mxu1 %vm5086_vm14, %v7058_v31  ;;  %v7168_v55 = vpop.permute.xlu1 %7167 }
 0x739   : > { %v7052_v5 = vpop.permute.xlu0 %7051 }
 0x73a   : > { %v7057_v13 = vsel %vm877_vm7, %v7052_v5, %v7054_v54 }
 0x73b   : > { %9388 = vmatpush1.msk.msra.mxu1 %vm5086_vm14, %v7057_v13  ;;  %v7166_v56 = vpop.permute.xlu1 %7165 }
 0x73c   : > { %9389 = vmatmul.mubr.msk.f32.vlgmr.msra.gmra.mrb[6].mxu1 %vm5082_vm15, %v7047_v6  ;;  %v7171_v59 = vsel %vm785_vm6, %v7166_v56, %v7168_v55 }
 0x73d   : > { %v7170_v57 = vpop.permute.xlu0 %7169  ;;  %7244 = vmatprep.mubr.f32.mxu1 %v9646_v8 }
 0x73e   : > { %v7172_v47 = vsel %vm785_vm6, %v7168_v55, %v7170_v57 }
 0x73f   : > { %9392 = vmatprep.subr.msk.mxu1 %vm5086_vm14, %v7172_v47  ;;  %v7284_v60 = vpop.permute.xlu1 %7283 }
 0x740   : > { %9393 = vmatpush1.msk.msra.mxu1 %vm5086_vm14, %v7171_v59 }
 0x741   : > { %v7282_v61 = vpop.permute.xlu0 %7281 }
 0x742   : > { %v7286_v62 = vsel %vm992_vm5, %v7282_v61, %v7284_v60 }
 0x743   : > { %9397 = vmatprep.subr.msk.mxu1 %vm5086_vm14, %v7286_v62  ;;  %v7396_v63 = vpop.permute.xlu1 %7395 }
 0x744   : > { %9394 = vmatmul.mubr.msk.f32.vlgmr.msra.gmra.mrb[6].mxu1 %vm5082_vm15, %v9391_v52 }
 0x745   : > { %v7280_v3 = vpop.permute.xlu0 %7279  ;;  %7358 = vmatprep.mubr.f32.mxu1 %v9646_v8 }
 0x746   : > { %v7285_v39 = vsel %vm992_vm5, %v7280_v3, %v7282_v61 }
 0x747   : > { %9398 = vmatpush1.msk.msra.mxu1 %vm5086_vm14, %v7285_v39  ;;  %v7394_v9 = vpop.permute.xlu1 %7393 }
 0x748   : > { %v7399_v16 = vsel %vm1109_vm4, %v7394_v9, %v7396_v63 }
 0x749   : > { %v7398_v11 = vpop.permute.xlu0 %7397 }
 0x74a   : > { %v7400_v14 = vsel %vm1109_vm4, %v7396_v63, %v7398_v11 }
 0x74b   : > { %9402 = vmatprep.subr.msk.mxu1 %vm5086_vm14, %v7400_v14  ;;  %v7597_v18 = vpop.permute.xlu1 %7596 }
 0x74c   : > { %9399 = vmatmul.mubr.msk.f32.vlgmr.msra.gmra.mrb[6].mxu1 %vm5082_vm15, %v9396_v10 }
 0x74d   : > { %9403 = vmatpush1.msk.msra.mxu1 %vm5086_vm14, %v7399_v16  ;;  %v7595_v58 = vpop.permute.xlu0 %7594  ;;  %7472 = vmatprep.mubr.f32.mxu1 %v9646_v8 }
 0x74e   : > { %9406 = vmatprep.subr.msk.mxu1 %vm5086_vm14, %v7485_v17  ;;  %v7599_v21 = vsel %vm1092_vm3, %v7595_v58, %v7597_v18 }
 0x74f   : > { %v7709_v15 = vpop.permute.xlu1 %7708 }
 0x751   : > { %v7593_v48 = vpop.permute.xlu0 %7592 }
 0x752   : > { %v7598_v29 = vsel %vm1092_vm3, %v7593_v48, %v7595_v58 }
 0x753   : > { %v7707_v1 = vpop.permute.xlu1 %7706 }
 0x754   : > { %9404 = vmatmul.mubr.msk.f32.vlgmr.msra.gmra.mrb[6].mxu1 %vm5082_vm15, %v9401_v7  ;;  %v7712_v35 = vsel %vm975_vm2, %v7707_v1, %v7709_v15 }
 0x755   : > { %9407 = vmatpush1.msk.msra.mxu1 %vm5086_vm14, %v7481_v12  ;;  %7557 = vmatprep.mubr.f32.mxu1 %v9646_v8  ;;  %v7711_v22 = vpop.permute.xlu0 %7710 }
 0x756   : > { %9411 = vmatprep.subr.msk.mxu1 %vm5086_vm14, %v7599_v21  ;;  %v7713_v30 = vsel %vm975_vm2, %v7709_v15, %v7711_v22  ;;  %v8568_v15 = vld [vmem:[#allocation2 + $0xc] sm:$0xf] }
 0x757   : > { %v7825_v53 = vpop.permute.xlu1 %7824 }
 0x759   : > { %v7823_v36 = vpop.permute.xlu0 %7822 }
 0x75a   : > { %v7827_v4 = vsel %vm768_vm0, %v7823_v36, %v7825_v53 }
 0x75b   : > { %v7937_v24 = vpop.permute.xlu1 %7936 }
 0x75c   : > { %9408 = vmatmul.mubr.msk.f32.vlgmr.msra.gmra.mrb[6].mxu1 %vm5082_vm15, %v9405_v28 }
 0x75d   : > { %9412 = vmatpush1.msk.msra.mxu1 %vm5086_vm14, %v7598_v29  ;;  %7671 = vmatprep.mubr.f32.mxu1 %v9646_v8  ;;  %v7821_v46 = vpop.permute.xlu0 %7820 }
 0x75e   : > { %9416 = vmatprep.subr.msk.mxu1 %vm5086_vm14, %v7713_v30  ;;  %v7826_v2 = vsel %vm768_vm0, %v7821_v46, %v7823_v36 }
 0x75f   : > { %v7935_v43 = vpop.permute.xlu1 %7934 }
 0x760   : > { %v7940_v25 = vsel %vm746_vm1, %v7935_v43, %v7937_v24 }
 0x761   : > { %v7939_v37 = vpop.permute.xlu0 %7938 }
 0x762   : > { %v7941_v42 = vsel %vm746_vm1, %v7937_v24, %v7939_v37  ;;  %v8796_v24 = vld [vmem:[#allocation2 + $0xc] sm:$0xf] }
 0x763   : > { %v8047_v45 = vpop.permute.xlu1 %8046 }
 0x764   : > { %9413 = vmatmul.mubr.msk.f32.vlgmr.msra.gmra.mrb[6].mxu1 %vm5082_vm15, %v9410_v33  ;;  %v8048_v51 = vrot.slane %v8047_v45, 4 }
 0x765   : > { %9417 = vmatpush1.msk.msra.mxu1 %vm5086_vm14, %v7712_v35  ;;  %7785 = vmatprep.mubr.f32.mxu1 %v9646_v8  ;;  %v8067_v54 = vpop.permute.xlu0 %8066 }
 0x766   : > { %9421 = vmatprep.subr.msk.mxu1 %vm5086_vm14, %v7827_v4  ;;  %v8068_v31 = vrot.slane %v8067_v54, 4  ;;  %v8049_v55 = vsel %vm746_vm1, %v8048_v51, %v8047_v45 }
 0x767   : > { %v8382_v52 = vpop.permute.xlu1 %8381 }
 0x768   : > { %v8069_v6 = vsel %vm768_vm0, %v8068_v31, %v8067_v54  ;;  %v8383_v63 = vrot.slane %v8382_v52, 4 }
 0x769   : > { %v8268_v59 = vpop.permute.xlu0 %8267 }
 0x76a   : > { %v8269_v61 = vrot.slane %v8268_v59, 4  ;;  %v8384_v9 = vsel %vm1092_vm3, %v8383_v63, %v8382_v52 }
 0x76b   : > { %v8695_v18 = vpop.permute.xlu1 %8694 }
 0x76c   : > { %9418 = vmatmul.mubr.msk.f32.vlgmr.msra.gmra.mrb[6].mxu1 %vm5082_vm15, %v9415_v19  ;;  %v8270_v3 = vsel %vm975_vm2, %v8269_v61, %v8268_v59  ;;  %v8696_v48 = vrot.slane %v8695_v18, 4  ;;  %v8682_v19 = vld [vmem:[#allocation2 + $0xc] sm:$0xf] }
 0x76d   : > { %9422 = vmatpush1.msk.msra.mxu1 %vm5086_vm14, %v7826_v2  ;;  %7899 = vmatprep.mubr.f32.mxu1 %v9646_v8  ;;  %v8581_v17 = vpop.permute.xlu0 %8580 }
 0x76e   : > { %9426 = vmatprep.subr.msk.mxu1 %vm5086_vm14, %v7941_v42  ;;  %v8582_v58 = vrot.slane %v8581_v17, 4  ;;  %v8697_v28 = vsel %vm992_vm5, %v8696_v48, %v8695_v18  ;;  %v8701_v42 = vmul.f32 %v8696_v48, %v8682_v19 }
 0x76f   : > { %v8923_v53 = vpop.permute.xlu1 %8922 }
 0x770   : > { %v8583_v22 = vsel %vm1109_vm4, %v8582_v58, %v8581_v17  ;;  %v8587_v1 = vmul.f32 %v8582_v58, %v8568_v15  ;;  %v8924_v37 = vrot.slane %v8923_v53, 4 }
 0x771   : > { %v8809_v33 = vpop.permute.xlu0 %8808 }
 0x772   : > { %v8810_v46 = vrot.slane %v8809_v33, 4  ;;  %v8925_v43 = vsel %vm877_vm7, %v8924_v37, %v8923_v53 }
 0x774   : > { %9423 = vmatmul.mubr.msk.f32.vlgmr.msra.gmra.mrb[6].mxu1 %vm5082_vm15, %v9420_v20  ;;  %v8811_v2 = vsel %vm785_vm6, %v8810_v46, %v8809_v33 }
 0x775   : > { %9427 = vmatpush1.msk.msra.mxu1 %vm5086_vm14, %v7940_v25  ;;  %8013 = vmatprep.mubr.f32.mxu1 %v9646_v8  ;;  %v8815_v25 = vmul.f32 %v8810_v46, %v8796_v24 }
 0x77c   : > { %9428 = vmatmul.mubr.msk.f32.vlgmr.msra.gmra.mrb[6].mxu1 %vm5082_vm15, %v9425_v40 }
 0x84f   : > { %v8015_v32 = vpop.f32.mrb[6].mxu1 }
 0x850   : > { %vm8022_vm10 = vcmp.ge.f32.partialorder %v8015_v32, 0.0  ;;  %v8024_v0 = vmul.f32 0.2, %v8015_v32  ;;  %v8017_v49 = vpop.f32.mrb[7].mxu1 }
 0x851   : > { %vm8023_vm11 = vcmp.ge.f32.partialorder %v8017_v49, 0.0  ;;  %v8025_v38 = vmul.f32 0.2, %v8017_v49 }
 0x852   : > { %v8026_v50 = vsel %vm8022_vm10, %v8015_v32, %v8024_v0 }
 0x853   : > { %v11161_v23 = vsel %vm8023_vm11, %v8017_v49, %v8025_v38  ;;  %v8910_v49 = vld [vmem:[#allocation2 + $0xc] sm:$0xf] }
 0x854   : > { %v11164_v44 = vcombine.low %v8026_v50, %v11161_v23  ;;  %v8929_v38 = vmul.f32 %v8924_v37, %v8910_v49 }
 0x856   : > { %8032 = vst [vmem:[#allocation2 + $0x4] sm:$0xff] %v11164_v44  ;;  %v8586_v30 = vmul.f32 %v8583_v22, %v11164_v44  ;;  %v8700_v36 = vmul.f32 %v8697_v28, %v11164_v44  ;;  %v8814_v20 = vmul.f32 %v8811_v2, %v11164_v44  ;;  %v8928_v40 = vmul.f32 %v8925_v43, %v11164_v44 }
 0x858   : > { %v8592_v35 = vcombine.high %v8586_v30, %v8586_v30  ;;  %v8706_v4 = vcombine.high %v8700_v36, %v8700_v36  ;;  %v8820_v32 = vcombine.high %v8814_v20, %v8814_v20  ;;  %v8934_v0 = vcombine.high %v8928_v40, %v8928_v40 }
 0x85d   : > { %v8254_v5 = vld [vmem:[#allocation2] sm:$0xff]  ;;  %v8034_v13 = vld [vmem:[#allocation2 + $0x8] sm:$0xf] }
 0x85e   : > { %v8073_v56 = vmul.f32 %v8068_v31, %v8034_v13  ;;  %v8072_v57 = vmul.f32 %v8254_v5, %v8069_v6  ;;  %v8052_v47 = vmul.f32 %v8254_v5, %v8049_v55  ;;  %v8255_v39 = vld [vmem:[#allocation2 + $0x8] sm:$0xf]  ;;  %v8273_v11 = vmul.f32 %v8270_v3, %v8254_v5 }
 0x85f   : > { %v8053_v10 = vmul.f32 %v8048_v51, %v8034_v13  ;;  %v8274_v12 = vmul.f32 %v8269_v61, %v8255_v39  ;;  %v8387_v14 = vmul.f32 %v8384_v9, %v8254_v5  ;;  %v8369_v21 = vld [vmem:[#allocation2 + $0x8] sm:$0xf] }
 0x860   : > { %8083 = vrot.lane.b32.xlu1 %v8073_v56, %s11360_s6  ;;  %v8078_v60 = vcombine.high %v8072_v57, %v8072_v57  ;;  %v8167_v62 = vcombine.high %v8052_v47, %v8052_v47  ;;  %v8279_v16 = vcombine.high %v8273_v11, %v8273_v11  ;;  %v8388_v29 = vmul.f32 %v8383_v63, %v8369_v21 }
 0x861   : > { %v8393_v7 = vcombine.high %v8387_v14, %v8387_v14 }
 0x862   : > { %8081 = vrot.lane.b32.xlu0 %v8078_v60, %s11360_s6 }
 0x864   : > { %8170 = vrot.lane.b32.xlu1 %v8167_v62, %s11365_s25 }
 0x866   : > { %8079 = vrot.lane.b32.xlu0 %v8072_v57, %s11360_s6  ;;  %s11372_s6 = sld [smem:[#allocation13_spill]] }
 0x868   : > { %8168 = vrot.lane.b32.xlu1 %v8052_v47, %s11365_s25 }
 0x86a   : > { %8172 = vrot.lane.b32.xlu0 %v8053_v10, %s11365_s25 }
 0x86c   : > { %8284 = vrot.lane.b32.xlu1 %v8274_v12, %s11361_s0  ;;  %v9430_v55 = vld [vmem:[%s11372_s6 + $0x4] sm:$0xf]  ;;  %v8054_v60 = vld [vmem:[%s11372_s6] sm:$0xf]  ;;  %v9438_v9 = vld [vmem:[%s11372_s6 + $0x8] sm:$0xf]  ;;  %v9637_v12 = vcombine.low %v11161_v23, %v11161_v23 }
 0x86d   : > { %v9447_v48 = vld [vmem:[%s11372_s6 + $0x10] sm:$0xf]  ;;  %v9452_v28 = vld [vmem:[%s11372_s6 + $0x14] sm:$0xf]  ;;  %v9457_v33 = vld [vmem:[%s11372_s6 + $0x18] sm:$0xf] }
 0x86e   : > { %8282 = vrot.lane.b32.xlu0 %v8279_v16, %s11361_s0  ;;  %v9443_v16 = vld [vmem:[%s11372_s6 + $0xc] sm:$0xf]  ;;  %v9462_v37 = vld [vmem:[%s11372_s6 + $0x1c] sm:$0xf]  ;;  %v9467_v2 = vld [vmem:[%s11372_s6 + $0x20] sm:$0xf] }
 0x870   : > { %8396 = vrot.lane.b32.xlu1 %v8393_v7, %s11358_s26 }
 0x872   : > { %8280 = vrot.lane.b32.xlu0 %v8273_v11, %s11361_s0 }
 0x874   : > { %8394 = vrot.lane.b32.xlu1 %v8387_v14, %s11358_s26 }
 0x876   : > { %8398 = vrot.lane.b32.xlu0 %v8388_v29, %s11358_s26 }
 0x878   : > { %8597 = vrot.lane.b32.xlu1 %v8587_v1, %s11359_s28 }
 0x87a   : > { %8595 = vrot.lane.b32.xlu0 %v8592_v35, %s11359_s28 }
 0x87c   : > { %8709 = vrot.lane.b32.xlu1 %v8706_v4, %s11366_s24 }
 0x87e   : > { %8593 = vrot.lane.b32.xlu0 %v8586_v30, %s11359_s28 }
 0x880   : > { %8707 = vrot.lane.b32.xlu1 %v8700_v36, %s11366_s24 }
 0x882   : > { %8711 = vrot.lane.b32.xlu0 %v8701_v42, %s11366_s24  ;;  %v9023_v42 = vsub.f32 %v10782_v27, %v10592_v41 }
 0x884   : > { %8825 = vrot.lane.b32.xlu1 %v8815_v25, %s11369_s27 }
 0x886   : > { %8823 = vrot.lane.b32.xlu0 %v8820_v32, %s11369_s27 }
 0x888   : > { %8937 = vrot.lane.b32.xlu1 %v8934_v0, %s11364_s1 }
 0x88a   : > { %8821 = vrot.lane.b32.xlu0 %v8814_v20, %s11369_s27  ;;  %v9024_v20 = vsub.f32 %v10779_v26, %v10576_v34  ;;  %s11373_s27 = sld [smem:[#allocation14_spill]] }
 0x88c   : > { %8935 = vrot.lane.b32.xlu1 %v8928_v40, %s11364_s1 }
 0x88e   : > { %8939 = vrot.lane.b32.xlu0 %v8929_v38, %s11364_s1 }
 0x890   : > { %s723_s22 = scalar_lea.vmem %s11373_s27, %s9813_s29 }
 0x8d2   : > { %v8084_v50 = vpop.permute.xlu1 %8083 }
 0x8d4   : > { %v8082_v45 = vpop.permute.xlu0 %8081 }
 0x8d5   : > { %v8086_v51 = vsel %vm785_vm6, %v8082_v45, %v8084_v50 }
 0x8d6   : > { %9431 = vmatprep.subr.msk.mxu0 %vm792_vm8, %v8086_v51  ;;  %v8171_v54 = vpop.permute.xlu1 %8170 }
 0x8d8   : > { %v8080_v31 = vpop.permute.xlu0 %8079 }
 0x8d9   : > { %v8085_v5 = vsel %vm785_vm6, %v8080_v31, %v8082_v45 }
 0x8da   : > { %9432 = vmatpush1.msk.msra.mxu0 %vm792_vm8, %v8085_v5  ;;  %v8169_v6 = vpop.permute.xlu1 %8168 }
 0x8db   : > { %9433 = vmatmul.mubr.msk.f32.vlgmr.msra.gmra.mrb[10].mxu0 %vm788_vm9, %v9430_v55  ;;  %v8174_v57 = vsel %vm877_vm7, %v8169_v6, %v8171_v54 }
 0x8dc   : > { %v8173_v13 = vpop.permute.xlu0 %8172  ;;  %8247 = vmatprep.mubr.f32.mxu0 %v9646_v8 }
 0x8dd   : > { %v8175_v56 = vsel %vm877_vm7, %v8171_v54, %v8173_v13 }
 0x8de   : > { %9434 = vmatprep.subr.msk.mxu0 %vm792_vm8, %v8175_v56  ;;  %v8285_v47 = vpop.permute.xlu1 %8284 }
 0x8df   : > { %9435 = vmatpush1.msk.msra.mxu0 %vm792_vm8, %v8174_v57 }
 0x8e0   : > { %v8283_v59 = vpop.permute.xlu0 %8282 }
 0x8e1   : > { %v8287_v61 = vsel %vm992_vm5, %v8283_v59, %v8285_v47 }
 0x8e2   : > { %9439 = vmatprep.subr.msk.mxu0 %vm792_vm8, %v8287_v61  ;;  %v8397_v52 = vpop.permute.xlu1 %8396 }
 0x8e3   : > { %9436 = vmatmul.mubr.msk.f32.vlgmr.msra.gmra.mrb[10].mxu0 %vm788_vm9, %v8054_v60 }
 0x8e4   : > { %v8281_v62 = vpop.permute.xlu0 %8280  ;;  %8359 = vmatprep.mubr.f32.mxu0 %v9646_v8 }
 0x8e5   : > { %v8286_v63 = vsel %vm992_vm5, %v8281_v62, %v8283_v59 }
 0x8e6   : > { %9440 = vmatpush1.msk.msra.mxu0 %vm792_vm8, %v8286_v63  ;;  %v8395_v3 = vpop.permute.xlu1 %8394 }
 0x8e7   : > { %v8400_v10 = vsel %vm1109_vm4, %v8395_v3, %v8397_v52 }
 0x8e8   : > { %v8399_v39 = vpop.permute.xlu0 %8398 }
 0x8e9   : > { %v8401_v11 = vsel %vm1109_vm4, %v8397_v52, %v8399_v39 }
 0x8ea   : > { %9444 = vmatprep.subr.msk.mxu0 %vm792_vm8, %v8401_v11  ;;  %v8598_v17 = vpop.permute.xlu1 %8597 }
 0x8eb   : > { %9441 = vmatmul.mubr.msk.f32.vlgmr.msra.gmra.mrb[10].mxu0 %vm788_vm9, %v9438_v9 }
 0x8ec   : > { %9445 = vmatpush1.msk.msra.mxu0 %vm792_vm8, %v8400_v10  ;;  %v8596_v14 = vpop.permute.xlu0 %8595  ;;  %8473 = vmatprep.mubr.f32.mxu0 %v9646_v8 }
 0x8ed   : > { %9448 = vmatprep.subr.msk.mxu0 %vm792_vm8, %v9637_v12  ;;  %v8600_v7 = vsel %vm1092_vm3, %v8596_v14, %v8598_v17 }
 0x8ee   : > { %v8710_v23 = vpop.permute.xlu1 %8709 }
 0x8f0   : > { %v8594_v58 = vpop.permute.xlu0 %8593 }
 0x8f1   : > { %v8599_v21 = vsel %vm1092_vm3, %v8594_v58, %v8596_v14 }
 0x8f3   : > { %9446 = vmatmul.mubr.msk.f32.vlgmr.msra.gmra.mrb[10].mxu0 %vm788_vm9, %v9443_v16 }
 0x8f4   : > { %9449 = vmatpush1.msk.msra.mxu0 %vm792_vm8, %v11164_v44  ;;  %8558 = vmatprep.mubr.f32.mxu0 %v9646_v8  ;;  %v8712_v18 = vpop.permute.xlu0 %8711  ;;  %v8708_v44 = vpop.permute.xlu1 %8707 }
 0x8f5   : > { %9453 = vmatprep.subr.msk.mxu0 %vm792_vm8, %v8600_v7  ;;  %v8714_v15 = vsel %vm975_vm2, %v8710_v23, %v8712_v18  ;;  %v8713_v29 = vsel %vm975_vm2, %v8708_v44, %v8710_v23 }
 0x8f8   : > { %v8824_v22 = vpop.permute.xlu0 %8823  ;;  %v8826_v30 = vpop.permute.xlu1 %8825 }
 0x8f9   : > { %v8828_v36 = vsel %vm768_vm0, %v8824_v22, %v8826_v30 }
 0x8fb   : > { %9450 = vmatmul.mubr.msk.f32.vlgmr.msra.gmra.mrb[10].mxu0 %vm788_vm9, %v9447_v48 }
 0x8fc   : > { %9454 = vmatpush1.msk.msra.mxu0 %vm792_vm8, %v8599_v21  ;;  %8672 = vmatprep.mubr.f32.mxu0 %v9646_v8  ;;  %v8822_v1 = vpop.permute.xlu0 %8821  ;;  %v8938_v53 = vpop.permute.xlu1 %8937 }
 0x8fd   : > { %9458 = vmatprep.subr.msk.mxu0 %vm792_vm8, %v8714_v15  ;;  %v8827_v46 = vsel %vm768_vm0, %v8822_v1, %v8824_v22 }
 0x900   : > { %v8940_v35 = vpop.permute.xlu0 %8939  ;;  %v8936_v19 = vpop.permute.xlu1 %8935 }
 0x901   : > { %v8942_v4 = vsel %vm746_vm1, %v8938_v53, %v8940_v35  ;;  %v8941_v24 = vsel %vm746_vm1, %v8936_v19, %v8938_v53 }
 0x903   : > { %9455 = vmatmul.mubr.msk.f32.vlgmr.msra.gmra.mrb[10].mxu0 %vm788_vm9, %v9452_v28 }
 0x904   : > { %9459 = vmatpush1.msk.msra.mxu0 %vm792_vm8, %v8713_v29  ;;  %8786 = vmatprep.mubr.f32.mxu0 %v9646_v8 }
 0x905   : > { %9463 = vmatprep.subr.msk.mxu0 %vm792_vm8, %v8828_v36 }
 0x90b   : > { %9460 = vmatmul.mubr.msk.f32.vlgmr.msra.gmra.mrb[10].mxu0 %vm788_vm9, %v9457_v33 }
 0x90c   : > { %9464 = vmatpush1.msk.msra.mxu0 %vm792_vm8, %v8827_v46  ;;  %8900 = vmatprep.mubr.f32.mxu0 %v9646_v8 }
 0x90d   : > { %9468 = vmatprep.subr.msk.mxu0 %vm792_vm8, %v8942_v4 }
 0x913   : > { %9465 = vmatmul.mubr.msk.f32.vlgmr.msra.gmra.mrb[10].mxu0 %vm788_vm9, %v9462_v37 }
 0x914   : > { %9469 = vmatpush1.msk.msra.mxu0 %vm792_vm8, %v8941_v24  ;;  %9014 = vmatprep.mubr.f32.mxu0 %v9646_v8 }
 0x91b   : > { %9470 = vmatmul.mubr.msk.f32.vlgmr.msra.gmra.mrb[10].mxu0 %vm788_vm9, %v9467_v2 }
 0x9ee   : > { %v9016_v43 = vpop.f32.mrb[10].mxu0 }
 0x9ef   : > { %v9025_v25 = vmul.f32 %v9023_v42, %v9016_v43  ;;  %v9018_v40 = vpop.f32.mrb[11].mxu0 }
 0x9f0   : > { %v9026_v32 = vmul.f32 %v9024_v20, %v9018_v40 }
 0x9f1   : > { %v9027_v0 = vadd.f32 %v9025_v25, %v10592_v41 }
 0x9f2   : > { %v9028_v8 = vadd.f32 %v9026_v32, %v10576_v34 }
 0x9f4   : > { %v9031_v49 = vcombine.low %v9027_v0, %v9028_v8 }
 0x9f6   : > { %9033 = vst [vmem:[%s723_s22] sm:$0xff] %v9031_v49 }
 0x9f7 PF: > { %s11374_s5 = sld [smem:[#allocation3_spill]] }
 0x9fd   : > { %s32_s3 = sadd.s32 1, %s11374_s5  }
 0x9fe   : > { %p29_p4 = scmp.ge.s32.totalorder %s32_s3, 4  }
 0xa00   :  { %31 = sbr.rel (!%p29_p4) target bundleno = 12 (0xc), region = 215 }

</bundles_post_ra>
